<compile_context>
chip_gen: v6e
topology: v6e:2x2x1
jax: 0.10.0
libtpu: 0.0.40
codegen_flags: <defaults>
</compile_context>

<pallas_src>
import jax
import jax.numpy as jnp
from jax.experimental import pallas as pl
from jax.experimental.pallas import tpu as pltpu


def _cdiv(a: int, b: int) -> int:
    return (a + b - 1) // b


def _round_up(a: int, b: int) -> int:
    return _cdiv(a, b) * b


def traj_mixer_kernel(x_ref, w_ref, wc_ref, out_ref):
    # x_ref:  (L, TN, D)  native-layout tile of x (nodes on sublanes)
    # w_ref:  (1, D)      per-feature trajectory weights
    # wc_ref: (D, OUT)    channel-mixing matrix
    # out_ref:(TN, OUT)   per-node output tile, written straight into (N, OUT)
    L = x_ref.shape[0]
    w = w_ref[...]                                                # (1, D)

    # Pass 1 (hop loop, unrolled): a_l = relu(sum_d w[d] * x[l, :, d]).
    # Kept as L small (TN, 1) values so no (L, TN, D)-sized temporary is built.
    a = [jnp.maximum(jnp.sum(x_ref[l] * w, axis=-1, keepdims=True), 0.0)
         for l in range(L)]

    # F.normalize(T_weighted, dim=0): divide by max(L2 norm over hops, 1e-12).
    sq = a[0] * a[0]
    for l in range(1, L):
        sq = sq + a[l] * a[l]
    inv_norm = 1.0 / jnp.maximum(jnp.sqrt(sq), 1e-12)             # (TN, 1)

    # Pass 2: T_mixed = sum_l (a_l / ||a||) * x[l], accumulated hop by hop
    # (x is re-read from VMEM, which is essentially free; avoids (L,TN,D) temps).
    t_mixed = (a[0] * inv_norm) * x_ref[0]
    for l in range(1, L):
        t_mixed = t_mixed + (a[l] * inv_norm) * x_ref[l]          # (TN, D)

    # Channel mixing on the MXU.  Direct (TN, OUT) store; masked vst on the
    # OUT (=32) lane axis is acceptable because the kernel is HBM-read bound.
    # (Default matmul precision drifts ~1e-3 vs f32 reference — within test tol;
    #  pass precision=HIGHEST here if bit-tighter parity is ever required.)
    out_ref[...] = jnp.dot(t_mixed, wc_ref[...],
                           preferred_element_type=jnp.float32)


def _pick_tile(n: int, l: int, d: int,
               vmem_budget_bytes: int = 16 << 20, max_tn: int = 8192) -> int:
    """Node-tile size: big enough to amortise the ~0.35us/step overhead, small
    enough that the double-buffered x block (worst-case lane padding of the
    feature dim to 128) stays inside the VMEM budget, and >= 2 grid steps so
    v7x's two TensorCores both get work."""
    per_node_vmem = 2 * l * _round_up(max(d, 1), 128) * 4   # 2 buffers, f32
    tn_cap = (vmem_budget_bytes // per_node_vmem) // 128 * 128
    tn_cap = max(128, min(max_tn, tn_cap))
    nb = max(2, _cdiv(n, tn_cap))                           # >= 2 grid steps
    tn = min(tn_cap, _round_up(_cdiv(n, nb), 128))
    return max(128, tn)


def trajectory_mlp_mixer(x, w_traj, w_channel, *, tn=None):
    """x: (L, N, d) f32; w_traj: (1, d); w_channel: (d, out)  ->  (N, out)."""
    L, N, D = x.shape
    out_dim = w_channel.shape[1]

    if tn is None:
        tn = _pick_tile(N, L, D)
    else:
        tn = max(8, _round_up(min(tn, _round_up(N, 8)), 8))  # sublane multiple
    grid = _cdiv(N, tn)   # ragged last block handled by Pallas partial blocks

    x = x.astype(jnp.float32)
    w = w_traj.astype(jnp.float32).reshape(1, D)
    wc = w_channel.astype(jnp.float32)

    return pl.pallas_call(
        traj_mixer_kernel,
        out_shape=jax.ShapeDtypeStruct((N, out_dim), jnp.float32),
        grid_spec=pltpu.PrefetchScalarGridSpec(
            num_scalar_prefetch=0,
            grid=(grid,),
            in_specs=[
                # Native layout: L strided, contiguous chunks of tn*D*4 bytes.
                pl.BlockSpec((L, tn, D), lambda i: (0, i, 0)),
                pl.BlockSpec((1, D), lambda i: (0, 0)),          # replicated
                pl.BlockSpec((D, out_dim), lambda i: (0, 0)),    # replicated
            ],
            out_specs=pl.BlockSpec((tn, out_dim), lambda i: (i, 0)),
        ),
        compiler_params=pltpu.CompilerParams(
            dimension_semantics=("parallel",),   # node tiles shard across TCs
            vmem_limit_bytes=32 << 20,           # fits v5e / v6e / v7x budgets
        ),
    )(x, w, wc)


def trajectory_mlp_mixer_ref(x, w_traj, w_channel):
    """Pure-JAX reference mirroring the PyTorch forward exactly."""
    a = jax.nn.relu(jnp.sum(w_traj * x, axis=2))                  # (L, N)
    a = a / jnp.maximum(jnp.linalg.norm(a, axis=0, keepdims=True), 1e-12)
    t_mixed = jnp.sum(a[:, :, None] * x, axis=0)                  # (N, d)
    return jnp.dot(t_mixed, w_channel,
                   precision=jax.lax.Precision.HIGHEST)           # (N, out)


if __name__ == "__main__":
    # Small, deterministic shapes consistent with the module:
    #   L (hops) = 8, N (nodes) = 1000 (deliberately NOT a multiple of any tile,
    #   to exercise the ragged-final-block path), trace_dim = 16, mvc_dim = 32.
    L, N, trace_dim, mvc_dim = 8, 1000, 16, 32

    key = jax.random.PRNGKey(0)
    kx, kw, kc = jax.random.split(key, 3)

    x = jax.random.normal(kx, (L, N, trace_dim), dtype=jnp.float32)     # data.trace_all
    w_traj = jax.random.normal(kw, (1, trace_dim), dtype=jnp.float32)   # nn.Parameter
    w_channel = jax.random.normal(kc, (trace_dim, mvc_dim), dtype=jnp.float32)

    ref = trajectory_mlp_mixer_ref(x, w_traj, w_channel)

    # Small explicit tile: several grid steps plus a ragged final tile.
    out = jax.block_until_ready(trajectory_mlp_mixer(x, w_traj, w_channel, tn=192))
    assert out.shape == (N, mvc_dim)
    assert jnp.allclose(out, ref, atol=2e-3, rtol=2e-3), "mismatch vs reference (tn=192)"

    # Auto-selected tile (the default, workload-sized path).
    out2 = jax.block_until_ready(trajectory_mlp_mixer(x, w_traj, w_channel))
    assert out2.shape == (N, mvc_dim)
    assert jnp.allclose(out2, ref, atol=2e-3, rtol=2e-3), "mismatch vs reference (auto tn)"

    print("KERNEL_OK")
</pallas_src>

<mosaic_0001>
module attributes {stable_mosaic.version = 11 : i64} {
  func.func @traj_mixer_kernel(%arg0: i32, %arg1: memref<8x192x16xf32, #tpu.memory_space<vmem>>, %arg2: memref<1x16xf32, #tpu.memory_space<vmem>>, %arg3: memref<16x32xf32, #tpu.memory_space<vmem>>, %arg4: memref<192x32xf32, #tpu.memory_space<vmem>>) attributes {dimension_semantics = [#tpu.dimension_semantics<parallel>], iteration_bounds = array<i64: 6>, scalar_prefetch = 0 : i64, scratch_operands = 0 : i64, tpu.core_type = #tpu.core_type<tc>, window_params = [{transform_indices = @transform_0, window_bounds = array<i64: 8, 192, 16>}, {pipeline_mode = #tpu.pipeline_mode<synchronous>, transform_indices = @transform_1, window_bounds = array<i64: 1, 16>}, {pipeline_mode = #tpu.pipeline_mode<synchronous>, transform_indices = @transform_2, window_bounds = array<i64: 16, 32>}, {transform_indices = @transform_3, window_bounds = array<i64: 192, 32>}]} {
    %c0 = arith.constant 0 : index
    %c0_0 = arith.constant 0 : index
    %0 = vector.load %arg2[%c0, %c0_0] : memref<1x16xf32, #tpu.memory_space<vmem>>, vector<1x16xf32>
    %c0_1 = arith.constant 0 : index
    %c0_2 = arith.constant 0 : index
    %c0_3 = arith.constant 0 : index
    %1 = vector.load %arg1[%c0_1, %c0_2, %c0_3] : memref<8x192x16xf32, #tpu.memory_space<vmem>>, vector<1x192x16xf32>
    %2 = vector.shape_cast %1 : vector<1x192x16xf32> to vector<192x16xf32>
    %3 = vector.broadcast %0 : vector<1x16xf32> to vector<192x16xf32>
    %4 = arith.mulf %2, %3 : vector<192x16xf32>
    %cst = arith.constant dense<0.000000e+00> : vector<192xf32>
    %5 = vector.multi_reduction <add>, %4, %cst [1] : vector<192x16xf32> to vector<192xf32>
    %6 = vector.shape_cast %5 : vector<192xf32> to vector<192x1xf32>
    %cst_4 = arith.constant 0.000000e+00 : f32
    %7 = vector.broadcast %cst_4 : f32 to vector<192x1xf32>
    %8 = arith.maximumf %6, %7 : vector<192x1xf32>
    %c1 = arith.constant 1 : index
    %c0_5 = arith.constant 0 : index
    %c0_6 = arith.constant 0 : index
    %9 = vector.load %arg1[%c1, %c0_5, %c0_6] : memref<8x192x16xf32, #tpu.memory_space<vmem>>, vector<1x192x16xf32>
    %10 = vector.shape_cast %9 : vector<1x192x16xf32> to vector<192x16xf32>
    %11 = vector.broadcast %0 : vector<1x16xf32> to vector<192x16xf32>
    %12 = arith.mulf %10, %11 : vector<192x16xf32>
    %cst_7 = arith.constant dense<0.000000e+00> : vector<192xf32>
    %13 = vector.multi_reduction <add>, %12, %cst_7 [1] : vector<192x16xf32> to vector<192xf32>
    %14 = vector.shape_cast %13 : vector<192xf32> to vector<192x1xf32>
    %cst_8 = arith.constant 0.000000e+00 : f32
    %15 = vector.broadcast %cst_8 : f32 to vector<192x1xf32>
    %16 = arith.maximumf %14, %15 : vector<192x1xf32>
    %c2 = arith.constant 2 : index
    %c0_9 = arith.constant 0 : index
    %c0_10 = arith.constant 0 : index
    %17 = vector.load %arg1[%c2, %c0_9, %c0_10] : memref<8x192x16xf32, #tpu.memory_space<vmem>>, vector<1x192x16xf32>
    %18 = vector.shape_cast %17 : vector<1x192x16xf32> to vector<192x16xf32>
    %19 = vector.broadcast %0 : vector<1x16xf32> to vector<192x16xf32>
    %20 = arith.mulf %18, %19 : vector<192x16xf32>
    %cst_11 = arith.constant dense<0.000000e+00> : vector<192xf32>
    %21 = vector.multi_reduction <add>, %20, %cst_11 [1] : vector<192x16xf32> to vector<192xf32>
    %22 = vector.shape_cast %21 : vector<192xf32> to vector<192x1xf32>
    %cst_12 = arith.constant 0.000000e+00 : f32
    %23 = vector.broadcast %cst_12 : f32 to vector<192x1xf32>
    %24 = arith.maximumf %22, %23 : vector<192x1xf32>
    %c3 = arith.constant 3 : index
    %c0_13 = arith.constant 0 : index
    %c0_14 = arith.constant 0 : index
    %25 = vector.load %arg1[%c3, %c0_13, %c0_14] : memref<8x192x16xf32, #tpu.memory_space<vmem>>, vector<1x192x16xf32>
    %26 = vector.shape_cast %25 : vector<1x192x16xf32> to vector<192x16xf32>
    %27 = vector.broadcast %0 : vector<1x16xf32> to vector<192x16xf32>
    %28 = arith.mulf %26, %27 : vector<192x16xf32>
    %cst_15 = arith.constant dense<0.000000e+00> : vector<192xf32>
    %29 = vector.multi_reduction <add>, %28, %cst_15 [1] : vector<192x16xf32> to vector<192xf32>
    %30 = vector.shape_cast %29 : vector<192xf32> to vector<192x1xf32>
    %cst_16 = arith.constant 0.000000e+00 : f32
    %31 = vector.broadcast %cst_16 : f32 to vector<192x1xf32>
    %32 = arith.maximumf %30, %31 : vector<192x1xf32>
    %c4 = arith.constant 4 : index
    %c0_17 = arith.constant 0 : index
    %c0_18 = arith.constant 0 : index
    %33 = vector.load %arg1[%c4, %c0_17, %c0_18] : memref<8x192x16xf32, #tpu.memory_space<vmem>>, vector<1x192x16xf32>
    %34 = vector.shape_cast %33 : vector<1x192x16xf32> to vector<192x16xf32>
    %35 = vector.broadcast %0 : vector<1x16xf32> to vector<192x16xf32>
    %36 = arith.mulf %34, %35 : vector<192x16xf32>
    %cst_19 = arith.constant dense<0.000000e+00> : vector<192xf32>
    %37 = vector.multi_reduction <add>, %36, %cst_19 [1] : vector<192x16xf32> to vector<192xf32>
    %38 = vector.shape_cast %37 : vector<192xf32> to vector<192x1xf32>
    %cst_20 = arith.constant 0.000000e+00 : f32
    %39 = vector.broadcast %cst_20 : f32 to vector<192x1xf32>
    %40 = arith.maximumf %38, %39 : vector<192x1xf32>
    %c5 = arith.constant 5 : index
    %c0_21 = arith.constant 0 : index
    %c0_22 = arith.constant 0 : index
    %41 = vector.load %arg1[%c5, %c0_21, %c0_22] : memref<8x192x16xf32, #tpu.memory_space<vmem>>, vector<1x192x16xf32>
    %42 = vector.shape_cast %41 : vector<1x192x16xf32> to vector<192x16xf32>
    %43 = vector.broadcast %0 : vector<1x16xf32> to vector<192x16xf32>
    %44 = arith.mulf %42, %43 : vector<192x16xf32>
    %cst_23 = arith.constant dense<0.000000e+00> : vector<192xf32>
    %45 = vector.multi_reduction <add>, %44, %cst_23 [1] : vector<192x16xf32> to vector<192xf32>
    %46 = vector.shape_cast %45 : vector<192xf32> to vector<192x1xf32>
    %cst_24 = arith.constant 0.000000e+00 : f32
    %47 = vector.broadcast %cst_24 : f32 to vector<192x1xf32>
    %48 = arith.maximumf %46, %47 : vector<192x1xf32>
    %c6 = arith.constant 6 : index
    %c0_25 = arith.constant 0 : index
    %c0_26 = arith.constant 0 : index
    %49 = vector.load %arg1[%c6, %c0_25, %c0_26] : memref<8x192x16xf32, #tpu.memory_space<vmem>>, vector<1x192x16xf32>
    %50 = vector.shape_cast %49 : vector<1x192x16xf32> to vector<192x16xf32>
    %51 = vector.broadcast %0 : vector<1x16xf32> to vector<192x16xf32>
    %52 = arith.mulf %50, %51 : vector<192x16xf32>
    %cst_27 = arith.constant dense<0.000000e+00> : vector<192xf32>
    %53 = vector.multi_reduction <add>, %52, %cst_27 [1] : vector<192x16xf32> to vector<192xf32>
    %54 = vector.shape_cast %53 : vector<192xf32> to vector<192x1xf32>
    %cst_28 = arith.constant 0.000000e+00 : f32
    %55 = vector.broadcast %cst_28 : f32 to vector<192x1xf32>
    %56 = arith.maximumf %54, %55 : vector<192x1xf32>
    %c7 = arith.constant 7 : index
    %c0_29 = arith.constant 0 : index
    %c0_30 = arith.constant 0 : index
    %57 = vector.load %arg1[%c7, %c0_29, %c0_30] : memref<8x192x16xf32, #tpu.memory_space<vmem>>, vector<1x192x16xf32>
    %58 = vector.shape_cast %57 : vector<1x192x16xf32> to vector<192x16xf32>
    %59 = vector.broadcast %0 : vector<1x16xf32> to vector<192x16xf32>
    %60 = arith.mulf %58, %59 : vector<192x16xf32>
    %cst_31 = arith.constant dense<0.000000e+00> : vector<192xf32>
    %61 = vector.multi_reduction <add>, %60, %cst_31 [1] : vector<192x16xf32> to vector<192xf32>
    %62 = vector.shape_cast %61 : vector<192xf32> to vector<192x1xf32>
    %cst_32 = arith.constant 0.000000e+00 : f32
    %63 = vector.broadcast %cst_32 : f32 to vector<192x1xf32>
    %64 = arith.maximumf %62, %63 : vector<192x1xf32>
    %65 = arith.mulf %8, %8 : vector<192x1xf32>
    %66 = arith.mulf %16, %16 : vector<192x1xf32>
    %67 = arith.addf %65, %66 : vector<192x1xf32>
    %68 = arith.mulf %24, %24 : vector<192x1xf32>
    %69 = arith.addf %67, %68 : vector<192x1xf32>
    %70 = arith.mulf %32, %32 : vector<192x1xf32>
    %71 = arith.addf %69, %70 : vector<192x1xf32>
    %72 = arith.mulf %40, %40 : vector<192x1xf32>
    %73 = arith.addf %71, %72 : vector<192x1xf32>
    %74 = arith.mulf %48, %48 : vector<192x1xf32>
    %75 = arith.addf %73, %74 : vector<192x1xf32>
    %76 = arith.mulf %56, %56 : vector<192x1xf32>
    %77 = arith.addf %75, %76 : vector<192x1xf32>
    %78 = arith.mulf %64, %64 : vector<192x1xf32>
    %79 = arith.addf %77, %78 : vector<192x1xf32>
    %80 = math.sqrt %79 : vector<192x1xf32>
    %cst_33 = arith.constant 9.99999996E-13 : f32
    %81 = vector.broadcast %cst_33 : f32 to vector<192x1xf32>
    %82 = arith.maximumf %80, %81 : vector<192x1xf32>
    %cst_34 = arith.constant 1.000000e+00 : f32
    %83 = vector.broadcast %cst_34 : f32 to vector<192x1xf32>
    %84 = arith.divf %83, %82 : vector<192x1xf32>
    %85 = arith.mulf %8, %84 : vector<192x1xf32>
    %c0_35 = arith.constant 0 : index
    %c0_36 = arith.constant 0 : index
    %c0_37 = arith.constant 0 : index
    %86 = vector.load %arg1[%c0_35, %c0_36, %c0_37] : memref<8x192x16xf32, #tpu.memory_space<vmem>>, vector<1x192x16xf32>
    %87 = vector.shape_cast %86 : vector<1x192x16xf32> to vector<192x16xf32>
    %88 = vector.broadcast %85 : vector<192x1xf32> to vector<192x16xf32>
    %89 = arith.mulf %88, %87 : vector<192x16xf32>
    %90 = arith.mulf %16, %84 : vector<192x1xf32>
    %c1_38 = arith.constant 1 : index
    %c0_39 = arith.constant 0 : index
    %c0_40 = arith.constant 0 : index
    %91 = vector.load %arg1[%c1_38, %c0_39, %c0_40] : memref<8x192x16xf32, #tpu.memory_space<vmem>>, vector<1x192x16xf32>
    %92 = vector.shape_cast %91 : vector<1x192x16xf32> to vector<192x16xf32>
    %93 = vector.broadcast %90 : vector<192x1xf32> to vector<192x16xf32>
    %94 = arith.mulf %93, %92 : vector<192x16xf32>
    %95 = arith.addf %89, %94 : vector<192x16xf32>
    %96 = arith.mulf %24, %84 : vector<192x1xf32>
    %c2_41 = arith.constant 2 : index
    %c0_42 = arith.constant 0 : index
    %c0_43 = arith.constant 0 : index
    %97 = vector.load %arg1[%c2_41, %c0_42, %c0_43] : memref<8x192x16xf32, #tpu.memory_space<vmem>>, vector<1x192x16xf32>
    %98 = vector.shape_cast %97 : vector<1x192x16xf32> to vector<192x16xf32>
    %99 = vector.broadcast %96 : vector<192x1xf32> to vector<192x16xf32>
    %100 = arith.mulf %99, %98 : vector<192x16xf32>
    %101 = arith.addf %95, %100 : vector<192x16xf32>
    %102 = arith.mulf %32, %84 : vector<192x1xf32>
    %c3_44 = arith.constant 3 : index
    %c0_45 = arith.constant 0 : index
    %c0_46 = arith.constant 0 : index
    %103 = vector.load %arg1[%c3_44, %c0_45, %c0_46] : memref<8x192x16xf32, #tpu.memory_space<vmem>>, vector<1x192x16xf32>
    %104 = vector.shape_cast %103 : vector<1x192x16xf32> to vector<192x16xf32>
    %105 = vector.broadcast %102 : vector<192x1xf32> to vector<192x16xf32>
    %106 = arith.mulf %105, %104 : vector<192x16xf32>
    %107 = arith.addf %101, %106 : vector<192x16xf32>
    %108 = arith.mulf %40, %84 : vector<192x1xf32>
    %c4_47 = arith.constant 4 : index
    %c0_48 = arith.constant 0 : index
    %c0_49 = arith.constant 0 : index
    %109 = vector.load %arg1[%c4_47, %c0_48, %c0_49] : memref<8x192x16xf32, #tpu.memory_space<vmem>>, vector<1x192x16xf32>
    %110 = vector.shape_cast %109 : vector<1x192x16xf32> to vector<192x16xf32>
    %111 = vector.broadcast %108 : vector<192x1xf32> to vector<192x16xf32>
    %112 = arith.mulf %111, %110 : vector<192x16xf32>
    %113 = arith.addf %107, %112 : vector<192x16xf32>
    %114 = arith.mulf %48, %84 : vector<192x1xf32>
    %c5_50 = arith.constant 5 : index
    %c0_51 = arith.constant 0 : index
    %c0_52 = arith.constant 0 : index
    %115 = vector.load %arg1[%c5_50, %c0_51, %c0_52] : memref<8x192x16xf32, #tpu.memory_space<vmem>>, vector<1x192x16xf32>
    %116 = vector.shape_cast %115 : vector<1x192x16xf32> to vector<192x16xf32>
    %117 = vector.broadcast %114 : vector<192x1xf32> to vector<192x16xf32>
    %118 = arith.mulf %117, %116 : vector<192x16xf32>
    %119 = arith.addf %113, %118 : vector<192x16xf32>
    %120 = arith.mulf %56, %84 : vector<192x1xf32>
    %c6_53 = arith.constant 6 : index
    %c0_54 = arith.constant 0 : index
    %c0_55 = arith.constant 0 : index
    %121 = vector.load %arg1[%c6_53, %c0_54, %c0_55] : memref<8x192x16xf32, #tpu.memory_space<vmem>>, vector<1x192x16xf32>
    %122 = vector.shape_cast %121 : vector<1x192x16xf32> to vector<192x16xf32>
    %123 = vector.broadcast %120 : vector<192x1xf32> to vector<192x16xf32>
    %124 = arith.mulf %123, %122 : vector<192x16xf32>
    %125 = arith.addf %119, %124 : vector<192x16xf32>
    %126 = arith.mulf %64, %84 : vector<192x1xf32>
    %c7_56 = arith.constant 7 : index
    %c0_57 = arith.constant 0 : index
    %c0_58 = arith.constant 0 : index
    %127 = vector.load %arg1[%c7_56, %c0_57, %c0_58] : memref<8x192x16xf32, #tpu.memory_space<vmem>>, vector<1x192x16xf32>
    %128 = vector.shape_cast %127 : vector<1x192x16xf32> to vector<192x16xf32>
    %129 = vector.broadcast %126 : vector<192x1xf32> to vector<192x16xf32>
    %130 = arith.mulf %129, %128 : vector<192x16xf32>
    %131 = arith.addf %125, %130 : vector<192x16xf32>
    %c0_59 = arith.constant 0 : index
    %c0_60 = arith.constant 0 : index
    %132 = vector.load %arg3[%c0_59, %c0_60] : memref<16x32xf32, #tpu.memory_space<vmem>>, vector<16x32xf32>
    %cst_61 = arith.constant dense<0.000000e+00> : vector<192x32xf32>
    %133 = tpu.matmul %131, %132, %cst_61 {dimension_numbers = #tpu.dot_dimension_numbers<[1], [0], [0], [1], [0, 0, 1, 1], [], []>} : vector<192x16xf32>, vector<16x32xf32>, vector<192x32xf32> -> vector<192x32xf32>
    %c0_62 = arith.constant 0 : index
    %c0_63 = arith.constant 0 : index
    %134 = vector.load %arg4[%c0_62, %c0_63] : memref<192x32xf32, #tpu.memory_space<vmem>>, vector<192x32xf32>
    tpu.vector_store %arg4[%c0_62, %c0_63], %133 {strides = array<i32>} : memref<192x32xf32, #tpu.memory_space<vmem>>, vector<192x32xf32>,
    return
  }
  func.func @transform_0(%arg0: i32) -> (i32, i32, i32) {
    %c0_i32 = arith.constant 0 : i32
    %c0_i32_0 = arith.constant 0 : i32
    %c0_i32_1 = arith.constant 0 : i32
    return %c0_i32, %arg0, %c0_i32_0 : i32, i32, i32
  }
  func.func @transform_1(%arg0: i32) -> (i32, i32) {
    %c0_i32 = arith.constant 0 : i32
    %c0_i32_0 = arith.constant 0 : i32
    %c0_i32_1 = arith.constant 0 : i32
    return %c0_i32, %c0_i32_0 : i32, i32
  }
  func.func @transform_2(%arg0: i32) -> (i32, i32) {
    %c0_i32 = arith.constant 0 : i32
    %c0_i32_0 = arith.constant 0 : i32
    %c0_i32_1 = arith.constant 0 : i32
    return %c0_i32, %c0_i32_0 : i32, i32
  }
  func.func @transform_3(%arg0: i32) -> (i32, i32) {
    %c0_i32 = arith.constant 0 : i32
    %c0_i32_0 = arith.constant 0 : i32
    return %arg0, %c0_i32 : i32, i32
  }
}

</mosaic_0001>

<bundles_post_ra>
// kernel: tpu_custom_call.1
= control target key start
LH: loop header
LB: loop body
LE: loop exit
PB: predicated region body
PF: predicated region fallthrough
CT: control target
= control target key end

     0   :  { %s4450_s12 = smov 0   ;;  %s4452_s13 = smov 0   ;;  %s7715_s0 = inlined_call_operand.vmem [shape: f32[8,1000,16], index: 0, kind: input, shape index: {}]   ;;  %s7716_s1 = inlined_call_operand.vmem [shape: f32[1,16], index: 1, kind: input, shape index: {}]   ;;  %s7717_s2 = inlined_call_operand.vmem [shape: f32[16,32], index: 2, kind: input, shape index: {}]   ;;  %s7718_s3 = inlined_call_operand.vmem [shape: f32[1000,32], index: 3, kind: output, shape index: {}]  }
   0x1   :  { %s4454_s14 = smov 0  }
   0x2 LB: > { %s4466_s15 = sadd.s32 4294967295, %s4364_s14   ;;  %s4469_s16 = sadd.s32 1, %s4364_s14   ;;  %s4364_s14 = sphi %s4454_s14, %s8177_s14   ;;  %s4360_s13 = sphi %s4452_s13, %s8176_s13   ;;  %s4356_s12 = sphi %s4450_s12, %s8175_s12  }
   0x3   : > { %s17_s17 = ssub.s32 %s4364_s14, %s4469_s16  ;;  %s20_s18 = sadd.s32 1, %s4360_s13 }
   0x4   : > { %p18_p0 = scmp.eq.s32.totalorder %s17_s17, 0  ;;  %p27_p1 = scmp.ne.s32.totalorder %s4360_s13, %s4356_s12 }
   0x5   : > { %p28_p2 = scmp.eq.s32.totalorder %s4364_s14, 0  ;;  %p99_p3 = scmp.eq.s32.totalorder %s4466_s15, 5 }
   0x6   : > { %s4479_s19 = scalar_select %p18_p0, %s4360_s13, %s20_s18  }
   0x7   : > { %p29_p4 = por %p28_p2, %p27_p1  ;;  %p4481_p5 = por %p99_p3, %p27_p1 }
   0x8   : > { %p3534_p6 = scmp.ge.s32.totalorder %s4364_s14, 6 }
   0xa   : > { %127 = sbr.rel (%p3534_p6) target bundleno = 85 (0x55), region = 24 }
   0xf   : > { %130 = sbr.rel (!%p29_p4) target bundleno = 85 (0x55), region = 28  ;;  %s132_s21 = sand.u32 (%p29_p4), 1, %s4360_s13  }
  0x10   : > { %s135_s22 = smul.u32 (%p29_p4), 24, %s4364_s14 }
  0x11   : > { %s3828_s23 = smul.u32 (%p29_p4), 1536, %s132_s21 }
  0x12   : > { %s136_s24 = ssub.s32 (%p29_p4), 125, %s135_s22  ;;  %s3754_s25 = smul.u32 (%p29_p4), 192, %s4364_s14 }
  0x13   : > { %p137_p7 = scmp.lt.s32.totalorder (%p29_p4), %s136_s24, 24  ;;  %s4497_s30 = scalar_lea.vmem (%p29_p4), [#allocation2], %s3828_s23  }
  0x14   : > { %s4492_s28 = scalar_lea.vmem %s7715_s0, %s3754_s25  }
  0x15   : > { %s8179_s24 = smov (!%p137_p7, %s136_s24), 24 }
  0x16   : > { %s3535_s29 = sshll.u32 %s8179_s24, 10 }
  0x17   : > { %p3538_p8 = scmp.eq.s32.totalorder %s3535_s29, 0 }
  0x18   : > { %s4500_s4 = sshrl.u32 (!%p3538_p8), %s8179_s24, 3 }
  0x19   : > { %145 = sbr.rel (%p3538_p8) target bundleno = 85 (0x55), region = 32  ;;  %p3539_p9 = scmp.le.s32.totalorder (!%p3538_p8), %s4500_s4, 0 }
  0x1e   : > { %3460 = sbr.rel (%p3539_p9) target bundleno = 68 (0x44), region = 188  ;;  %s7861_s5 = smov (!%p3539_p9), %s4497_s30 }
  0x1f   : > { %s7862_s6 = smov (!%p3539_p9), %s4492_s28  ;;  %s4509_s7 = smov (!%p3539_p9), 0  }
  0x20   : > { %s4511_s8 = smov (!%p3539_p9), 0  }
  0x23 LB: >> { %v348_v0 = vld [vmem:[%s4372_s6] sm:$0xff]  ;;  %v350_v1 = vld [vmem:[%s4372_s6 + $0x8] sm:$0xff]  ;;  %v352_v2 = vld [vmem:[%s4372_s6 + $0x10] sm:$0xff]  ;;  %s476_s9 = sadd.s32 1, %s4376_s7  ;;  %s342_s8 = sadd.s32 1, %s4380_s8   ;;  %s4380_s8 = sphi %s4511_s8, %s342_s8   ;;  %s4376_s7 = sphi %s4509_s7, %s7865_s7   ;;  %s4372_s6 = sphi %s7862_s6, %s7864_s6   ;;  %s4368_s5 = sphi %s7861_s5, %s7863_s5  }
  0x24   : >> { %349 = vst [vmem:[%s4368_s5] sm:$0xff] %v348_v0  ;;  %351 = vst [vmem:[%s4368_s5 + $0x8] sm:$0xff] %v350_v1  ;;  %v354_v3 = vld [vmem:[%s4372_s6 + $0x18] sm:$0xff]  ;;  %v356_v4 = vld [vmem:[%s4372_s6 + $0x20] sm:$0xff]  ;;  %p477_p10 = scmp.ge.s32.totalorder %s476_s9, %s4500_s4  ;;  %p341_p11 = scmp.ge.s32.totalorder %s342_s8, %s4500_s4 }
  0x25   : >> { %353 = vst [vmem:[%s4368_s5 + $0x10] sm:$0xff] %v352_v2  ;;  %v358_v5 = vld [vmem:[%s4372_s6 + $0x28] sm:$0xff]  ;;  %355 = vst [vmem:[%s4368_s5 + $0x18] sm:$0xff] %v354_v3  ;;  %v360_v6 = vld [vmem:[%s4372_s6 + $0x30] sm:$0xff] }
  0x26   : >> { %357 = vst [vmem:[%s4368_s5 + $0x20] sm:$0xff] %v356_v4  ;;  %359 = vst [vmem:[%s4368_s5 + $0x28] sm:$0xff] %v358_v5  ;;  %v362_v7 = vld [vmem:[%s4372_s6 + $0x38] sm:$0xff]  ;;  %v364_v8 = vld [vmem:[%s4372_s6 + $0x3e8] sm:$0xff]  ;;  %s8181_s9 = smov (%p477_p10, %s476_s9), 0 }
  0x27   : >> { %361 = vst [vmem:[%s4368_s5 + $0x30] sm:$0xff] %v360_v6  ;;  %363 = vst [vmem:[%s4368_s5 + $0x38] sm:$0xff] %v362_v7  ;;  %v366_v9 = vld [vmem:[%s4372_s6 + $0x3f0] sm:$0xff]  ;;  %v368_v10 = vld [vmem:[%s4372_s6 + $0x3f8] sm:$0xff]  ;;  %s3540_s10 = sshll.u32 %s8181_s9, 6  ;;  %s7865_s7 = smov %s8181_s9 }
  0x28   : >> { %365 = vst [vmem:[%s4368_s5 + $0xc0] sm:$0xff] %v364_v8  ;;  %v370_v11 = vld [vmem:[%s4372_s6 + $0x400] sm:$0xff]  ;;  %367 = vst [vmem:[%s4368_s5 + $0xc8] sm:$0xff] %v366_v9  ;;  %v372_v12 = vld [vmem:[%s4372_s6 + $0x408] sm:$0xff]  ;;  %s4567_s11 = scalar_lea.vmem %s4492_s28, %s3540_s10   ;;  %s4570_s17 = scalar_lea.vmem %s4497_s30, %s3540_s10 [#allocation2]  }
  0x29   : >> { %369 = vst [vmem:[%s4368_s5 + $0xd0] sm:$0xff] %v368_v10  ;;  %371 = vst [vmem:[%s4368_s5 + $0xd8] sm:$0xff] %v370_v11  ;;  %v374_v13 = vld [vmem:[%s4372_s6 + $0x410] sm:$0xff]  ;;  %v376_v14 = vld [vmem:[%s4372_s6 + $0x418] sm:$0xff] }
  0x2a   : >> { %373 = vst [vmem:[%s4368_s5 + $0xe0] sm:$0xff] %v372_v12  ;;  %375 = vst [vmem:[%s4368_s5 + $0xe8] sm:$0xff] %v374_v13  ;;  %v378_v15 = vld [vmem:[%s4372_s6 + $0x420] sm:$0xff]  ;;  %v380_v16 = vld [vmem:[%s4372_s6 + $0x7d0] sm:$0xff] }
  0x2b   : >> { %377 = vst [vmem:[%s4368_s5 + $0xf0] sm:$0xff] %v376_v14  ;;  %v382_v17 = vld [vmem:[%s4372_s6 + $0x7d8] sm:$0xff]  ;;  %379 = vst [vmem:[%s4368_s5 + $0xf8] sm:$0xff] %v378_v15  ;;  %v384_v18 = vld [vmem:[%s4372_s6 + $0x7e0] sm:$0xff] }
  0x2c   : >> { %381 = vst [vmem:[%s4368_s5 + $0x180] sm:$0xff] %v380_v16  ;;  %383 = vst [vmem:[%s4368_s5 + $0x188] sm:$0xff] %v382_v17  ;;  %v386_v19 = vld [vmem:[%s4372_s6 + $0x7e8] sm:$0xff]  ;;  %v388_v20 = vld [vmem:[%s4372_s6 + $0x7f0] sm:$0xff] }
  0x2d   : >> { %385 = vst [vmem:[%s4368_s5 + $0x190] sm:$0xff] %v384_v18  ;;  %387 = vst [vmem:[%s4368_s5 + $0x198] sm:$0xff] %v386_v19  ;;  %v390_v21 = vld [vmem:[%s4372_s6 + $0x7f8] sm:$0xff]  ;;  %v392_v22 = vld [vmem:[%s4372_s6 + $0x800] sm:$0xff] }
  0x2e   : >> { %389 = vst [vmem:[%s4368_s5 + $0x1a0] sm:$0xff] %v388_v20  ;;  %v394_v23 = vld [vmem:[%s4372_s6 + $0x808] sm:$0xff]  ;;  %391 = vst [vmem:[%s4368_s5 + $0x1a8] sm:$0xff] %v390_v21  ;;  %v396_v24 = vld [vmem:[%s4372_s6 + $0xbb8] sm:$0xff] }
  0x2f   : >> { %393 = vst [vmem:[%s4368_s5 + $0x1b0] sm:$0xff] %v392_v22  ;;  %395 = vst [vmem:[%s4368_s5 + $0x1b8] sm:$0xff] %v394_v23  ;;  %v398_v25 = vld [vmem:[%s4372_s6 + $0xbc0] sm:$0xff]  ;;  %v400_v26 = vld [vmem:[%s4372_s6 + $0xbc8] sm:$0xff] }
  0x30   : >> { %397 = vst [vmem:[%s4368_s5 + $0x240] sm:$0xff] %v396_v24  ;;  %399 = vst [vmem:[%s4368_s5 + $0x248] sm:$0xff] %v398_v25  ;;  %v402_v27 = vld [vmem:[%s4372_s6 + $0xbd0] sm:$0xff]  ;;  %v404_v28 = vld [vmem:[%s4372_s6 + $0xbd8] sm:$0xff] }
  0x31   : >> { %401 = vst [vmem:[%s4368_s5 + $0x250] sm:$0xff] %v400_v26  ;;  %v406_v29 = vld [vmem:[%s4372_s6 + $0xbe0] sm:$0xff]  ;;  %403 = vst [vmem:[%s4368_s5 + $0x258] sm:$0xff] %v402_v27  ;;  %v408_v30 = vld [vmem:[%s4372_s6 + $0xbe8] sm:$0xff] }
  0x32   : >> { %405 = vst [vmem:[%s4368_s5 + $0x260] sm:$0xff] %v404_v28  ;;  %407 = vst [vmem:[%s4368_s5 + $0x268] sm:$0xff] %v406_v29  ;;  %v410_v31 = vld [vmem:[%s4372_s6 + $0xbf0] sm:$0xff]  ;;  %v412_v32 = vld [vmem:[%s4372_s6 + $0xfa0] sm:$0xff] }
  0x33   : >> { %409 = vst [vmem:[%s4368_s5 + $0x270] sm:$0xff] %v408_v30  ;;  %411 = vst [vmem:[%s4368_s5 + $0x278] sm:$0xff] %v410_v31  ;;  %v414_v33 = vld [vmem:[%s4372_s6 + $0xfa8] sm:$0xff]  ;;  %v416_v34 = vld [vmem:[%s4372_s6 + $0xfb0] sm:$0xff] }
  0x34   : >> { %413 = vst [vmem:[%s4368_s5 + $0x300] sm:$0xff] %v412_v32  ;;  %v418_v35 = vld [vmem:[%s4372_s6 + $0xfb8] sm:$0xff]  ;;  %415 = vst [vmem:[%s4368_s5 + $0x308] sm:$0xff] %v414_v33  ;;  %v420_v36 = vld [vmem:[%s4372_s6 + $0xfc0] sm:$0xff] }
  0x35   : >> { %417 = vst [vmem:[%s4368_s5 + $0x310] sm:$0xff] %v416_v34  ;;  %419 = vst [vmem:[%s4368_s5 + $0x318] sm:$0xff] %v418_v35  ;;  %v422_v37 = vld [vmem:[%s4372_s6 + $0xfc8] sm:$0xff]  ;;  %v424_v38 = vld [vmem:[%s4372_s6 + $0xfd0] sm:$0xff] }
  0x36   : >> { %421 = vst [vmem:[%s4368_s5 + $0x320] sm:$0xff] %v420_v36  ;;  %423 = vst [vmem:[%s4368_s5 + $0x328] sm:$0xff] %v422_v37  ;;  %v426_v39 = vld [vmem:[%s4372_s6 + $0xfd8] sm:$0xff]  ;;  %v428_v40 = vld [vmem:[%s4372_s6 + $0x1388] sm:$0xff] }
  0x37   : >> { %425 = vst [vmem:[%s4368_s5 + $0x330] sm:$0xff] %v424_v38  ;;  %v430_v41 = vld [vmem:[%s4372_s6 + $0x1390] sm:$0xff]  ;;  %427 = vst [vmem:[%s4368_s5 + $0x338] sm:$0xff] %v426_v39  ;;  %v432_v42 = vld [vmem:[%s4372_s6 + $0x1398] sm:$0xff] }
  0x38   : >> { %429 = vst [vmem:[%s4368_s5 + $0x3c0] sm:$0xff] %v428_v40  ;;  %431 = vst [vmem:[%s4368_s5 + $0x3c8] sm:$0xff] %v430_v41  ;;  %v434_v43 = vld [vmem:[%s4372_s6 + $0x13a0] sm:$0xff]  ;;  %v436_v44 = vld [vmem:[%s4372_s6 + $0x13a8] sm:$0xff] }
  0x39   : >> { %433 = vst [vmem:[%s4368_s5 + $0x3d0] sm:$0xff] %v432_v42  ;;  %435 = vst [vmem:[%s4368_s5 + $0x3d8] sm:$0xff] %v434_v43  ;;  %v438_v45 = vld [vmem:[%s4372_s6 + $0x13b0] sm:$0xff]  ;;  %v440_v46 = vld [vmem:[%s4372_s6 + $0x13b8] sm:$0xff] }
  0x3a   : >> { %437 = vst [vmem:[%s4368_s5 + $0x3e0] sm:$0xff] %v436_v44  ;;  %v442_v47 = vld [vmem:[%s4372_s6 + $0x13c0] sm:$0xff]  ;;  %439 = vst [vmem:[%s4368_s5 + $0x3e8] sm:$0xff] %v438_v45  ;;  %v444_v48 = vld [vmem:[%s4372_s6 + $0x1770] sm:$0xff] }
  0x3b   : >> { %441 = vst [vmem:[%s4368_s5 + $0x3f0] sm:$0xff] %v440_v46  ;;  %443 = vst [vmem:[%s4368_s5 + $0x3f8] sm:$0xff] %v442_v47  ;;  %v446_v49 = vld [vmem:[%s4372_s6 + $0x1778] sm:$0xff]  ;;  %v448_v50 = vld [vmem:[%s4372_s6 + $0x1780] sm:$0xff] }
  0x3c   : >> { %445 = vst [vmem:[%s4368_s5 + $0x480] sm:$0xff] %v444_v48  ;;  %447 = vst [vmem:[%s4368_s5 + $0x488] sm:$0xff] %v446_v49  ;;  %v450_v51 = vld [vmem:[%s4372_s6 + $0x1788] sm:$0xff]  ;;  %v452_v52 = vld [vmem:[%s4372_s6 + $0x1790] sm:$0xff] }
  0x3d   : >> { %449 = vst [vmem:[%s4368_s5 + $0x490] sm:$0xff] %v448_v50  ;;  %v454_v53 = vld [vmem:[%s4372_s6 + $0x1798] sm:$0xff]  ;;  %451 = vst [vmem:[%s4368_s5 + $0x498] sm:$0xff] %v450_v51  ;;  %v456_v54 = vld [vmem:[%s4372_s6 + $0x17a0] sm:$0xff] }
  0x3e   : >> { %453 = vst [vmem:[%s4368_s5 + $0x4a0] sm:$0xff] %v452_v52  ;;  %455 = vst [vmem:[%s4368_s5 + $0x4a8] sm:$0xff] %v454_v53  ;;  %v458_v55 = vld [vmem:[%s4372_s6 + $0x17a8] sm:$0xff]  ;;  %v460_v56 = vld [vmem:[%s4372_s6 + $0x1b58] sm:$0xff] }
  0x3f   : >> { %457 = vst [vmem:[%s4368_s5 + $0x4b0] sm:$0xff] %v456_v54  ;;  %459 = vst [vmem:[%s4368_s5 + $0x4b8] sm:$0xff] %v458_v55  ;;  %v462_v57 = vld [vmem:[%s4372_s6 + $0x1b60] sm:$0xff]  ;;  %v464_v58 = vld [vmem:[%s4372_s6 + $0x1b68] sm:$0xff]  ;;  %344 = sbr.rel (!%p341_p11) target bundleno = 35 (0x23), region = 194 }
  0x40   : >> { %461 = vst [vmem:[%s4368_s5 + $0x540] sm:$0xff] %v460_v56  ;;  %v466_v59 = vld [vmem:[%s4372_s6 + $0x1b70] sm:$0xff]  ;;  %463 = vst [vmem:[%s4368_s5 + $0x548] sm:$0xff] %v462_v57  ;;  %v468_v60 = vld [vmem:[%s4372_s6 + $0x1b78] sm:$0xff] }
  0x41   : >> { %465 = vst [vmem:[%s4368_s5 + $0x550] sm:$0xff] %v464_v58  ;;  %467 = vst [vmem:[%s4368_s5 + $0x558] sm:$0xff] %v466_v59  ;;  %v470_v61 = vld [vmem:[%s4372_s6 + $0x1b80] sm:$0xff]  ;;  %v472_v62 = vld [vmem:[%s4372_s6 + $0x1b88] sm:$0xff] }
  0x42   : >> { %469 = vst [vmem:[%s4368_s5 + $0x560] sm:$0xff] %v468_v60  ;;  %471 = vst [vmem:[%s4368_s5 + $0x568] sm:$0xff] %v470_v61  ;;  %v474_v63 = vld [vmem:[%s4372_s6 + $0x1b90] sm:$0xff]  ;;  %s7864_s6 = smov %s4567_s11 }
  0x43   : >> { %473 = vst [vmem:[%s4368_s5 + $0x570] sm:$0xff] %v472_v62  ;;  %475 = vst [vmem:[%s4368_s5 + $0x578] sm:$0xff] %v474_v63  ;;  %s7863_s5 = smov %s4570_s17 }
  0x44 PF: > { %s4675_s18 = sand.u32 7, %s8179_s24   ;;  %s3755_s21 = sshll.u32 %s4500_s4, 6 }
  0x45   : > { %s4679_s22 = scalar_lea.vmem %s4492_s28, %s3755_s21   ;;  %s4682_s23 = scalar_lea.vmem %s4497_s30, %s3755_s21 [#allocation2]  }
  0x46   : > { %p3545_p12 = scmp.le.s32.totalorder %s4675_s18, 0 }
  0x47   : > { %s7866_s25 = smov (!%p3545_p12), %s4682_s23  ;;  %s7867_s26 = smov (!%p3545_p12), %s4679_s22 }
  0x48   : > { %3474 = sbr.rel (%p3545_p12) target bundleno = 85 (0x55), region = 199  ;;  %s4691_s27 = smov (!%p3545_p12), 0  }
  0x49   : > { %s4693_s29 = smov (!%p3545_p12), 0  }
  0x4d LB: >> { %v499_v0 = vld [vmem:[%s4388_s26] sm:$0xff]  ;;  %v501_v1 = vld [vmem:[%s4388_s26 + $0x3e8] sm:$0xff]  ;;  %v503_v2 = vld [vmem:[%s4388_s26 + $0x7d0] sm:$0xff]  ;;  %s515_s24 = sadd.s32 1, %s4392_s27  ;;  %s493_s29 = sadd.s32 1, %s4396_s29   ;;  %s4396_s29 = sphi %s4693_s29, %s493_s29   ;;  %s4392_s27 = sphi %s4691_s27, %s7868_s27   ;;  %s4388_s26 = sphi %s7867_s26, %s520_s26   ;;  %s4384_s25 = sphi %s7866_s25, %s521_s25  }
  0x4e   : >> { %500 = vst [vmem:[%s4384_s25] sm:$0xff] %v499_v0  ;;  %502 = vst [vmem:[%s4384_s25 + $0xc0] sm:$0xff] %v501_v1  ;;  %v505_v3 = vld [vmem:[%s4388_s26 + $0xbb8] sm:$0xff]  ;;  %v507_v4 = vld [vmem:[%s4388_s26 + $0xfa0] sm:$0xff]  ;;  %p516_p13 = scmp.ge.s32.totalorder %s515_s24, %s4675_s18  ;;  %p492_p0 = scmp.ge.s32.totalorder %s493_s29, %s4675_s18 }
  0x4f   : >> { %504 = vst [vmem:[%s4384_s25 + $0x180] sm:$0xff] %v503_v2  ;;  %v509_v5 = vld [vmem:[%s4388_s26 + $0x1388] sm:$0xff]  ;;  %506 = vst [vmem:[%s4384_s25 + $0x240] sm:$0xff] %v505_v3  ;;  %v511_v6 = vld [vmem:[%s4388_s26 + $0x1770] sm:$0xff] }
  0x50   : >> { %508 = vst [vmem:[%s4384_s25 + $0x300] sm:$0xff] %v507_v4  ;;  %510 = vst [vmem:[%s4384_s25 + $0x3c0] sm:$0xff] %v509_v5  ;;  %v513_v7 = vld [vmem:[%s4388_s26 + $0x1b58] sm:$0xff]  ;;  %s8183_s24 = smov (%p516_p13, %s515_s24), 0  ;;  %495 = sbr.rel (!%p492_p0) target bundleno = 77 (0x4d), region = 205 }
  0x51   : >> { %512 = vst [vmem:[%s4384_s25 + $0x480] sm:$0xff] %v511_v6  ;;  %514 = vst [vmem:[%s4384_s25 + $0x540] sm:$0xff] %v513_v7  ;;  %s3546_s28 = sshll.u32 %s8183_s24, 3  ;;  %s7868_s27 = smov %s8183_s24 }
  0x52   : >> { %s520_s26 = scalar_lea.vmem %s4679_s22, %s3546_s28   ;;  %s521_s25 = scalar_lea.vmem %s4682_s23, %s3546_s28 [#allocation2]  }
  0x55 PF: > { %p3548_p1 = scmp.ge.s32.totalorder %s4364_s14, 1  ;;  %p526_p2 = scmp.lt.s32.totalorder %s4364_s14, 7 }
  0x57   : > { %p527_p3 = pnand %p3548_p1, %p526_p2 }
  0x59   : > { %530 = sbr.rel (%p527_p3) target bundleno = 975 (0x3cf), region = 80 }
  0x5e   : > { %s533_s30 = sand.u32 1, %s4356_s12   ;;  %v4719_v8 = vld [vmem:[%s7716_s1] ss:$0 sm:$0xff]  ;;  %vm620_vm0 = vcmask 130048   ;;  %s3175_s23 = smul.u32 (%p4481_p5), 24, %s4466_s15 }
  0x5f   : > { %s3829_s4 = smul.u32 1536, %s533_s30 }
  0x60   : > { %s7324_s22 = smul.u32 192, %s533_s30  ;;  %s3176_s26 = ssub.s32 (%p4481_p5), 125, %s3175_s23 }
  0x61   : > { %s4721_s7 = scalar_lea.vmem [#allocation2], %s3829_s4  ;;  %s3757_s25 = smul.u32 (%p4481_p5), 192, %s4466_s15 }
  0x62   : > { %v568_v9 = vld [vmem:[%s4721_s7 + $0x10] sm:$0xff]  ;;  %v566_v10 = vld [vmem:[%s4721_s7] sm:$0xff]  ;;  %v569_v11 = vld [vmem:[%s4721_s7 + $0x18] sm:$0xff]  ;;  %s7370_s12 = scalar_lea.vmem [#allocation3], %s7324_s22   ;;  %p3177_p4 = scmp.lt.s32.totalorder (%p4481_p5), %s3176_s26, 24 }
  0x63   : > { %v598_v12 = vmul.f32 %v4719_v8, %v568_v9  ;;  %v596_v13 = vmul.f32 %v4719_v8, %v566_v10  ;;  %v599_v14 = vmul.f32 %v4719_v8, %v569_v11  ;;  %v567_v15 = vld [vmem:[%s4721_s7 + $0x8] sm:$0xff]  ;;  %v570_v18 = vld [vmem:[%s4721_s7 + $0x20] sm:$0xff]  ;;  %v573_v25 = vld [vmem:[%s4721_s7 + $0x38] sm:$0xff]  ;;  %s7607_s24 = scalar_lea.vmem (%p4481_p5), %s7718_s3, %s3757_s25  }
  0x64   : > { %v597_v16 = vmul.f32 %v4719_v8, %v567_v15  ;;  %v571_v17 = vld [vmem:[%s4721_s7 + $0x28] sm:$0xff]  ;;  %v600_v24 = vmul.f32 %v4719_v8, %v570_v18  ;;  %v572_v26 = vld [vmem:[%s4721_s7 + $0x30] sm:$0xff]  ;;  %v603_v29 = vmul.f32 %v4719_v8, %v573_v25  ;;  %v574_v32 = vld [vmem:[%s4721_s7 + $0x40] sm:$0xff] }
  0x65   : > { %v627_v19 = vsel %vm620_vm0, %v598_v12, 0.0  ;;  %v621_v20 = vsel %vm620_vm0, %v596_v13, 0.0  ;;  %v630_v21 = vsel %vm620_vm0, %v599_v14, 0.0  ;;  %v601_v23 = vmul.f32 %v4719_v8, %v571_v17  ;;  %v575_v31 = vld [vmem:[%s4721_s7 + $0x48] sm:$0xff]  ;;  %v577_v37 = vld [vmem:[%s4721_s7 + $0x58] sm:$0xff]  ;;  %v576_v38 = vld [vmem:[%s4721_s7 + $0x50] sm:$0xff] }
  0x66   : > { %628 = vadd.xlane.f32.xlu1 %v627_v19  ;;  %622 = vadd.xlane.f32.xlu0 %v621_v20  ;;  %v624_v22 = vsel %vm620_vm0, %v597_v16, 0.0  ;;  %v633_v28 = vsel %vm620_vm0, %v600_v24, 0.0  ;;  %v602_v30 = vmul.f32 %v4719_v8, %v572_v26  ;;  %v642_v33 = vsel %vm620_vm0, %v603_v29, 0.0  ;;  %v579_v43 = vld [vmem:[%s4721_s7 + $0x68] sm:$0xff]  ;;  %v578_v44 = vld [vmem:[%s4721_s7 + $0x60] sm:$0xff]  ;;  %v3552_v10 = vld [vmem:[%s4721_s7 + $0xd0] sm:$0xff] }
  0x67   : > { %v636_v27 = vsel %vm620_vm0, %v601_v23, 0.0  ;;  %v605_v35 = vmul.f32 %v4719_v8, %v575_v31  ;;  %v604_v36 = vmul.f32 %v4719_v8, %v574_v32  ;;  %v607_v41 = vmul.f32 %v4719_v8, %v577_v37  ;;  %v3562_v49 = vld [vmem:[%s4721_s7 + $0x120] sm:$0xff]  ;;  %v3563_v55 = vld [vmem:[%s4721_s7 + $0x128] sm:$0xff]  ;;  %v580_v11 = vld [vmem:[%s4721_s7 + $0x70] sm:$0xff] }
  0x68   : > { %v639_v34 = vsel %vm620_vm0, %v602_v30, 0.0  ;;  %v606_v42 = vmul.f32 %v4719_v8, %v576_v38  ;;  %v609_v47 = vmul.f32 %v4719_v8, %v579_v43  ;;  %v608_v48 = vmul.f32 %v4719_v8, %v578_v44  ;;  %v3550_v50 = vld [vmem:[%s4721_s7 + $0xc0] sm:$0xff]  ;;  %v3551_v56 = vld [vmem:[%s4721_s7 + $0xc8] sm:$0xff]  ;;  %v3564_v17 = vld [vmem:[%s4721_s7 + $0x130] sm:$0xff] }
  0x69   : > { %v648_v39 = vsel %vm620_vm0, %v605_v35, 0.0  ;;  %v645_v40 = vsel %vm620_vm0, %v604_v36, 0.0  ;;  %v654_v45 = vsel %vm620_vm0, %v607_v41, 0.0  ;;  %v754_v53 = vmul.f32 %v3562_v49, %v4719_v8  ;;  %v3586_v61 = vld [vmem:[%s4721_s7 + $0x1e0] sm:$0xff]  ;;  %v3587_v3 = vld [vmem:[%s4721_s7 + $0x1e8] sm:$0xff]  ;;  %v3553_v29 = vld [vmem:[%s4721_s7 + $0xd8] sm:$0xff] }
  0x6a   : > { %631 = vadd.xlane.f32.xlu1 %v630_v21  ;;  %625 = vadd.xlane.f32.xlu0 %v624_v22  ;;  %v651_v46 = vsel %vm620_vm0, %v606_v42, 0.0  ;;  %v660_v51 = vsel %vm620_vm0, %v609_v47, 0.0  ;;  %v657_v52 = vsel %vm620_vm0, %v608_v48, 0.0  ;;  %v742_v54 = vmul.f32 %v3550_v50, %v4719_v8  ;;  %v3574_v62 = vld [vmem:[%s4721_s7 + $0x180] sm:$0xff]  ;;  %v3575_v4 = vld [vmem:[%s4721_s7 + $0x188] sm:$0xff]  ;;  %v581_v22 = vld [vmem:[%s4721_s7 + $0x78] sm:$0xff] }
  0x6b   : > { %v802_v57 = vsel %vm620_vm0, %v754_v53, 0.0  ;;  %v755_v59 = vmul.f32 %v3563_v55, %v4719_v8  ;;  %v743_v60 = vmul.f32 %v3551_v56, %v4719_v8  ;;  %v899_v1 = vmul.f32 %v3586_v61, %v4719_v8  ;;  %v3598_v16 = vld [vmem:[%s4721_s7 + $0x240] sm:$0xff]  ;;  %v3599_v35 = vld [vmem:[%s4721_s7 + $0x248] sm:$0xff]  ;;  %v3576_v41 = vld [vmem:[%s4721_s7 + $0x190] sm:$0xff] }
  0x6c   : > { %v766_v58 = vsel %vm620_vm0, %v742_v54, 0.0  ;;  %v887_v2 = vmul.f32 %v3574_v62, %v4719_v8  ;;  %v900_v7 = vmul.f32 %v3587_v3, %v4719_v8  ;;  %v888_v9 = vmul.f32 %v3575_v4, %v4719_v8  ;;  %v3610_v23 = vld [vmem:[%s4721_s7 + $0x2a0] sm:$0xff]  ;;  %v3577_v53 = vld [vmem:[%s4721_s7 + $0x198] sm:$0xff] }
  0x6d   : > { %v805_v63 = vsel %vm620_vm0, %v755_v59, 0.0  ;;  %v769_v0 = vsel %vm620_vm0, %v743_v60, 0.0  ;;  %v947_v5 = vsel %vm620_vm0, %v899_v1, 0.0  ;;  %v744_v14 = vmul.f32 %v3552_v10, %v4719_v8  ;;  %v3622_v47 = vld [vmem:[%s4721_s7 + $0x300] sm:$0xff]  ;;  %v3623_v59 = vld [vmem:[%s4721_s7 + $0x308] sm:$0xff] }
  0x6e   : > { %637 = vadd.xlane.f32.xlu1 %v636_v27  ;;  %634 = vadd.xlane.f32.xlu0 %v633_v28  ;;  %v911_v6 = vsel %vm620_vm0, %v887_v2, 0.0  ;;  %v950_v12 = vsel %vm620_vm0, %v900_v7, 0.0  ;;  %v914_v13 = vsel %vm620_vm0, %v888_v9, 0.0  ;;  %v610_v15 = vmul.f32 %v4719_v8, %v580_v11  ;;  %v3565_v28 = vld [vmem:[%s4721_s7 + $0x138] sm:$0xff]  ;;  %v582_v1 = vld [vmem:[%s4721_s7 + $0x80] sm:$0xff] }
  0x6f   : > { %v772_v18 = vsel %vm620_vm0, %v744_v14, 0.0  ;;  %v1032_v20 = vmul.f32 %v3598_v16, %v4719_v8  ;;  %v756_v21 = vmul.f32 %v3564_v17, %v4719_v8  ;;  %v611_v26 = vmul.f32 %v4719_v8, %v581_v22  ;;  %v3566_v7 = vld [vmem:[%s4721_s7 + $0x140] sm:$0xff]  ;;  %v3612_v14 = vld [vmem:[%s4721_s7 + $0x2b0] sm:$0xff] }
  0x70   : > { %v663_v19 = vsel %vm620_vm0, %v610_v15, 0.0  ;;  %v1044_v27 = vmul.f32 %v3610_v23, %v4719_v8  ;;  %v757_v32 = vmul.f32 %v3565_v28, %v4719_v8 }
  0x71   : > { %v1056_v24 = vsel %vm620_vm0, %v1032_v20, 0.0  ;;  %v808_v25 = vsel %vm620_vm0, %v756_v21, 0.0  ;;  %v666_v30 = vsel %vm620_vm0, %v611_v26, 0.0  ;;  %v3658_v20 = vld [vmem:[%s4721_s7 + $0x420] sm:$0xff]  ;;  %v3555_v26 = vld [vmem:[%s4721_s7 + $0xe8] sm:$0xff] }
  0x72   : > { %643 = vadd.xlane.f32.xlu1 %v642_v33  ;;  %640 = vadd.xlane.f32.xlu0 %v639_v34  ;;  %v1092_v31 = vsel %vm620_vm0, %v1044_v27, 0.0  ;;  %v745_v33 = vmul.f32 %v3553_v29, %v4719_v8  ;;  %v3611_v34 = vld [vmem:[%s4721_s7 + $0x2a8] sm:$0xff]  ;;  %v811_v36 = vsel %vm620_vm0, %v757_v32, 0.0  ;;  %v3601_v32 = vld [vmem:[%s4721_s7 + $0x258] sm:$0xff] }
  0x73   : > { %v1045_v38 = vmul.f32 %v3611_v34, %v4719_v8 }
  0x74   : > { %v775_v37 = vsel %vm620_vm0, %v745_v33, 0.0 }
  0x75   : > { %v1095_v42 = vsel %vm620_vm0, %v1045_v38, 0.0  ;;  %v3647_v38 = vld [vmem:[%s4721_s7 + $0x3c8] sm:$0xff] }
  0x76   : > { %649 = vadd.xlane.f32.xlu1 %v648_v39  ;;  %646 = vadd.xlane.f32.xlu0 %v645_v40  ;;  %v1033_v39 = vmul.f32 %v3599_v35, %v4719_v8  ;;  %v3588_v40 = vld [vmem:[%s4721_s7 + $0x1f0] sm:$0xff] }
  0x77   : > { %v901_v44 = vmul.f32 %v3588_v40, %v4719_v8 }
  0x78   : > { %v1059_v43 = vsel %vm620_vm0, %v1033_v39, 0.0 }
  0x79   : > { %v953_v48 = vsel %vm620_vm0, %v901_v44, 0.0  ;;  %v3578_v44 = vld [vmem:[%s4721_s7 + $0x1a0] sm:$0xff] }
  0x7a   : > { %655 = vadd.xlane.f32.xlu1 %v654_v45  ;;  %652 = vadd.xlane.f32.xlu0 %v651_v46  ;;  %v889_v45 = vmul.f32 %v3576_v41, %v4719_v8  ;;  %v3634_v46 = vld [vmem:[%s4721_s7 + $0x360] sm:$0xff] }
  0x7b   : > { %v1189_v50 = vmul.f32 %v3634_v46, %v4719_v8 }
  0x7c   : > { %v917_v49 = vsel %vm620_vm0, %v889_v45, 0.0 }
  0x7d   : > { %v1237_v54 = vsel %vm620_vm0, %v1189_v50, 0.0  ;;  %v3624_v50 = vld [vmem:[%s4721_s7 + $0x310] sm:$0xff] }
  0x7e   : > { %661 = vadd.xlane.f32.xlu1 %v660_v51  ;;  %658 = vadd.xlane.f32.xlu0 %v657_v52  ;;  %v1177_v51 = vmul.f32 %v3622_v47, %v4719_v8  ;;  %v3589_v52 = vld [vmem:[%s4721_s7 + $0x1f8] sm:$0xff] }
  0x7f   : > { %v902_v56 = vmul.f32 %v3589_v52, %v4719_v8 }
  0x80   : > { %v1201_v55 = vsel %vm620_vm0, %v1177_v51, 0.0 }
  0x81   : > { %v956_v60 = vsel %vm620_vm0, %v902_v56, 0.0  ;;  %v3670_v56 = vld [vmem:[%s4721_s7 + $0x480] sm:$0xff] }
  0x82   : > { %803 = vadd.xlane.f32.xlu1 %v802_v57  ;;  %767 = vadd.xlane.f32.xlu0 %v766_v58  ;;  %v890_v57 = vmul.f32 %v3577_v53, %v4719_v8  ;;  %v3635_v58 = vld [vmem:[%s4721_s7 + $0x368] sm:$0xff] }
  0x83   : > { %v1190_v62 = vmul.f32 %v3635_v58, %v4719_v8 }
  0x84   : > { %v920_v61 = vsel %vm620_vm0, %v890_v57, 0.0 }
  0x85   : > { %v1240_v2 = vsel %vm620_vm0, %v1190_v62, 0.0  ;;  %v3579_v62 = vld [vmem:[%s4721_s7 + $0x1a8] sm:$0xff] }
  0x86   : > { %806 = vadd.xlane.f32.xlu1 %v805_v63  ;;  %770 = vadd.xlane.f32.xlu0 %v769_v0  ;;  %v1178_v63 = vmul.f32 %v3623_v59, %v4719_v8  ;;  %v3554_v0 = vld [vmem:[%s4721_s7 + $0xe0] sm:$0xff] }
  0x87   : > { %v746_v4 = vmul.f32 %v3554_v0, %v4719_v8 }
  0x88   : > { %v1204_v3 = vsel %vm620_vm0, %v1178_v63, 0.0 }
  0x89   : > { %v778_v9 = vsel %vm620_vm0, %v746_v4, 0.0  ;;  %v3625_v4 = vld [vmem:[%s4721_s7 + $0x318] sm:$0xff] }
  0x8a   : > { %948 = vadd.xlane.f32.xlu1 %v947_v5  ;;  %912 = vadd.xlane.f32.xlu0 %v911_v6  ;;  %v612_v5 = vmul.f32 %v4719_v8, %v582_v1  ;;  %v3600_v6 = vld [vmem:[%s4721_s7 + $0x250] sm:$0xff] }
  0x8b   : > { %v1034_v11 = vmul.f32 %v3600_v6, %v4719_v8 }
  0x8c   : > { %v669_v10 = vsel %vm620_vm0, %v612_v5, 0.0 }
  0x8d   : > { %v1062_v15 = vsel %vm620_vm0, %v1034_v11, 0.0  ;;  %v3671_v11 = vld [vmem:[%s4721_s7 + $0x488] sm:$0xff] }
  0x8e   : > { %951 = vadd.xlane.f32.xlu1 %v950_v12  ;;  %915 = vadd.xlane.f32.xlu0 %v914_v13  ;;  %v758_v12 = vmul.f32 %v3566_v7, %v4719_v8  ;;  %v3646_v13 = vld [vmem:[%s4721_s7 + $0x3c0] sm:$0xff] }
  0x8f   : > { %v1322_v17 = vmul.f32 %v3646_v13, %v4719_v8 }
  0x90   : > { %v814_v16 = vsel %vm620_vm0, %v758_v12, 0.0 }
  0x91   : > { %v1346_v21 = vsel %vm620_vm0, %v1322_v17, 0.0  ;;  %v584_v17 = vld [vmem:[%s4721_s7 + $0x90] sm:$0xff] }
  0x92   : > { %773 = vadd.xlane.f32.xlu1 %v772_v18  ;;  %664 = vadd.xlane.f32.xlu0 %v663_v19  ;;  %v1046_v18 = vmul.f32 %v3612_v14, %v4719_v8  ;;  %v583_v19 = vld [vmem:[%s4721_s7 + $0x88] sm:$0xff] }
  0x93   : > { %v613_v23 = vmul.f32 %v4719_v8, %v583_v19 }
  0x94   : > { %v1098_v22 = vsel %vm620_vm0, %v1046_v18, 0.0 }
  0x95   : > { %v672_v27 = vsel %vm620_vm0, %v613_v23, 0.0  ;;  %v3568_v23 = vld [vmem:[%s4721_s7 + $0x150] sm:$0xff] }
  0x96   : > { %1057 = vadd.xlane.f32.xlu1 %v1056_v24  ;;  %809 = vadd.xlane.f32.xlu0 %v808_v25  ;;  %v1334_v24 = vmul.f32 %v3658_v20, %v4719_v8  ;;  %v3567_v25 = vld [vmem:[%s4721_s7 + $0x148] sm:$0xff] }
  0x97   : > { %v759_v29 = vmul.f32 %v3567_v25, %v4719_v8 }
  0x98   : > { %v1382_v28 = vsel %vm620_vm0, %v1334_v24, 0.0 }
  0x99   : > { %v817_v33 = vsel %vm620_vm0, %v759_v29, 0.0  ;;  %v3614_v29 = vld [vmem:[%s4721_s7 + $0x2c0] sm:$0xff] }
  0x9a   : > { %667 = vadd.xlane.f32.xlu1 %v666_v30  ;;  %1093 = vadd.xlane.f32.xlu0 %v1092_v31  ;;  %v747_v30 = vmul.f32 %v3555_v26, %v4719_v8  ;;  %v3613_v31 = vld [vmem:[%s4721_s7 + $0x2b8] sm:$0xff] }
  0x9b   : > { %v1047_v35 = vmul.f32 %v3613_v31, %v4719_v8 }
  0x9c   : > { %v781_v34 = vsel %vm620_vm0, %v747_v30, 0.0 }
  0x9d   : > { %v1101_v39 = vsel %vm620_vm0, %v1047_v35, 0.0  ;;  %v3660_v35 = vld [vmem:[%s4721_s7 + $0x430] sm:$0xff] }
  0x9e   : > { %812 = vadd.xlane.f32.xlu1 %v811_v36  ;;  %776 = vadd.xlane.f32.xlu0 %v775_v37  ;;  %v1035_v36 = vmul.f32 %v3601_v32, %v4719_v8  ;;  %v3659_v37 = vld [vmem:[%s4721_s7 + $0x428] sm:$0xff] }
  0x9f   : > { %v1335_v41 = vmul.f32 %v3659_v37, %v4719_v8 }
  0xa0   : > { %v1065_v40 = vsel %vm620_vm0, %v1035_v36, 0.0 }
  0xa1   : > { %v1385_v45 = vsel %vm620_vm0, %v1335_v41, 0.0  ;;  %v1336_v41 = vmul.f32 %v3660_v35, %v4719_v8 }
  0xa2   : > { %1096 = vadd.xlane.f32.xlu1 %v1095_v42  ;;  %1060 = vadd.xlane.f32.xlu0 %v1059_v43  ;;  %v1323_v42 = vmul.f32 %v3647_v38, %v4719_v8  ;;  %v3590_v43 = vld [vmem:[%s4721_s7 + $0x200] sm:$0xff] }
  0xa3   : > { %v903_v47 = vmul.f32 %v3590_v43, %v4719_v8  ;;  %v3706_v43 = vld [vmem:[%s4721_s7 + $0x5a0] sm:$0xff] }
  0xa4   : > { %v1349_v46 = vsel %vm620_vm0, %v1323_v42, 0.0  ;;  %v585_v42 = vld [vmem:[%s4721_s7 + $0x98] sm:$0xff] }
  0xa5   : > { %v959_v51 = vsel %vm620_vm0, %v903_v47, 0.0  ;;  %v1388_v47 = vsel %vm620_vm0, %v1336_v41, 0.0  ;;  %v3672_v41 = vld [vmem:[%s4721_s7 + $0x490] sm:$0xff] }
  0xa6   : > { %954 = vadd.xlane.f32.xlu1 %v953_v48  ;;  %918 = vadd.xlane.f32.xlu0 %v917_v49  ;;  %v891_v48 = vmul.f32 %v3578_v44, %v4719_v8  ;;  %v3636_v49 = vld [vmem:[%s4721_s7 + $0x370] sm:$0xff] }
  0xa7   : > { %v1191_v53 = vmul.f32 %v3636_v49, %v4719_v8  ;;  %v1624_v49 = vmul.f32 %v3706_v43, %v4719_v8 }
  0xa8   : > { %v923_v52 = vsel %vm620_vm0, %v891_v48, 0.0  ;;  %v615_v48 = vmul.f32 %v4719_v8, %v585_v42 }
  0xa9   : > { %v1243_v57 = vsel %vm620_vm0, %v1191_v53, 0.0 }
  0xaa   : > { %1238 = vadd.xlane.f32.xlu1 %v1237_v54  ;;  %1202 = vadd.xlane.f32.xlu0 %v1201_v55  ;;  %v1179_v54 = vmul.f32 %v3624_v50, %v4719_v8  ;;  %v3682_v55 = vld [vmem:[%s4721_s7 + $0x4e0] sm:$0xff]  ;;  %v3569_v50 = vld [vmem:[%s4721_s7 + $0x158] sm:$0xff] }
  0xab   : > { %v1479_v59 = vmul.f32 %v3682_v55, %v4719_v8  ;;  %v1672_v55 = vsel %vm620_vm0, %v1624_v49, 0.0 }
  0xac   : > { %v1207_v58 = vsel %vm620_vm0, %v1179_v54, 0.0  ;;  %v678_v54 = vsel %vm620_vm0, %v615_v48, 0.0 }
  0xad   : > { %v1527_v63 = vsel %vm620_vm0, %v1479_v59, 0.0  ;;  %v3603_v59 = vld [vmem:[%s4721_s7 + $0x268] sm:$0xff] }
  0xae   : > { %957 = vadd.xlane.f32.xlu1 %v956_v60  ;;  %921 = vadd.xlane.f32.xlu0 %v920_v61  ;;  %v1467_v60 = vmul.f32 %v3670_v56, %v4719_v8  ;;  %v3591_v61 = vld [vmem:[%s4721_s7 + $0x208] sm:$0xff]  ;;  %v761_v56 = vmul.f32 %v3569_v50, %v4719_v8 }
  0xaf   : > { %v904_v1 = vmul.f32 %v3591_v61, %v4719_v8 }
  0xb0   : > { %v1491_v0 = vsel %vm620_vm0, %v1467_v60, 0.0 }
  0xb1   : > { %v962_v5 = vsel %vm620_vm0, %v904_v1, 0.0  ;;  %v1037_v1 = vmul.f32 %v3603_v59, %v4719_v8 }
  0xb2   : > { %1241 = vadd.xlane.f32.xlu1 %v1240_v2  ;;  %1205 = vadd.xlane.f32.xlu0 %v1204_v3  ;;  %v892_v2 = vmul.f32 %v3579_v62, %v4719_v8  ;;  %v3637_v3 = vld [vmem:[%s4721_s7 + $0x378] sm:$0xff]  ;;  %v823_v62 = vsel %vm620_vm0, %v761_v56, 0.0  ;;  %v1469_v56 = vmul.f32 %v3672_v41, %v4719_v8 }
  0xb3   : > { %v1192_v7 = vmul.f32 %v3637_v3, %v4719_v8  ;;  %v3649_v3 = vld [vmem:[%s4721_s7 + $0x3d8] sm:$0xff] }
  0xb4   : > { %v926_v6 = vsel %vm620_vm0, %v892_v2, 0.0  ;;  %v3661_v2 = vld [vmem:[%s4721_s7 + $0x438] sm:$0xff] }
  0xb5   : > { %v1246_v12 = vsel %vm620_vm0, %v1192_v7, 0.0  ;;  %v1071_v7 = vsel %vm620_vm0, %v1037_v1, 0.0 }
  0xb6   : > { %779 = vadd.xlane.f32.xlu1 %v778_v9  ;;  %670 = vadd.xlane.f32.xlu0 %v669_v10  ;;  %v1180_v9 = vmul.f32 %v3625_v4, %v4719_v8  ;;  %v3683_v10 = vld [vmem:[%s4721_s7 + $0x4e8] sm:$0xff] }
  0xb7   : > { %v1480_v14 = vmul.f32 %v3683_v10, %v4719_v8  ;;  %v1325_v10 = vmul.f32 %v3649_v3, %v4719_v8 }
  0xb8   : > { %v1210_v13 = vsel %vm620_vm0, %v1180_v9, 0.0  ;;  %v1337_v9 = vmul.f32 %v3661_v2, %v4719_v8 }
  0xb9   : > { %v1530_v18 = vsel %vm620_vm0, %v1480_v14, 0.0 }
  0xba   : > { %1063 = vadd.xlane.f32.xlu1 %v1062_v15  ;;  %815 = vadd.xlane.f32.xlu0 %v814_v16  ;;  %v1468_v15 = vmul.f32 %v3671_v11, %v4719_v8  ;;  %v3556_v16 = vld [vmem:[%s4721_s7 + $0xf0] sm:$0xff]  ;;  %v3707_v11 = vld [vmem:[%s4721_s7 + $0x5a8] sm:$0xff] }
  0xbb   : > { %v748_v20 = vmul.f32 %v3556_v16, %v4719_v8  ;;  %v1355_v16 = vsel %vm620_vm0, %v1325_v10, 0.0 }
  0xbc   : > { %v1494_v19 = vsel %vm620_vm0, %v1468_v15, 0.0  ;;  %v1391_v15 = vsel %vm620_vm0, %v1337_v9, 0.0 }
  0xbd   : > { %v784_v24 = vsel %vm620_vm0, %v748_v20, 0.0  ;;  %v3580_v20 = vld [vmem:[%s4721_s7 + $0x1b0] sm:$0xff] }
  0xbe   : > { %1347 = vadd.xlane.f32.xlu1 %v1346_v21  ;;  %1099 = vadd.xlane.f32.xlu0 %v1098_v22  ;;  %v614_v21 = vmul.f32 %v4719_v8, %v584_v17  ;;  %v3602_v22 = vld [vmem:[%s4721_s7 + $0x260] sm:$0xff]  ;;  %v1625_v17 = vmul.f32 %v3707_v11, %v4719_v8  ;;  %v1497_v11 = vsel %vm620_vm0, %v1469_v56, 0.0 }
  0xbf   : > { %v1036_v26 = vmul.f32 %v3602_v22, %v4719_v8 }
  0xc0   : > { %v675_v25 = vsel %vm620_vm0, %v614_v21, 0.0 }
  0xc1   : > { %v1068_v30 = vsel %vm620_vm0, %v1036_v26, 0.0  ;;  %v893_v26 = vmul.f32 %v3580_v20, %v4719_v8  ;;  %v3639_v20 = vld [vmem:[%s4721_s7 + $0x388] sm:$0xff] }
  0xc2   : > { %673 = vadd.xlane.f32.xlu1 %v672_v27  ;;  %1383 = vadd.xlane.f32.xlu0 %v1382_v28  ;;  %v760_v27 = vmul.f32 %v3568_v23, %v4719_v8  ;;  %v3648_v28 = vld [vmem:[%s4721_s7 + $0x3d0] sm:$0xff]  ;;  %v1675_v23 = vsel %vm620_vm0, %v1625_v17, 0.0 }
  0xc3   : > { %v1324_v32 = vmul.f32 %v3648_v28, %v4719_v8  ;;  %v3626_v28 = vld [vmem:[%s4721_s7 + $0x320] sm:$0xff] }
  0xc4   : > { %v820_v31 = vsel %vm620_vm0, %v760_v27, 0.0  ;;  %v3638_v27 = vld [vmem:[%s4721_s7 + $0x380] sm:$0xff] }
  0xc5   : > { %v1352_v38 = vsel %vm620_vm0, %v1324_v32, 0.0  ;;  %v1193_v35 = vmul.f32 %v3638_v27, %v4719_v8 }
  0xc6   : > { %818 = vadd.xlane.f32.xlu1 %v817_v33  ;;  %782 = vadd.xlane.f32.xlu0 %v781_v34  ;;  %v1048_v33 = vmul.f32 %v3614_v29, %v4719_v8  ;;  %v3694_v34 = vld [vmem:[%s4721_s7 + $0x540] sm:$0xff] }
  0xca   : > { %1102 = vadd.xlane.f32.xlu1 %v1101_v39  ;;  %1066 = vadd.xlane.f32.xlu0 %v1065_v40  ;;  %v1104_v39 = vsel %vm620_vm0, %v1048_v33, 0.0  ;;  %v1612_v40 = vmul.f32 %v3694_v34, %v4719_v8  ;;  %v929_v34 = vsel %vm620_vm0, %v893_v26, 0.0 }
  0xce   : > { %1386 = vadd.xlane.f32.xlu1 %v1385_v45  ;;  %1350 = vadd.xlane.f32.xlu0 %v1349_v46  ;;  %v1636_v46 = vsel %vm620_vm0, %v1612_v40, 0.0 }
  0xd2   : > { %960 = vadd.xlane.f32.xlu1 %v959_v51  ;;  %924 = vadd.xlane.f32.xlu0 %v923_v52  ;;  %v3557_v51 = vld [vmem:[%s4721_s7 + $0xf8] sm:$0xff] }
  0xd6   : > { %1244 = vadd.xlane.f32.xlu1 %v1243_v57  ;;  %1208 = vadd.xlane.f32.xlu0 %v1207_v58  ;;  %v749_v57 = vmul.f32 %v3557_v51, %v4719_v8  ;;  %v3615_v58 = vld [vmem:[%s4721_s7 + $0x2c8] sm:$0xff] }
  0xda   : > { %1528 = vadd.xlane.f32.xlu1 %v1527_v63  ;;  %1492 = vadd.xlane.f32.xlu0 %v1491_v0  ;;  %v787_v63 = vsel %vm620_vm0, %v749_v57, 0.0  ;;  %v1049_v0 = vmul.f32 %v3615_v58, %v4719_v8 }
  0xde   : > { %963 = vadd.xlane.f32.xlu1 %v962_v5  ;;  %927 = vadd.xlane.f32.xlu0 %v926_v6  ;;  %v1107_v6 = vsel %vm620_vm0, %v1049_v0, 0.0  ;;  %v3581_v0 = vld [vmem:[%s4721_s7 + $0x1b8] sm:$0xff] }
  0xe2   : > { %1247 = vadd.xlane.f32.xlu1 %v1246_v12  ;;  %1211 = vadd.xlane.f32.xlu0 %v1210_v13  ;;  %v3695_v12 = vld [vmem:[%s4721_s7 + $0x548] sm:$0xff] }
  0xe6   : > { %1531 = vadd.xlane.f32.xlu1 %v1530_v18  ;;  %1495 = vadd.xlane.f32.xlu0 %v1494_v19  ;;  %v1613_v18 = vmul.f32 %v3695_v12, %v4719_v8  ;;  %v3592_v19 = vld [vmem:[%s4721_s7 + $0x210] sm:$0xff] }
  0xea   : > { %785 = vadd.xlane.f32.xlu1 %v784_v24  ;;  %676 = vadd.xlane.f32.xlu0 %v675_v25  ;;  %v1639_v24 = vsel %vm620_vm0, %v1613_v18, 0.0  ;;  %v905_v25 = vmul.f32 %v3592_v19, %v4719_v8 }
  0xec   : > { %v965_v33 = vsel %vm620_vm0, %v905_v25, 0.0 }
  0xee   : > { %1069 = vadd.xlane.f32.xlu1 %v1068_v30  ;;  %821 = vadd.xlane.f32.xlu0 %v820_v31 }
  0xef   : > { %v4939_v36 = vpop.xlane.xlu1 %628  ;;  %v4941_v37 = vpop.xlane.xlu0 %622 }
  0xf0   : > { %v5006_v29 = vmax.f32 %v4941_v37, 0.0  ;;  %v3684_v37 = vld [vmem:[%s4721_s7 + $0x4f0] sm:$0xff]  ;;  %v5078_v41 = vmax.f32 %v4939_v36, 0.0 }
  0xf2   : > { %1353 = vadd.xlane.f32.xlu1 %v1352_v38  ;;  %1105 = vadd.xlane.f32.xlu0 %v1104_v39  ;;  %v1181_v38 = vmul.f32 %v3626_v28, %v4719_v8  ;;  %v1732_v42 = vmul.f32 %v5006_v29, %v5006_v29  ;;  %v1194_v28 = vmul.f32 %v3639_v20, %v4719_v8 }
  0xf3   : > { %v4949_v44 = vpop.xlane.xlu1 %631  ;;  %v4951_v45 = vpop.xlane.xlu0 %625  ;;  %7880 = vst [vmem:[#allocation15_spill] sm:$0xff] %v5078_v41 }
  0xf4   : > { %v5023_v43 = vmax.f32 %v4951_v45, 0.0  ;;  %v1249_v45 = vsel %vm620_vm0, %v1193_v35, 0.0 }
  0xf6   : > { %1637 = vadd.xlane.f32.xlu1 %v1636_v46  ;;  %1389 = vadd.xlane.f32.xlu0 %v1388_v47  ;;  %7873 = vst [vmem:[#allocation8_spill] sm:$0xff] %v5023_v43  ;;  %v1733_v1 = vmul.f32 %v5023_v43, %v5023_v43 }
  0xf7   : > { %v4959_v52 = vpop.xlane.xlu1 %637  ;;  %v4961_v53 = vpop.xlane.xlu0 %634 }
  0xfa   : > { %679 = vadd.xlane.f32.xlu1 %v678_v54  ;;  %1673 = vadd.xlane.f32.xlu0 %v1672_v55  ;;  %v1213_v54 = vsel %vm620_vm0, %v1181_v38, 0.0  ;;  %v1481_v55 = vmul.f32 %v3684_v37, %v4719_v8  ;;  %v3685_v38 = vld [vmem:[%s4721_s7 + $0x4f8] sm:$0xff] }
  0xfb   : > { %v4969_v60 = vpop.xlane.xlu1 %643  ;;  %v4971_v61 = vpop.xlane.xlu0 %640  ;;  %v3673_v37 = vld [vmem:[%s4721_s7 + $0x498] sm:$0xff] }
  0xfc   : > { %v1533_v10 = vsel %vm620_vm0, %v1481_v55, 0.0 }
  0xfe   : > { %824 = vadd.xlane.f32.xlu1 %v823_v62  ;;  %788 = vadd.xlane.f32.xlu0 %v787_v63  ;;  %v3593_v63 = vld [vmem:[%s4721_s7 + $0x218] sm:$0xff] }
  0xff   : > { %v4979_v4 = vpop.xlane.xlu1 %649  ;;  %v4981_v5 = vpop.xlane.xlu0 %646  ;;  %v906_v12 = vmul.f32 %v3593_v63, %v4719_v8  ;;  %v1734_v63 = vmul.f32 %v5078_v41, %v5078_v41  ;;  %v3607_v41 = vld [vmem:[%s4721_s7 + $0x288] sm:$0xff] }
 0x101   : > { %v968_v26 = vsel %vm620_vm0, %v906_v12, 0.0 }
 0x102   : > { %1108 = vadd.xlane.f32.xlu1 %v1107_v6  ;;  %1072 = vadd.xlane.f32.xlu0 %v1071_v7 }
 0x103   : > { %v4989_v13 = vpop.xlane.xlu1 %655  ;;  %v4991_v14 = vpop.xlane.xlu0 %652 }
 0x104   : > { %7869 = vst [vmem:[#allocation4_spill] sm:$0xff] %v4989_v13  ;;  %7870 = vst [vmem:[#allocation5_spill] sm:$0xff] %v4991_v14  ;;  %v3711_v14 = vld [vmem:[%s4721_s7 + $0x5c8] sm:$0xff] }
 0x106   : > { %1392 = vadd.xlane.f32.xlu1 %v1391_v15  ;;  %1356 = vadd.xlane.f32.xlu0 %v1355_v16  ;;  %v894_v15 = vmul.f32 %v3581_v0, %v4719_v8 }
 0x107   : > { %v662_v21 = vpop.xlane.xlu1 %661  ;;  %v659_v22 = vpop.xlane.xlu0 %658 }
 0x108   : > { %v5008_v30 = vmax.f32 %v659_v22, 0.0  ;;  %v5025_v46 = vmax.f32 %v662_v21, 0.0  ;;  %v3627_v21 = vld [vmem:[%s4721_s7 + $0x328] sm:$0xff]  ;;  %v932_v27 = vsel %vm620_vm0, %v894_v15, 0.0 }
 0x10a   : > { %7871 = vst [vmem:[#allocation6_spill] sm:$0xff] %v5008_v30  ;;  %1676 = vadd.xlane.f32.xlu1 %v1675_v23  ;;  %1640 = vadd.xlane.f32.xlu0 %v1639_v24  ;;  %7874 = vst [vmem:[#allocation9_spill] sm:$0xff] %v5025_v46  ;;  %v1744_v47 = vmul.f32 %v5008_v30, %v5008_v30  ;;  %v1745_v2 = vmul.f32 %v5025_v46, %v5025_v46 }
 0x10b   : > { %v804_v31 = vpop.xlane.xlu1 %803  ;;  %v768_v32 = vpop.xlane.xlu0 %767 }
 0x10c   : > { %v5014_v39 = vmax.f32 %v804_v31, 0.0  ;;  %v5016_v40 = vmax.f32 %v768_v32, 0.0  ;;  %v1182_v31 = vmul.f32 %v3627_v21, %v4719_v8 }
 0x10e   : > { %7872 = vst [vmem:[#allocation7_spill] sm:$0xff] %v5014_v39  ;;  %v1768_v48 = vmul.f32 %v5014_v39, %v5014_v39  ;;  %v1756_v49 = vmul.f32 %v5016_v40, %v5016_v40  ;;  %966 = vadd.xlane.f32.xlu1 %v965_v33  ;;  %930 = vadd.xlane.f32.xlu0 %v929_v34 }
 0x10f   : > { %v807_v50 = vpop.xlane.xlu1 %806  ;;  %v771_v51 = vpop.xlane.xlu0 %770 }
 0x110   : > { %v1792_v57 = vadd.f32 %v1768_v48, %v1744_v47  ;;  %v1780_v58 = vadd.f32 %v1756_v49, %v1732_v42  ;;  %v5037_v59 = vmax.f32 %v807_v50, 0.0  ;;  %v5039_v62 = vmax.f32 %v771_v51, 0.0 }
 0x111   : > { %v1252_v50 = vsel %vm620_vm0, %v1194_v28, 0.0  ;;  %v1216_v51 = vsel %vm620_vm0, %v1182_v31, 0.0 }
 0x112   : > { %7875 = vst [vmem:[#allocation10_spill] sm:$0xff] %v5037_v59  ;;  %7876 = vst [vmem:[#allocation11_spill] sm:$0xff] %v5039_v62  ;;  %v1769_v3 = vmul.f32 %v5037_v59, %v5037_v59  ;;  %v1757_v6 = vmul.f32 %v5039_v62, %v5039_v62  ;;  %1250 = vadd.xlane.f32.xlu1 %v1249_v45  ;;  %1214 = vadd.xlane.f32.xlu0 %v1213_v54  ;;  %v3608_v62 = vld [vmem:[%s4721_s7 + $0x290] sm:$0xff] }
 0x113   : > { %v949_v7 = vpop.xlane.xlu1 %948  ;;  %v913_v9 = vpop.xlane.xlu0 %912  ;;  %v1482_v45 = vmul.f32 %v3685_v38, %v4719_v8  ;;  %v1470_v54 = vmul.f32 %v3673_v37, %v4719_v8 }
 0x114   : > { %v1793_v16 = vadd.f32 %v1769_v3, %v1745_v2  ;;  %v1781_v17 = vadd.f32 %v1757_v6, %v1733_v1  ;;  %v5055_v18 = vmax.f32 %v949_v7, 0.0  ;;  %v5057_v19 = vmax.f32 %v913_v9, 0.0 }
 0x115   : > { %v1536_v6 = vsel %vm620_vm0, %v1482_v45, 0.0  ;;  %v1500_v7 = vsel %vm620_vm0, %v1470_v54, 0.0 }
 0x116   : > { %7877 = vst [vmem:[#allocation12_spill] sm:$0xff] %v5055_v18  ;;  %v1816_v22 = vmul.f32 %v5055_v18, %v5055_v18  ;;  %v1804_v23 = vmul.f32 %v5057_v19, %v5057_v19  ;;  %1534 = vadd.xlane.f32.xlu1 %v1533_v10  ;;  %1498 = vadd.xlane.f32.xlu0 %v1497_v11 }
 0x117   : > { %v952_v24 = vpop.xlane.xlu1 %951  ;;  %v916_v25 = vpop.xlane.xlu0 %915 }
 0x118   : > { %v5069_v32 = vadd.f32 %v1816_v22, %v1792_v57  ;;  %v1828_v33 = vadd.f32 %v1804_v23, %v1780_v58  ;;  %v5071_v34 = vmax.f32 %v952_v24, 0.0  ;;  %v5073_v35 = vmax.f32 %v916_v25, 0.0  ;;  %v3558_v57 = vld [vmem:[%s4721_s7 + $0x100] sm:$0xff] }
 0x119   : > { %v586_v58 = vld [vmem:[%s4721_s7 + $0xa0] sm:$0xff]  ;;  %v750_v9 = vmul.f32 %v3558_v57, %v4719_v8 }
 0x11a   : > { %7878 = vst [vmem:[#allocation13_spill] sm:$0xff] %v5071_v34  ;;  %7879 = vst [vmem:[#allocation14_spill] sm:$0xff] %v5073_v35  ;;  %v1817_v42 = vmul.f32 %v5071_v34, %v5071_v34  ;;  %v1805_v47 = vmul.f32 %v5073_v35, %v5073_v35  ;;  %969 = vadd.xlane.f32.xlu1 %v968_v26  ;;  %933 = vadd.xlane.f32.xlu0 %v932_v27  ;;  %v3676_v34 = vld [vmem:[%s4721_s7 + $0x4b0] sm:$0xff] }
 0x11b   : > { %v774_v48 = vpop.xlane.xlu1 %773  ;;  %v665_v49 = vpop.xlane.xlu0 %664  ;;  %v616_v10 = vmul.f32 %v4719_v8, %v586_v58  ;;  %v790_v25 = vsel %vm620_vm0, %v750_v9, 0.0 }
 0x11c   : > { %v5088_v36 = vadd.f32 %v1817_v42, %v1793_v16  ;;  %v5090_v55 = vadd.f32 %v1805_v47, %v1781_v17  ;;  %v5092_v56 = vmax.f32 %v774_v48, 0.0  ;;  %v5100_v1 = vmax.f32 %v665_v49, 0.0  ;;  %v3604_v16 = vld [vmem:[%s4721_s7 + $0x270] sm:$0xff]  ;;  %v3570_v17 = vld [vmem:[%s4721_s7 + $0x160] sm:$0xff] }
 0x11d   : > { %v681_v26 = vsel %vm620_vm0, %v616_v10, 0.0  ;;  %v1038_v27 = vmul.f32 %v3604_v16, %v4719_v8  ;;  %v762_v28 = vmul.f32 %v3570_v17, %v4719_v8  ;;  %v3650_v42 = vld [vmem:[%s4721_s7 + $0x3e0] sm:$0xff]  ;;  %v3616_v47 = vld [vmem:[%s4721_s7 + $0x2d0] sm:$0xff]  ;;  %v5133_v48 = vmax.f32 %v4949_v44, 0.0 }
 0x11e   : > { %7881 = vst [vmem:[#allocation16_spill] sm:$0xff] %v5092_v56  ;;  %v1758_v0 = vmul.f32 %v5092_v56, %v5092_v56  ;;  %7882 = vst [vmem:[#allocation17_spill] sm:$0xff] %v5100_v1  ;;  %1253 = vadd.xlane.f32.xlu1 %v1252_v50  ;;  %1217 = vadd.xlane.f32.xlu0 %v1216_v51  ;;  %v1746_v20 = vmul.f32 %v5100_v1, %v5100_v1  ;;  %v3619_v56 = vld [vmem:[%s4721_s7 + $0x2e8] sm:$0xff] }
 0x11f   : > { %v1058_v2 = vpop.xlane.xlu1 %1057  ;;  %v810_v3 = vpop.xlane.xlu0 %809  ;;  %7885 = vst [vmem:[#allocation20_spill] sm:$0xff] %v5133_v48  ;;  %v1074_v45 = vsel %vm620_vm0, %v1038_v27, 0.0  ;;  %v826_v54 = vsel %vm620_vm0, %v762_v28, 0.0  ;;  %v1326_v57 = vmul.f32 %v3650_v42, %v4719_v8  ;;  %v1050_v58 = vmul.f32 %v3616_v47, %v4719_v8  ;;  %v587_v27 = vld [vmem:[%s4721_s7 + $0xa8] sm:$0xff]  ;;  %v3708_v28 = vld [vmem:[%s4721_s7 + $0x5b0] sm:$0xff] }
 0x120   : > { %v5106_v11 = vadd.f32 %v1758_v0, %v1734_v63  ;;  %v5108_v12 = vmax.f32 %v1058_v2, 0.0  ;;  %v5110_v15 = vmax.f32 %v810_v3, 0.0  ;;  %v3696_v2 = vld [vmem:[%s4721_s7 + $0x550] sm:$0xff]  ;;  %v3662_v3 = vld [vmem:[%s4721_s7 + $0x440] sm:$0xff] }
 0x121   : > { %v1358_v17 = vsel %vm620_vm0, %v1326_v57, 0.0 }
 0x122   : > { %7883 = vst [vmem:[#allocation18_spill] sm:$0xff] %v5110_v15  ;;  %v1852_v21 = vmul.f32 %v5108_v12, %v5108_v12  ;;  %v1770_v22 = vmul.f32 %v5110_v15, %v5110_v15  ;;  %1537 = vadd.xlane.f32.xlu1 %v1536_v6  ;;  %1501 = vadd.xlane.f32.xlu0 %v1500_v7 }
 0x123   : > { %v668_v23 = vpop.xlane.xlu1 %667  ;;  %v1094_v24 = vpop.xlane.xlu0 %1093  ;;  %v1735_v6 = vmul.f32 %v5133_v48, %v5133_v48 }
 0x124   : > { %v5124_v31 = vadd.f32 %v1852_v21, %v1828_v33  ;;  %v5126_v38 = vadd.f32 %v1770_v22, %v1746_v20  ;;  %v5128_v37 = vmax.f32 %v1094_v24, 0.0  ;;  %v5135_v49 = vmax.f32 %v668_v23, 0.0 }
 0x125   : > { %v1110_v20 = vsel %vm620_vm0, %v1050_v58, 0.0  ;;  %v1614_v21 = vmul.f32 %v3696_v2, %v4719_v8  ;;  %v1338_v22 = vmul.f32 %v3662_v3, %v4719_v8 }
 0x126   : > { %7884 = vst [vmem:[#allocation19_spill] sm:$0xff] %v5128_v37  ;;  %7886 = vst [vmem:[#allocation21_spill] sm:$0xff] %v5135_v49  ;;  %v1864_v50 = vmul.f32 %v5128_v37, %v5128_v37  ;;  %791 = vadd.xlane.f32.xlu1 %v790_v25  ;;  %682 = vadd.xlane.f32.xlu0 %v681_v26  ;;  %v1747_v7 = vmul.f32 %v5135_v49, %v5135_v49 }
 0x127   : > { %v813_v33 = vpop.xlane.xlu1 %812  ;;  %v777_v51 = vpop.xlane.xlu0 %776 }
 0x128   : > { %v5144_v44 = vadd.f32 %v1864_v50, %v5069_v32  ;;  %v5146_v63 = vmax.f32 %v813_v33, 0.0  ;;  %v5148_v0 = vmax.f32 %v777_v51, 0.0  ;;  %v1642_v33 = vsel %vm620_vm0, %v1614_v21, 0.0 }
 0x129   : > { %v1394_v51 = vsel %vm620_vm0, %v1338_v22, 0.0 }
 0x12a   : > { %7887 = vst [vmem:[#allocation22_spill] sm:$0xff] %v5146_v63  ;;  %7888 = vst [vmem:[#allocation23_spill] sm:$0xff] %v5148_v0  ;;  %v1771_v9 = vmul.f32 %v5146_v63, %v5146_v63  ;;  %v1759_v32 = vmul.f32 %v5148_v0, %v5148_v0  ;;  %1075 = vadd.xlane.f32.xlu1 %v1074_v45  ;;  %827 = vadd.xlane.f32.xlu0 %v826_v54  ;;  %v5183_v45 = vld [vmem:[%s7716_s1] ss:$0 sm:$0xff]  ;;  %v3583_v63 = vld [vmem:[%s4721_s7 + $0x1c8] sm:$0xff] }
 0x12b   : > { %v1097_v10 = vpop.xlane.xlu1 %1096  ;;  %v1061_v16 = vpop.xlane.xlu0 %1060  ;;  %v617_v54 = vmul.f32 %v5183_v45, %v587_v27  ;;  %v1626_v57 = vmul.f32 %v5183_v45, %v3708_v28  ;;  %v1473_v59 = vmul.f32 %v5183_v45, %v3676_v34 }
 0x12c   : > { %v5164_v23 = vadd.f32 %v1771_v9, %v1747_v7  ;;  %v5166_v24 = vadd.f32 %v1759_v32, %v1735_v6  ;;  %v5168_v25 = vmax.f32 %v1097_v10, 0.0  ;;  %v5170_v26 = vmax.f32 %v1061_v16, 0.0  ;;  %v3571_v7 = vld [vmem:[%s4721_s7 + $0x168] sm:$0xff] }
 0x12d   : > { %v3559_v9 = vld [vmem:[%s4721_s7 + $0x108] sm:$0xff] }
 0x12e   : > { %7889 = vst [vmem:[#allocation24_spill] sm:$0xff] %v5168_v25  ;;  %7890 = vst [vmem:[#allocation25_spill] sm:$0xff] %v5170_v26  ;;  %v1865_v42 = vmul.f32 %v5168_v25, %v5168_v25  ;;  %v1853_v47 = vmul.f32 %v5170_v26, %v5170_v26  ;;  %1359 = vadd.xlane.f32.xlu1 %v1358_v17  ;;  %1111 = vadd.xlane.f32.xlu0 %v1110_v20  ;;  %v1678_v17 = vsel %vm620_vm0, %v1626_v57, 0.0  ;;  %v3688_v25 = vld [vmem:[%s4721_s7 + $0x510] sm:$0xff]  ;;  %v3689_v26 = vld [vmem:[%s4721_s7 + $0x518] sm:$0xff] }
 0x12f   : > { %v955_v8 = vpop.xlane.xlu1 %954  ;;  %v919_v50 = vpop.xlane.xlu0 %918  ;;  %v763_v20 = vmul.f32 %v5183_v45, %v3571_v7  ;;  %v751_v21 = vmul.f32 %v5183_v45, %v3559_v9  ;;  %v1486_v35 = vmul.f32 %v5183_v45, %v3689_v26 }
 0x130   : > { %v5188_v58 = vadd.f32 %v1865_v42, %v5088_v36  ;;  %v5191_v2 = vadd.f32 %v1853_v47, %v5090_v55  ;;  %v5193_v3 = vmax.f32 %v955_v8, 0.0  ;;  %v5195_v6 = vmax.f32 %v919_v50, 0.0  ;;  %v3617_v47 = vld [vmem:[%s4721_s7 + $0x2d8] sm:$0xff] }
 0x131   : > { %v684_v55 = vsel %vm620_vm0, %v617_v54, 0.0  ;;  %v3605_v8 = vld [vmem:[%s4721_s7 + $0x278] sm:$0xff]  ;;  %v793_v54 = vsel %vm620_vm0, %v751_v21, 0.0  ;;  %v1051_v57 = vmul.f32 %v5183_v45, %v3617_v47 }
 0x132   : > { %7891 = vst [vmem:[#allocation26_spill] sm:$0xff] %v5193_v3  ;;  %7892 = vst [vmem:[#allocation27_spill] sm:$0xff] %v5195_v6  ;;  %v1818_v32 = vmul.f32 %v5193_v3, %v5193_v3  ;;  %v1806_v10 = vmul.f32 %v5195_v6, %v5195_v6  ;;  %1643 = vadd.xlane.f32.xlu1 %v1642_v33  ;;  %1395 = vadd.xlane.f32.xlu0 %v1394_v51  ;;  %v3629_v3 = vld [vmem:[%s4721_s7 + $0x338] sm:$0xff] }
 0x133   : > { %v1239_v36 = vpop.xlane.xlu1 %1238  ;;  %v1203_v16 = vpop.xlane.xlu0 %1202  ;;  %v1039_v7 = vmul.f32 %v5183_v45, %v3605_v8 }
 0x134   : > { %v5208_v22 = vadd.f32 %v1818_v32, %v5126_v38  ;;  %v5211_v27 = vadd.f32 %v1806_v10, %v5106_v11  ;;  %v5213_v28 = vmax.f32 %v1239_v36, 0.0  ;;  %v5215_v42 = vmax.f32 %v1203_v16, 0.0  ;;  %v3663_v16 = vld [vmem:[%s4721_s7 + $0x448] sm:$0xff] }
 0x135   : > { %v829_v11 = vsel %vm620_vm0, %v763_v20, 0.0  ;;  %v1077_v47 = vsel %vm620_vm0, %v1039_v7, 0.0  ;;  %v1339_v8 = vmul.f32 %v5183_v45, %v3663_v16 }
 0x136   : > { %7893 = vst [vmem:[#allocation28_spill] sm:$0xff] %v5213_v28  ;;  %v1912_v50 = vmul.f32 %v5213_v28, %v5213_v28  ;;  %v1900_v33 = vmul.f32 %v5215_v42, %v5215_v42  ;;  %685 = vadd.xlane.f32.xlu1 %v684_v55  ;;  %1679 = vadd.xlane.f32.xlu0 %v1678_v17  ;;  %v3651_v55 = vld [vmem:[%s4721_s7 + $0x3e8] sm:$0xff] }
 0x137   : > { %v958_v38 = vpop.xlane.xlu1 %957  ;;  %v922_v51 = vpop.xlane.xlu0 %921 }
 0x138   : > { %v5228_v9 = vadd.f32 %v1912_v50, %v5144_v44  ;;  %v5231_v32 = vadd.f32 %v1900_v33, %v5124_v31  ;;  %v5233_v10 = vmax.f32 %v958_v38, 0.0  ;;  %v5235_v36 = vmax.f32 %v922_v51, 0.0 }
 0x139   : > { %v1113_v31 = vsel %vm620_vm0, %v1051_v57, 0.0  ;;  %v1327_v50 = vmul.f32 %v5183_v45, %v3651_v55  ;;  %v5260_v57 = vmax.f32 %v4961_v53, 0.0  ;;  %v1397_v55 = vsel %vm620_vm0, %v1339_v8, 0.0 }
 0x13a   : > { %7894 = vst [vmem:[#allocation29_spill] sm:$0xff] %v5233_v10  ;;  %7895 = vst [vmem:[#allocation30_spill] sm:$0xff] %v5235_v36  ;;  %v1819_v17 = vmul.f32 %v5233_v10, %v5233_v10  ;;  %v1807_v20 = vmul.f32 %v5235_v36, %v5235_v36  ;;  %830 = vadd.xlane.f32.xlu1 %v829_v11  ;;  %794 = vadd.xlane.f32.xlu0 %v793_v54  ;;  %v3709_v54 = vld [vmem:[%s4721_s7 + $0x5b8] sm:$0xff] }
 0x13b   : > { %v1242_v44 = vpop.xlane.xlu1 %1241  ;;  %v1206_v21 = vpop.xlane.xlu0 %1205  ;;  %v3697_v36 = vld [vmem:[%s4721_s7 + $0x558] sm:$0xff]  ;;  %7898 = vst [vmem:[#allocation33_spill] sm:$0xff] %v5260_v57  ;;  %v1736_v8 = vmul.f32 %v5260_v57, %v5260_v57 }
 0x13c   : > { %v5248_v33 = vadd.f32 %v1819_v17, %v5164_v23  ;;  %v5251_v38 = vadd.f32 %v1807_v20, %v5166_v24  ;;  %v5253_v51 = vmax.f32 %v1242_v44, 0.0  ;;  %v5255_v11 = vmax.f32 %v1206_v21, 0.0 }
 0x13d   : > { %v1361_v17 = vsel %vm620_vm0, %v1327_v50, 0.0  ;;  %v1627_v20 = vmul.f32 %v5183_v45, %v3709_v54  ;;  %v1615_v44 = vmul.f32 %v5183_v45, %v3697_v36 }
 0x13e   : > { %7896 = vst [vmem:[#allocation31_spill] sm:$0xff] %v5253_v51  ;;  %7897 = vst [vmem:[#allocation32_spill] sm:$0xff] %v5255_v11  ;;  %v1913_v7 = vmul.f32 %v5253_v51, %v5253_v51  ;;  %v1901_v23 = vmul.f32 %v5255_v11, %v5255_v11  ;;  %1114 = vadd.xlane.f32.xlu1 %v1113_v31  ;;  %1078 = vadd.xlane.f32.xlu0 %v1077_v47  ;;  %v3594_v31 = vld [vmem:[%s4721_s7 + $0x220] sm:$0xff] }
 0x13f   : > { %v780_v24 = vpop.xlane.xlu1 %779  ;;  %v671_v16 = vpop.xlane.xlu0 %670  ;;  %v3582_v47 = vld [vmem:[%s4721_s7 + $0x1c0] sm:$0xff] }
 0x140   : > { %v5271_v53 = vadd.f32 %v1913_v7, %v5188_v58  ;;  %v5274_v21 = vadd.f32 %v1901_v23, %v5191_v2  ;;  %v5276_v0 = vmax.f32 %v780_v24, 0.0  ;;  %v5284_v54 = vmax.f32 %v671_v16, 0.0  ;;  %v3640_v16 = vld [vmem:[%s4721_s7 + $0x390] sm:$0xff] }
 0x141   : > { %v1681_v2 = vsel %vm620_vm0, %v1627_v20, 0.0  ;;  %v1645_v7 = vsel %vm620_vm0, %v1615_v44, 0.0  ;;  %v907_v23 = vmul.f32 %v5183_v45, %v3594_v31  ;;  %v895_v24 = vmul.f32 %v5183_v45, %v3582_v47 }
 0x142   : > { %7899 = vst [vmem:[#allocation34_spill] sm:$0xff] %v5276_v0  ;;  %v1760_v50 = vmul.f32 %v5276_v0, %v5276_v0  ;;  %7900 = vst [vmem:[#allocation35_spill] sm:$0xff] %v5284_v54  ;;  %1398 = vadd.xlane.f32.xlu1 %v1397_v55  ;;  %1362 = vadd.xlane.f32.xlu0 %v1361_v17  ;;  %v3628_v55 = vld [vmem:[%s4721_s7 + $0x330] sm:$0xff]  ;;  %v1748_v17 = vmul.f32 %v5284_v54, %v5284_v54 }
 0x143   : > { %v1064_v58 = vpop.xlane.xlu1 %1063  ;;  %v816_v36 = vpop.xlane.xlu0 %815 }
 0x144   : > { %v5290_v48 = vadd.f32 %v1760_v50, %v1736_v8  ;;  %v5292_v57 = vmax.f32 %v1064_v58, 0.0  ;;  %v5294_v10 = vmax.f32 %v816_v36, 0.0  ;;  %v971_v8 = vsel %vm620_vm0, %v907_v23, 0.0 }
 0x145   : > { %v935_v50 = vsel %vm620_vm0, %v895_v24, 0.0  ;;  %v1195_v58 = vmul.f32 %v5183_v45, %v3640_v16  ;;  %v1183_v36 = vmul.f32 %v5183_v45, %v3628_v55 }
 0x146   : > { %7901 = vst [vmem:[#allocation36_spill] sm:$0xff] %v5292_v57  ;;  %7902 = vst [vmem:[#allocation37_spill] sm:$0xff] %v5294_v10  ;;  %v1854_v20 = vmul.f32 %v5292_v57, %v5292_v57  ;;  %v1772_v44 = vmul.f32 %v5294_v10, %v5294_v10  ;;  %1682 = vadd.xlane.f32.xlu1 %v1681_v2  ;;  %1646 = vadd.xlane.f32.xlu0 %v1645_v7  ;;  %v3686_v7 = vld [vmem:[%s4721_s7 + $0x500] sm:$0xff] }
 0x147   : > { %v5304_v31 = vpop.xlane.xlu1 %1347  ;;  %v1100_v47 = vpop.xlane.xlu0 %1099  ;;  %v3674_v10 = vld [vmem:[%s4721_s7 + $0x4a0] sm:$0xff]  ;;  %v1255_v55 = vsel %vm620_vm0, %v1195_v58, 0.0 }
 0x148   : > { %v5311_v54 = vadd.f32 %v1854_v20, %v5211_v27  ;;  %v5313_v0 = vadd.f32 %v1772_v44, %v1748_v17  ;;  %v5315_v2 = vmax.f32 %v1100_v47, 0.0  ;;  %v1219_v27 = vsel %vm620_vm0, %v1183_v36, 0.0  ;;  %v3595_v47 = vld [vmem:[%s4721_s7 + $0x228] sm:$0xff] }
 0x149   : > { %v1483_v20 = vmul.f32 %v5183_v45, %v3686_v7  ;;  %v1471_v17 = vmul.f32 %v5183_v45, %v3674_v10  ;;  %v908_v49 = vmul.f32 %v5183_v45, %v3595_v47 }
 0x14a   : > { %7903 = vst [vmem:[#allocation38_spill] sm:$0xff] %v5315_v2  ;;  %v1866_v23 = vmul.f32 %v5315_v2, %v5315_v2  ;;  %972 = vadd.xlane.f32.xlu1 %v971_v8  ;;  %936 = vadd.xlane.f32.xlu0 %v935_v50  ;;  %v5333_v8 = vmax.f32 %v4959_v52, 0.0  ;;  %v3641_v52 = vld [vmem:[%s4721_s7 + $0x398] sm:$0xff] }
 0x14b   : > { %v674_v24 = vpop.xlane.xlu1 %673  ;;  %v5321_v16 = vpop.xlane.xlu0 %1383  ;;  %v1539_v7 = vsel %vm620_vm0, %v1483_v20, 0.0  ;;  %v1503_v10 = vsel %vm620_vm0, %v1471_v17, 0.0  ;;  %v974_v47 = vsel %vm620_vm0, %v908_v49, 0.0 }
 0x14c   : > { %v5328_v44 = vadd.f32 %v1866_v23, %v5208_v22  ;;  %7904 = vst [vmem:[#allocation39_spill] sm:$0xff] %v5333_v8  ;;  %v5335_v50 = vmax.f32 %v674_v24, 0.0  ;;  %v896_v22 = vmul.f32 %v5183_v45, %v3583_v63  ;;  %v1737_v24 = vmul.f32 %v5333_v8, %v5333_v8 }
 0x14d   : > { %v1184_v8 = vmul.f32 %v5183_v45, %v3629_v3 }
 0x14e   : > { %7905 = vst [vmem:[#allocation40_spill] sm:$0xff] %v5335_v50  ;;  %1256 = vadd.xlane.f32.xlu1 %v1255_v55  ;;  %1220 = vadd.xlane.f32.xlu0 %v1219_v27  ;;  %v1749_v55 = vmul.f32 %v5335_v50, %v5335_v50 }
 0x14f   : > { %v819_v58 = vpop.xlane.xlu1 %818  ;;  %v783_v36 = vpop.xlane.xlu0 %782 }
 0x150   : > { %v5341_v23 = vmax.f32 %v819_v58, 0.0  ;;  %v5343_v2 = vmax.f32 %v783_v36, 0.0  ;;  %v938_v58 = vsel %vm620_vm0, %v896_v22, 0.0  ;;  %v1196_v36 = vmul.f32 %v5183_v45, %v3641_v52 }
 0x152   : > { %7906 = vst [vmem:[#allocation41_spill] sm:$0xff] %v5341_v23  ;;  %7907 = vst [vmem:[#allocation42_spill] sm:$0xff] %v5343_v2  ;;  %v1773_v27 = vmul.f32 %v5341_v23, %v5341_v23  ;;  %v1761_v63 = vmul.f32 %v5343_v2, %v5343_v2  ;;  %1540 = vadd.xlane.f32.xlu1 %v1539_v7  ;;  %1504 = vadd.xlane.f32.xlu0 %v1503_v10  ;;  %v3687_v7 = vld [vmem:[%s4721_s7 + $0x508] sm:$0xff] }
 0x153   : > { %v1103_v20 = vpop.xlane.xlu1 %1102  ;;  %v1067_v17 = vpop.xlane.xlu0 %1066  ;;  %v3675_v10 = vld [vmem:[%s4721_s7 + $0x4a8] sm:$0xff] }
 0x154   : > { %v5359_v50 = vadd.f32 %v1773_v27, %v1749_v55  ;;  %v5361_v15 = vadd.f32 %v1761_v63, %v1737_v24  ;;  %v5363_v23 = vmax.f32 %v1103_v20, 0.0  ;;  %v5365_v1 = vmax.f32 %v1067_v17, 0.0 }
 0x155   : > { %v1258_v24 = vsel %vm620_vm0, %v1196_v36, 0.0  ;;  %v1222_v55 = vsel %vm620_vm0, %v1184_v8, 0.0  ;;  %v1484_v27 = vmul.f32 %v5183_v45, %v3687_v7  ;;  %v1472_v63 = vmul.f32 %v5183_v45, %v3675_v10  ;;  %v2885_v8 = vld [vmem:[%s7717_s2 + $0x8] sm:$0xff] }
 0x156   : > { %7908 = vst [vmem:[#allocation43_spill] sm:$0xff] %v5363_v23  ;;  %7909 = vst [vmem:[#allocation44_spill] sm:$0xff] %v5365_v1  ;;  %v1867_v49 = vmul.f32 %v5363_v23, %v5363_v23  ;;  %v1855_v22 = vmul.f32 %v5365_v1, %v5365_v1  ;;  %975 = vadd.xlane.f32.xlu1 %v974_v47  ;;  %939 = vadd.xlane.f32.xlu0 %v938_v58  ;;  %v3560_v47 = vld [vmem:[%s4721_s7 + $0x110] sm:$0xff]  ;;  %v3606_v1 = vld [vmem:[%s4721_s7 + $0x280] sm:$0xff] }
 0x157   : > { %v1387_v3 = vpop.xlane.xlu1 %1386  ;;  %v5373_v52 = vpop.xlane.xlu0 %1350  ;;  %v588_v58 = vld [vmem:[%s4721_s7 + $0xb0] sm:$0xff]  ;;  %v1506_v10 = vsel %vm620_vm0, %v1472_v63, 0.0  ;;  %3784 = vmatprep.subr.mxu0 %v2885_v8  ;;  %3824 = vmatprep.subr.mxu1 %v2885_v8 }
 0x158   : > { %v5380_v20 = vadd.f32 %v1867_v49, %v5248_v33  ;;  %v5383_v17 = vadd.f32 %v1855_v22, %v5251_v38  ;;  %v5385_v2 = vmax.f32 %v1387_v3, 0.0  ;;  %v1542_v38 = vsel %vm620_vm0, %v1484_v27, 0.0  ;;  %v3572_v23 = vld [vmem:[%s4721_s7 + $0x170] sm:$0xff]  ;;  %3785 = vmatpush3.msra.mxu0 %v2885_v8  ;;  %3826 = vmatpush3.msra.mxu1 %v2885_v8  ;;  %v2884_v27 = vld [vmem:[%s7717_s2] sm:$0xff] }
 0x159   : > { %v752_v49 = vmul.f32 %v5183_v45, %v3560_v47  ;;  %v618_v22 = vmul.f32 %v5183_v45, %v588_v58  ;;  %3786 = vmatprep.subr.mxu0 %v2884_v27  ;;  %3825 = vmatprep.subr.mxu1 %v2884_v27 }
 0x15a   : > { %7910 = vst [vmem:[#allocation45_spill] sm:$0xff] %v5385_v2  ;;  %v1961_v36 = vmul.f32 %v5385_v2, %v5385_v2  ;;  %1259 = vadd.xlane.f32.xlu1 %v1258_v24  ;;  %1223 = vadd.xlane.f32.xlu0 %v1222_v55 }
 0x15b   : > { %v961_v33 = vpop.xlane.xlu1 %960  ;;  %v925_v7 = vpop.xlane.xlu0 %924  ;;  %v687_v8 = vsel %vm620_vm0, %v618_v22, 0.0  ;;  %3787 = vmatpush3.msra.mxu0 %v2884_v27  ;;  %3827 = vmatpush3.msra.mxu1 %v2884_v27  ;;  %v3618_v22 = vld [vmem:[%s4721_s7 + $0x2e0] sm:$0xff] }
 0x15c   : > { %v5399_v3 = vadd.f32 %v1961_v36, %v5271_v53  ;;  %v5401_v24 = vmax.f32 %v961_v33, 0.0  ;;  %v5403_v55 = vmax.f32 %v925_v7, 0.0  ;;  %v796_v36 = vsel %vm620_vm0, %v752_v49, 0.0  ;;  %v3652_v49 = vld [vmem:[%s4721_s7 + $0x3f0] sm:$0xff] }
 0x15d   : > { %v1040_v33 = vmul.f32 %v5183_v45, %v3606_v1  ;;  %v764_v7 = vmul.f32 %v5183_v45, %v3572_v23 }
 0x15e   : > { %7911 = vst [vmem:[#allocation46_spill] sm:$0xff] %v5401_v24  ;;  %7912 = vst [vmem:[#allocation47_spill] sm:$0xff] %v5403_v55  ;;  %v1820_v63 = vmul.f32 %v5401_v24, %v5401_v24  ;;  %v1808_v53 = vmul.f32 %v5403_v55, %v5403_v55  ;;  %1543 = vadd.xlane.f32.xlu1 %v1542_v38  ;;  %1507 = vadd.xlane.f32.xlu0 %v1506_v10 }
 0x15f   : > { %v1245_v47 = vpop.xlane.xlu1 %1244  ;;  %v1209_v58 = vpop.xlane.xlu0 %1208  ;;  %v1080_v27 = vsel %vm620_vm0, %v1040_v33, 0.0 }
 0x160   : > { %v5419_v24 = vadd.f32 %v1820_v63, %v5313_v0  ;;  %v5422_v55 = vadd.f32 %v1808_v53, %v5290_v48  ;;  %v5424_v38 = vmax.f32 %v1245_v47, 0.0  ;;  %v5426_v10 = vmax.f32 %v1209_v58, 0.0 }
 0x161   : > { %v832_v63 = vsel %vm620_vm0, %v764_v7, 0.0  ;;  %v1328_v53 = vmul.f32 %v5183_v45, %v3652_v49  ;;  %v1052_v47 = vmul.f32 %v5183_v45, %v3618_v22 }
 0x162   : > { %7913 = vst [vmem:[#allocation48_spill] sm:$0xff] %v5424_v38  ;;  %7914 = vst [vmem:[#allocation49_spill] sm:$0xff] %v5426_v10  ;;  %v1914_v1 = vmul.f32 %v5424_v38, %v5424_v38  ;;  %v1902_v23 = vmul.f32 %v5426_v10, %v5426_v10  ;;  %797 = vadd.xlane.f32.xlu1 %v796_v36  ;;  %688 = vadd.xlane.f32.xlu0 %v687_v8  ;;  %v3698_v8 = vld [vmem:[%s4721_s7 + $0x560] sm:$0xff]  ;;  %v3664_v38 = vld [vmem:[%s4721_s7 + $0x450] sm:$0xff] }
 0x163   : > { %v5434_v0 = vpop.xlane.xlu1 %1528  ;;  %v5436_v48 = vpop.xlane.xlu0 %1492  ;;  %v1364_v7 = vsel %vm620_vm0, %v1328_v53, 0.0  ;;  %v1116_v49 = vsel %vm620_vm0, %v1052_v47, 0.0  ;;  %v1616_v57 = vmul.f32 %v5183_v45, %v3698_v8  ;;  %v1340_v22 = vmul.f32 %v5183_v45, %v3664_v38 }
 0x164   : > { %v5443_v58 = vadd.f32 %v1914_v1, %v5328_v44  ;;  %v5446_v36 = vadd.f32 %v1902_v23, %v5311_v54  ;;  %v589_v54 = vld [vmem:[%s4721_s7 + $0xb8] sm:$0xff]  ;;  %v3710_v1 = vld [vmem:[%s4721_s7 + $0x5c0] sm:$0xff] }
 0x165   : > { %v1400_v53 = vsel %vm620_vm0, %v1340_v22, 0.0  ;;  %v619_v47 = vmul.f32 %v5183_v45, %v589_v54  ;;  %v1628_v8 = vmul.f32 %v5183_v45, %v3710_v1 }
 0x166   : > { %1081 = vadd.xlane.f32.xlu1 %v1080_v27  ;;  %833 = vadd.xlane.f32.xlu0 %v832_v63 }
 0x167   : > { %v964_v10 = vpop.xlane.xlu1 %963  ;;  %v928_v33 = vpop.xlane.xlu0 %927 }
 0x168   : > { %v5454_v6 = vmax.f32 %v964_v10, 0.0  ;;  %v5456_v44 = vmax.f32 %v928_v33, 0.0  ;;  %v1648_v10 = vsel %vm620_vm0, %v1616_v57, 0.0  ;;  %v3561_v57 = vld [vmem:[%s4721_s7 + $0x118] sm:$0xff] }
 0x16a   : > { %7915 = vst [vmem:[#allocation50_spill] sm:$0xff] %v5454_v6  ;;  %7916 = vst [vmem:[#allocation51_spill] sm:$0xff] %v5456_v44  ;;  %v1821_v23 = vmul.f32 %v5454_v6, %v5454_v6  ;;  %v1809_v27 = vmul.f32 %v5456_v44, %v5456_v44  ;;  %1365 = vadd.xlane.f32.xlu1 %v1364_v7  ;;  %1117 = vadd.xlane.f32.xlu0 %v1116_v49  ;;  %v3573_v6 = vld [vmem:[%s4721_s7 + $0x178] sm:$0xff] }
 0x16b   : > { %v1248_v63 = vpop.xlane.xlu1 %1247  ;;  %v1212_v38 = vpop.xlane.xlu0 %1211 }
 0x16c   : > { %v5469_v33 = vadd.f32 %v1821_v23, %v5359_v50  ;;  %v5472_v44 = vadd.f32 %v1809_v27, %v5361_v15  ;;  %v5474_v7 = vmax.f32 %v1248_v63, 0.0  ;;  %v5476_v49 = vmax.f32 %v1212_v38, 0.0  ;;  %v3665_v50 = vld [vmem:[%s4721_s7 + $0x458] sm:$0xff] }
 0x16d   : > { %v3653_v15 = vld [vmem:[%s4721_s7 + $0x3f8] sm:$0xff]  ;;  %v690_v27 = vsel %vm620_vm0, %v619_v47, 0.0  ;;  %v1684_v63 = vsel %vm620_vm0, %v1628_v8, 0.0  ;;  %v765_v38 = vmul.f32 %v5183_v45, %v3573_v6  ;;  %v1341_v47 = vmul.f32 %v5183_v45, %v3665_v50 }
 0x16e   : > { %7917 = vst [vmem:[#allocation52_spill] sm:$0xff] %v5474_v7  ;;  %7918 = vst [vmem:[#allocation53_spill] sm:$0xff] %v5476_v49  ;;  %v1915_v22 = vmul.f32 %v5474_v7, %v5474_v7  ;;  %v1903_v54 = vmul.f32 %v5476_v49, %v5476_v49  ;;  %1649 = vadd.xlane.f32.xlu1 %v1648_v10  ;;  %1401 = vadd.xlane.f32.xlu0 %v1400_v53  ;;  %v5508_v6 = vmax.f32 %v4969_v60, 0.0 }
 0x16f   : > { %v5488_v1 = vpop.xlane.xlu1 %1531  ;;  %v5490_v23 = vpop.xlane.xlu0 %1495  ;;  %v753_v7 = vmul.f32 %v5183_v45, %v3561_v57  ;;  %v1053_v53 = vmul.f32 %v5183_v45, %v3619_v56  ;;  %v1041_v49 = vmul.f32 %v5183_v45, %v3607_v41  ;;  %v1329_v8 = vmul.f32 %v5183_v45, %v3653_v15  ;;  %v3596_v15 = vld [vmem:[%s4721_s7 + $0x230] sm:$0xff] }
 0x170   : > { %v5497_v13 = vadd.f32 %v1915_v22, %v5380_v20  ;;  %v5500_v10 = vadd.f32 %v1903_v54, %v5383_v17  ;;  %7919 = vst [vmem:[#allocation54_spill] sm:$0xff] %v5508_v6  ;;  %v5511_v20 = vmax.f32 %v4971_v61, 0.0  ;;  %v3699_v17 = vld [vmem:[%s4721_s7 + $0x568] sm:$0xff]  ;;  %v835_v41 = vsel %vm620_vm0, %v765_v38, 0.0 }
 0x171   : > { %v799_v22 = vsel %vm620_vm0, %v753_v7, 0.0  ;;  %v1629_v54 = vmul.f32 %v5183_v45, %v3711_v14  ;;  %v1119_v60 = vsel %vm620_vm0, %v1053_v53, 0.0  ;;  %v1083_v61 = vsel %vm620_vm0, %v1041_v49, 0.0 }
 0x172   : > { %7920 = vst [vmem:[#allocation55_spill] sm:$0xff] %v5511_v20  ;;  %691 = vadd.xlane.f32.xlu1 %v690_v27  ;;  %1685 = vadd.xlane.f32.xlu0 %v1684_v63  ;;  %v3584_v27 = vld [vmem:[%s4721_s7 + $0x1d0] sm:$0xff]  ;;  %v5524_v63 = vmax.f32 %v4979_v4, 0.0  ;;  %v1403_v2 = vsel %vm620_vm0, %v1341_v47, 0.0  ;;  %v1367_v38 = vsel %vm620_vm0, %v1329_v8, 0.0  ;;  %v1617_v7 = vmul.f32 %v5183_v45, %v3699_v17  ;;  %v3642_v4 = vld [vmem:[%s4721_s7 + $0x3a0] sm:$0xff] }
 0x173   : > { %v786_v57 = vpop.xlane.xlu1 %785  ;;  %v677_v56 = vpop.xlane.xlu0 %676  ;;  %v5531_v14 = vmul.f32 %v5508_v6, %v5508_v6  ;;  %v1738_v53 = vmul.f32 %v5511_v20, %v5511_v20  ;;  %v3630_v47 = vld [vmem:[%s4721_s7 + $0x340] sm:$0xff]  ;;  %v5542_v8 = vmax.f32 %v4981_v5, 0.0  ;;  %v5545_v51 = vsel %vm620_vm0, %v1629_v54, 0.0 }
 0x174   : > { %v5517_v50 = vmax.f32 %v786_v57, 0.0  ;;  %7922 = vst [vmem:[#allocation57_spill] sm:$0xff] %v5524_v63  ;;  %v5537_v57 = vmax.f32 %v677_v56, 0.0  ;;  %v909_v20 = vmul.f32 %v5183_v45, %v3596_v15  ;;  %v5550_v56 = vmax.f32 %v5304_v31, 0.0 }
 0x175   : > { %7924 = vst [vmem:[#allocation59_spill] sm:$0xff] %v5542_v8  ;;  %v5562_v54 = vmul.f32 %v5524_v63, %v5524_v63  ;;  %v1651_v15 = vsel %vm620_vm0, %v1617_v7, 0.0  ;;  %v1185_v31 = vmul.f32 %v5183_v45, %v3630_v47  ;;  %v3597_v7 = vld [vmem:[%s4721_s7 + $0x238] sm:$0xff] }
 0x176   : > { %7921 = vst [vmem:[#allocation56_spill] sm:$0xff] %v5517_v50  ;;  %v1762_v49 = vmul.f32 %v5517_v50, %v5517_v50  ;;  %7923 = vst [vmem:[#allocation58_spill] sm:$0xff] %v5537_v57  ;;  %836 = vadd.xlane.f32.xlu1 %v835_v41  ;;  %800 = vadd.xlane.f32.xlu0 %v799_v22  ;;  %v897_v50 = vmul.f32 %v5183_v45, %v3584_v27 }
 0x177   : > { %v1070_v17 = vpop.xlane.xlu1 %1069  ;;  %v822_v6 = vpop.xlane.xlu0 %821  ;;  %7927 = vst [vmem:[#allocation62_spill] sm:$0xff] %v5562_v54  ;;  %v1197_v27 = vmul.f32 %v5183_v45, %v3642_v4  ;;  %v3585_v4 = vld [vmem:[%s4721_s7 + $0x1d8] sm:$0xff]  ;;  %v910_v34 = vmul.f32 %v5183_v45, %v3597_v7 }
 0x178   : > { %v5552_v41 = vadd.f32 %v1762_v49, %v1738_v53  ;;  %v5554_v22 = vmax.f32 %v1070_v17, 0.0  ;;  %v5556_v5 = vmax.f32 %v822_v6, 0.0  ;;  %v5568_v53 = vmax.f32 %v5436_v48, 0.0 }
 0x179   : > { %v1750_v6 = vmul.f32 %v5537_v57, %v5537_v57  ;;  %v5581_v48 = vsel %vm620_vm0, %v909_v20, 0.0  ;;  %v5584_v57 = vsel %vm620_vm0, %v897_v50, 0.0  ;;  %v3631_v20 = vld [vmem:[%s4721_s7 + $0x348] sm:$0xff]  ;;  %v5600_v50 = vmax.f32 %v5321_v16, 0.0 }
 0x17a   : > { %7925 = vst [vmem:[#allocation60_spill] sm:$0xff] %v5554_v22  ;;  %7926 = vst [vmem:[#allocation61_spill] sm:$0xff] %v5556_v5  ;;  %v1856_v49 = vmul.f32 %v5554_v22, %v5554_v22  ;;  %v1774_v17 = vmul.f32 %v5556_v5, %v5556_v5  ;;  %1120 = vadd.xlane.f32.xlu1 %v1119_v60  ;;  %1084 = vadd.xlane.f32.xlu0 %v1083_v61  ;;  %v3643_v5 = vld [vmem:[%s4721_s7 + $0x3a8] sm:$0xff]  ;;  %v5613_v16 = vsel %vm620_vm0, %v1185_v31, 0.0  ;;  %v3620_v31 = vld [vmem:[%s4721_s7 + $0x2f0] sm:$0xff] }
 0x17b   : > { %7928 = vst [vmem:[#allocation63_spill] sm:$0xff] %v5568_v53  ;;  %v5578_v63 = vpop.xlane.xlu1 %1353  ;;  %v1106_v47 = vpop.xlane.xlu0 %1105  ;;  %v1485_v22 = vmul.f32 %v5183_v45, %v3688_v25  ;;  %v1948_v60 = vmul.f32 %v5550_v56, %v5550_v56  ;;  %7930 = vst [vmem:[#allocation65_spill] sm:$0xff] %v5600_v50  ;;  %v5603_v25 = vsel %vm620_vm0, %v1197_v27, 0.0  ;;  %v898_v11 = vmul.f32 %v5183_v45, %v3585_v4 }
 0x17c   : > { %v5592_v61 = vadd.f32 %v1856_v49, %v5422_v55  ;;  %v5594_v46 = vadd.f32 %v1774_v17, %v1750_v6  ;;  %v5596_v54 = vmax.f32 %v1106_v47, 0.0  ;;  %v1996_v55 = vmul.f32 %v5568_v53, %v5568_v53  ;;  %v3677_v49 = vld [vmem:[%s4721_s7 + $0x4b8] sm:$0xff] }
 0x17d   : > { %v1198_v27 = vmul.f32 %v5183_v45, %v3643_v5  ;;  %v5618_v17 = vmax.f32 %v5434_v0, 0.0  ;;  %v5623_v47 = vsel %vm620_vm0, %v1485_v22, 0.0  ;;  %v3666_v22 = vld [vmem:[%s4721_s7 + $0x460] sm:$0xff]  ;;  %v5642_v43 = vsel %vm620_vm0, %v910_v34, 0.0 }
 0x17e   : > { %7929 = vst [vmem:[#allocation64_spill] sm:$0xff] %v5596_v54  ;;  %v1868_v6 = vmul.f32 %v5596_v54, %v5596_v54  ;;  %1404 = vadd.xlane.f32.xlu1 %v1403_v2  ;;  %1368 = vadd.xlane.f32.xlu0 %v1367_v38  ;;  %v5626_v2 = vsel %vm620_vm0, %v1473_v59, 0.0  ;;  %v1186_v38 = vmul.f32 %v5183_v45, %v3631_v20  ;;  %v5645_v20 = vsel %vm620_vm0, %v898_v11, 0.0 }
 0x17f   : > { %7931 = vst [vmem:[#allocation66_spill] sm:$0xff] %v5618_v17  ;;  %v1638_v7 = vpop.xlane.xlu1 %1637  ;;  %v5620_v4 = vpop.xlane.xlu0 %1389  ;;  %v1972_v54 = vadd.f32 %v1948_v60, %v5231_v32  ;;  %v1960_v59 = vmul.f32 %v5600_v50, %v5600_v50  ;;  %v1474_v32 = vmul.f32 %v5183_v45, %v3677_v49  ;;  %v5653_v26 = vsel %vm620_vm0, %v1198_v27, 0.0  ;;  %v3700_v50 = vld [vmem:[%s4721_s7 + $0x570] sm:$0xff] }
 0x180   : > { %v5632_v5 = vadd.f32 %v1868_v6, %v5419_v24  ;;  %v5634_v0 = vmax.f32 %v1638_v7, 0.0  ;;  %v3654_v24 = vld [vmem:[%s4721_s7 + $0x400] sm:$0xff]  ;;  %v1054_v34 = vmul.f32 %v5183_v45, %v3620_v31  ;;  %v3712_v7 = vld [vmem:[%s4721_s7 + $0x5d0] sm:$0xff]  ;;  %v2008_v11 = vmul.f32 %v5618_v17, %v5618_v17 }
 0x181   : > { %v2020_v60 = vadd.f32 %v1996_v55, %v1972_v54  ;;  %v5661_v54 = vsel %vm620_vm0, %v1186_v38, 0.0  ;;  %v1042_v55 = vmul.f32 %v5183_v45, %v3608_v62  ;;  %v5671_v31 = vsel %vm620_vm0, %v1486_v35, 0.0 }
 0x182   : > { %v2044_v6 = vmul.f32 %v5634_v0, %v5634_v0  ;;  %1688 = vadd.xlane.f32.xlu1 %v5545_v51  ;;  %1652 = vadd.xlane.f32.xlu0 %v1651_v15  ;;  %v1342_v51 = vmul.f32 %v5183_v45, %v3666_v22  ;;  %v3621_v15 = vld [vmem:[%s4721_s7 + $0x2f8] sm:$0xff]  ;;  %v1330_v17 = vmul.f32 %v5183_v45, %v3654_v24  ;;  %v5676_v38 = vsel %vm620_vm0, %v1474_v32, 0.0 }
 0x183   : > { %v680_v49 = vpop.xlane.xlu1 %679  ;;  %v1674_v28 = vpop.xlane.xlu0 %1673  ;;  %v1984_v18 = vadd.f32 %v1960_v59, %v5228_v9  ;;  %v1630_v62 = vmul.f32 %v5183_v45, %v3712_v7  ;;  %v1618_v22 = vmul.f32 %v5183_v45, %v3700_v50  ;;  %v5686_v35 = vsel %vm620_vm0, %v1054_v34, 0.0  ;;  %v3609_v9 = vld [vmem:[%s4721_s7 + $0x298] sm:$0xff] }
 0x184   : > { %v5666_v27 = vadd.f32 %v2044_v6, %v2020_v60  ;;  %v5668_v37 = vmax.f32 %v1674_v28, 0.0  ;;  %v5681_v60 = vmax.f32 %v680_v49, 0.0  ;;  %v1055_v28 = vmul.f32 %v5183_v45, %v3621_v15  ;;  %v3655_v49 = vld [vmem:[%s4721_s7 + $0x408] sm:$0xff] }
 0x185   : > { %v2032_v59 = vadd.f32 %v2008_v11, %v1984_v18  ;;  %v5693_v6 = vsel %vm620_vm0, %v1042_v55, 0.0  ;;  %v5707_v18 = vsel %vm620_vm0, %v1330_v17, 0.0  ;;  %v3667_v11 = vld [vmem:[%s4721_s7 + $0x468] sm:$0xff]  ;;  %v3713_v55 = vld [vmem:[%s4721_s7 + $0x5d8] sm:$0xff] }
 0x186   : > { %7932 = vst [vmem:[#allocation67_spill] sm:$0xff] %v5668_v37  ;;  %3984 = vrsqrt.f32 %v5666_v27  ;;  %7933 = vst [vmem:[#allocation68_spill] sm:$0xff] %v5681_v60  ;;  %978 = vadd.xlane.f32.xlu1 %v5581_v48  ;;  %942 = vadd.xlane.f32.xlu0 %v5584_v57  ;;  %v2056_v50 = vmul.f32 %v5668_v37, %v5668_v37  ;;  %v5696_v48 = vsel %vm620_vm0, %v1342_v51, 0.0  ;;  %v5715_v51 = vsel %vm620_vm0, %v1630_v62, 0.0 }
 0x187   : > { %v825_v32 = vpop.xlane.xlu1 %824  ;;  %v789_v24 = vpop.xlane.xlu0 %788  ;;  %v5700_v57 = vmul.f32 %v5542_v8, %v5542_v8  ;;  %v5718_v8 = vsel %vm620_vm0, %v1618_v22, 0.0  ;;  %v5730_v62 = vsel %vm620_vm0, %v1055_v28, 0.0  ;;  %v3701_v22 = vld [vmem:[%s4721_s7 + $0x578] sm:$0xff]  ;;  %v1631_v39 = vmul.f32 %v5183_v45, %v3713_v55 }
 0x188   : > { %v5702_v34 = vmax.f32 %v825_v32, 0.0  ;;  %v5704_v7 = vmax.f32 %v789_v24, 0.0  ;;  %v5712_v15 = vadd.f32 %v2056_v50, %v2032_v59  ;;  %v1043_v32 = vmul.f32 %v5183_v45, %v3609_v9  ;;  %v3644_v59 = vld [vmem:[%s4721_s7 + $0x3b0] sm:$0xff] }
 0x189   : > { %7934 = vst [vmem:[#allocation69_spill] sm:$0xff] %v5700_v57  ;;  %v1751_v24 = vmul.f32 %v5681_v60, %v5681_v60  ;;  %v1343_v60 = vmul.f32 %v5183_v45, %v3667_v11  ;;  %v5749_v57 = vmax.f32 %v5373_v52, 0.0  ;;  %v1199_v55 = vmul.f32 %v5183_v45, %v3644_v59 }
 0x18a   : > { %7935 = vst [vmem:[#allocation70_spill] sm:$0xff] %v5702_v34  ;;  %7936 = vst [vmem:[#allocation71_spill] sm:$0xff] %v5704_v7  ;;  %v1775_v17 = vmul.f32 %v5702_v34, %v5702_v34  ;;  %v1763_v37 = vmul.f32 %v5704_v7, %v5704_v7  ;;  %1262 = vadd.xlane.f32.xlu1 %v5603_v25  ;;  %1226 = vadd.xlane.f32.xlu0 %v5613_v16  ;;  %3986 = vrsqrt.f32 %v5712_v15  ;;  %v3632_v7 = vld [vmem:[%s4721_s7 + $0x350] sm:$0xff] }
 0x18b   : > { %v1109_v9 = vpop.xlane.xlu1 %1108  ;;  %v1073_v50 = vpop.xlane.xlu0 %1072  ;;  %v1331_v34 = vmul.f32 %v5183_v45, %v3655_v49  ;;  %7939 = vst [vmem:[#allocation74_spill] sm:$0xff] %v5749_v57  ;;  %v5752_v11 = vsel %vm620_vm0, %v1043_v32, 0.0  ;;  %v1619_v49 = vmul.f32 %v5183_v45, %v3701_v22  ;;  %v1187_v52 = vmul.f32 %v5183_v45, %v3632_v7  ;;  %v3690_v32 = vld [vmem:[%s4721_s7 + $0x520] sm:$0xff] }
 0x18c   : > { %v5739_v25 = vadd.f32 %v1775_v17, %v1751_v24  ;;  %v5742_v16 = vadd.f32 %v1763_v37, %v5531_v14  ;;  %v5744_v28 = vmax.f32 %v1109_v9, 0.0  ;;  %v5746_v30 = vmax.f32 %v1073_v50, 0.0 }
 0x18d   : > { %v5757_v24 = vmax.f32 %v5488_v1, 0.0  ;;  %v5768_v17 = vmax.f32 %v5490_v23, 0.0  ;;  %v5771_v59 = vsel %vm620_vm0, %v1343_v60, 0.0  ;;  %v5774_v9 = vsel %vm620_vm0, %v1331_v34, 0.0  ;;  %v3633_v60 = vld [vmem:[%s4721_s7 + $0x358] sm:$0xff] }
 0x18e   : > { %7937 = vst [vmem:[#allocation72_spill] sm:$0xff] %v5744_v28  ;;  %7938 = vst [vmem:[#allocation73_spill] sm:$0xff] %v5746_v30  ;;  %v1869_v37 = vmul.f32 %v5744_v28, %v5744_v28  ;;  %v1857_v14 = vmul.f32 %v5746_v30, %v5746_v30  ;;  %1546 = vadd.xlane.f32.xlu1 %v5623_v47  ;;  %1510 = vadd.xlane.f32.xlu0 %v5626_v2  ;;  %v5777_v50 = vsel %vm620_vm0, %v1631_v39, 0.0  ;;  %v3678_v30 = vld [vmem:[%s4721_s7 + $0x4c0] sm:$0xff]  ;;  %v3645_v28 = vld [vmem:[%s4721_s7 + $0x3b8] sm:$0xff] }
 0x18f   : > { %7940 = vst [vmem:[#allocation75_spill] sm:$0xff] %v5757_v24  ;;  %7941 = vst [vmem:[#allocation76_spill] sm:$0xff] %v5768_v17  ;;  %v1393_v1 = vpop.xlane.xlu1 %1392  ;;  %v1357_v22 = vpop.xlane.xlu0 %1356  ;;  %v1949_v34 = vmul.f32 %v5749_v57, %v5749_v57  ;;  %v5795_v53 = vsel %vm620_vm0, %v1619_v49, 0.0  ;;  %v5798_v39 = vsel %vm620_vm0, %v1199_v55, 0.0  ;;  %v5810_v49 = vsel %vm620_vm0, %v1187_v52, 0.0 }
 0x190   : > { %v5780_v47 = vadd.f32 %v1869_v37, %v5469_v33  ;;  %v5783_v2 = vadd.f32 %v1857_v14, %v5472_v44  ;;  %v5785_v7 = vmax.f32 %v1393_v1, 0.0  ;;  %v5787_v23 = vmax.f32 %v1357_v22, 0.0 }
 0x191   : > { %v1487_v33 = vmul.f32 %v5183_v45, %v3690_v32  ;;  %v2009_v44 = vmul.f32 %v5757_v24, %v5757_v24  ;;  %v1997_v32 = vmul.f32 %v5768_v17, %v5768_v17  ;;  %v1475_v24 = vmul.f32 %v5183_v45, %v3678_v30 }
 0x192   : > { %7942 = vst [vmem:[#allocation77_spill] sm:$0xff] %v5785_v7  ;;  %7943 = vst [vmem:[#allocation78_spill] sm:$0xff] %v5787_v23  ;;  %v1963_v37 = vmul.f32 %v5785_v7, %v5785_v7  ;;  %v1951_v14 = vmul.f32 %v5787_v23, %v5787_v23  ;;  %981 = vadd.xlane.f32.xlu1 %v5642_v43  ;;  %945 = vadd.xlane.f32.xlu0 %v5645_v20  ;;  %vm2094_vm1 = vcmp.eq.f32.partialorder %v5666_v27, inf }
 0x193   : > { %v3985_v55 = vpop.eup %3984  ;;  %v1677_v1 = vpop.xlane.xlu1 %1676  ;;  %v1200_v7 = vmul.f32 %v5183_v45, %v3645_v28  ;;  %v1188_v57 = vmul.f32 %v5183_v45, %v3633_v60  ;;  %v1973_v17 = vadd.f32 %v1949_v34, %v5274_v21  ;;  %v2097_v30 = vand.u32 2147483648, %v5666_v27 }
 0x194   : > { %v1641_v22 = vpop.xlane.xlu0 %1640  ;;  %v2093_v23 = vmul.f32 %v3985_v55, %v5666_v27  ;;  %v5819_v43 = vadd.f32 %v1963_v37, %v5497_v13  ;;  %v5822_v20 = vadd.f32 %v1951_v14, %v5500_v10  ;;  %v5824_v52 = vmax.f32 %v1677_v1, 0.0 }
 0x195   : > { %v5829_v28 = vmax.f32 %v1641_v22, 0.0  ;;  %v2033_v60 = vadd.f32 %v2009_v44, %v5399_v3  ;;  %vm2096_vm2 = vcmp.eq.f32.partialorder %v5666_v27, 0.0  ;;  %v2021_v21 = vadd.f32 %v1997_v32, %v1973_v17  ;;  %v3668_v17 = vld [vmem:[%s4721_s7 + $0x470] sm:$0xff] }
 0x196   : > { %7944 = vst [vmem:[#allocation79_spill] sm:$0xff] %v5822_v20  ;;  %7945 = vst [vmem:[#allocation80_spill] sm:$0xff] %v5824_v52  ;;  %v2095_v55 = vsel %vm2094_vm1, %v5666_v27, %v2093_v23  ;;  %v2057_v13 = vmul.f32 %v5824_v52, %v5824_v52  ;;  %1265 = vadd.xlane.f32.xlu1 %v5653_v26  ;;  %1229 = vadd.xlane.f32.xlu0 %v5661_v54  ;;  %v5841_v23 = vsel %vm620_vm0, %v1487_v33, 0.0  ;;  %v3691_v27 = vld [vmem:[%s4721_s7 + $0x528] sm:$0xff] }
 0x197   : > { %7946 = vst [vmem:[#allocation81_spill] sm:$0xff] %v5829_v28  ;;  %v2098_v10 = vsel %vm2096_vm2, %v2097_v30, %v2095_v55  ;;  %v2045_v34 = vmul.f32 %v5829_v28, %v5829_v28  ;;  %v967_v3 = vpop.xlane.xlu1 %966  ;;  %v3987_v37 = vpop.eup %3986  ;;  %v5849_v26 = vsel %vm620_vm0, %v1475_v24, 0.0  ;;  %v3679_v54 = vld [vmem:[%s4721_s7 + $0x4c8] sm:$0xff]  ;;  %v5859_v33 = vsel %vm620_vm0, %v1200_v7, 0.0 }
 0x198   : > { %v931_v44 = vpop.xlane.xlu0 %930  ;;  %v2260_v14 = vmax.f32 %v2098_v10, 1e-12  ;;  %v5844_v1 = vadd.f32 %v2057_v13, %v2033_v60  ;;  %v5846_v22 = vmax.f32 %v967_v3, 0.0  ;;  %v2177_v32 = vmul.f32 %v3987_v37, %v5712_v15  ;;  %v3656_v10 = vld [vmem:[%s4721_s7 + $0x410] sm:$0xff]  ;;  %v3702_v37 = vld [vmem:[%s4721_s7 + $0x580] sm:$0xff]  ;;  %v3703_v52 = vld [vmem:[%s4721_s7 + $0x588] sm:$0xff] }
 0x199   : > { %v5854_v30 = vadd.f32 %v2045_v34, %v2021_v21  ;;  %v5856_v55 = vmax.f32 %v931_v44, 0.0  ;;  %vm2178_vm3 = vcmp.eq.f32.partialorder %v5712_v15, inf  ;;  %v5866_v24 = vsel %vm620_vm0, %v1188_v57, 0.0  ;;  %v5881_v44 = vld [vmem:[%s7716_s1] ss:$0 sm:$0xff] }
 0x19a   : > { %7947 = vst [vmem:[#allocation82_spill] sm:$0xff] %v5846_v22  ;;  %3988 = vrcp.f32 %v2260_v14  ;;  %1549 = vadd.xlane.f32.xlu1 %v5671_v31  ;;  %1513 = vadd.xlane.f32.xlu0 %v5676_v38  ;;  %v1488_v60 = vmul.f32 %v5183_v45, %v3691_v27  ;;  %v2179_v13 = vsel %vm2178_vm3, %v5712_v15, %v2177_v32  ;;  %v3714_v38 = vld [vmem:[%s4721_s7 + $0x5e0] sm:$0xff]  ;;  %v2181_v3 = vand.u32 2147483648, %v5712_v15  ;;  %v3669_v14 = vld [vmem:[%s4721_s7 + $0x478] sm:$0xff] }
 0x19b   : > { %7948 = vst [vmem:[#allocation83_spill] sm:$0xff] %v5856_v55  ;;  %3990 = vrsqrt.f32 %v5844_v1  ;;  %v1251_v7 = vpop.xlane.xlu1 %1250  ;;  %v1476_v34 = vmul.f32 %v5183_v45, %v3679_v54  ;;  %v1344_v31 = vmul.f32 %v5183_v45, %v3668_v17  ;;  %v1822_v57 = vmul.f32 %v5846_v22, %v5846_v22  ;;  %v3657_v32 = vld [vmem:[%s4721_s7 + $0x418] sm:$0xff]  ;;  %v3715_v22 = vld [vmem:[%s4721_s7 + $0x5e8] sm:$0xff] }
 0x19c   : > { %v1215_v21 = vpop.xlane.xlu0 %1214  ;;  %3992 = vrsqrt.f32 %v5854_v30  ;;  %v1332_v27 = vmul.f32 %v5881_v44, %v3656_v10  ;;  %vm2180_vm4 = vcmp.eq.f32.partialorder %v5712_v15, 0.0  ;;  %v1810_v45 = vmul.f32 %v5856_v55, %v5856_v55 }
 0x19d   : > { %v5889_v54 = vmax.f32 %v1251_v7, 0.0  ;;  %v5891_v17 = vmax.f32 %v1215_v21, 0.0  ;;  %v2182_v20 = vsel %vm2180_vm4, %v2181_v3, %v2179_v13  ;;  %v5897_v28 = vadd.f32 %v1822_v57, %v5594_v46  ;;  %v3692_v7 = vld [vmem:[%s4721_s7 + $0x530] sm:$0xff] }
 0x19e   : > { %1123 = vadd.xlane.f32.xlu1 %v5686_v35  ;;  %1087 = vadd.xlane.f32.xlu0 %v5693_v6  ;;  %v5902_v15 = vsel %vm620_vm0, %v1488_v60, 0.0  ;;  %v1632_v10 = vmul.f32 %v5881_v44, %v3714_v38  ;;  %v5907_v21 = vadd.f32 %v1810_v45, %v5552_v41  ;;  %v1620_v6 = vmul.f32 %v5881_v44, %v3702_v37  ;;  %v3680_v60 = vld [vmem:[%s4721_s7 + $0x4d0] sm:$0xff] }
 0x19f   : > { %7949 = vst [vmem:[#allocation84_spill] sm:$0xff] %v5889_v54  ;;  %7950 = vst [vmem:[#allocation85_spill] sm:$0xff] %v5891_v17  ;;  %v1916_v55 = vmul.f32 %v5889_v54, %v5889_v54  ;;  %v1904_v46 = vmul.f32 %v5891_v17, %v5891_v17  ;;  %v5913_v13 = vpop.xlane.xlu1 %1534  ;;  %v1345_v3 = vmul.f32 %v5881_v44, %v3669_v14  ;;  %v2272_v45 = vmax.f32 %v2182_v20, 1e-12 }
 0x1a0   : > { %7951 = vst [vmem:[#allocation86_spill] sm:$0xff] %v5902_v15  ;;  %v5915_v35 = vpop.xlane.xlu0 %1498  ;;  %v1333_v38 = vmul.f32 %v5881_v44, %v3657_v32  ;;  %v1633_v41 = vmul.f32 %v5881_v44, %v3715_v22  ;;  %v1621_v57 = vmul.f32 %v5881_v44, %v3703_v52  ;;  %v1489_v15 = vmul.f32 %v5881_v44, %v3692_v7 }
 0x1a1   : > { %v5924_v54 = vadd.f32 %v1916_v55, %v5632_v5  ;;  %v5927_v17 = vadd.f32 %v1904_v46, %v5592_v61  ;;  %v5933_v37 = vsel %vm620_vm0, %v1476_v34, 0.0  ;;  %v5936_v52 = vsel %vm620_vm0, %v1344_v31, 0.0  ;;  %v3693_v31 = vld [vmem:[%s4721_s7 + $0x538] sm:$0xff] }
 0x1a2   : > { %1407 = vadd.xlane.f32.xlu1 %v5696_v48  ;;  %1371 = vadd.xlane.f32.xlu0 %v5707_v18  ;;  %v5939_v20 = vsel %vm620_vm0, %v1332_v27, 0.0  ;;  %v1477_v5 = vmul.f32 %v5881_v44, %v3680_v60  ;;  %v5943_v61 = vmax.f32 %v5578_v63, 0.0  ;;  %v5946_v22 = vmax.f32 %v5620_v4, 0.0  ;;  %v3681_v4 = vld [vmem:[%s4721_s7 + $0x4d8] sm:$0xff] }
 0x1a3   : > { %7952 = vst [vmem:[#allocation87_spill] sm:$0xff] %v5927_v17  ;;  %v970_v48 = vpop.xlane.xlu1 %969  ;;  %v5949_v55 = vsel %vm620_vm0, %v1632_v10, 0.0  ;;  %v5952_v34 = vsel %vm620_vm0, %v1620_v6, 0.0  ;;  %v5960_v32 = vsel %vm620_vm0, %v1345_v3, 0.0  ;;  %v5963_v63 = vsel %vm620_vm0, %v1333_v38, 0.0 }
 0x1a4   : > { %7953 = vst [vmem:[#allocation88_spill] sm:$0xff] %v5943_v61  ;;  %7954 = vst [vmem:[#allocation89_spill] sm:$0xff] %v5946_v22  ;;  %v934_v18 = vpop.xlane.xlu0 %933  ;;  %v5955_v14 = vmax.f32 %v970_v48, 0.0  ;;  %3994 = vrcp.f32 %v2272_v45  ;;  %v5967_v7 = vsel %vm620_vm0, %v1633_v41, 0.0  ;;  %v5970_v10 = vsel %vm620_vm0, %v1621_v57, 0.0 }
 0x1a5   : > { %v5957_v27 = vmax.f32 %v934_v18, 0.0  ;;  %v5973_v46 = vsel %vm620_vm0, %v1489_v15, 0.0  ;;  %v5982_v3 = vsel %vm620_vm0, %v1477_v5, 0.0  ;;  %v5985_v38 = vmul.f32 %v5881_v44, %v3693_v31 }
 0x1a6   : > { %7955 = vst [vmem:[#allocation90_spill] sm:$0xff] %v5955_v14  ;;  %v1823_v6 = vmul.f32 %v5955_v14, %v5955_v14  ;;  %1691 = vadd.xlane.f32.xlu1 %v5715_v51  ;;  %1655 = vadd.xlane.f32.xlu0 %v5718_v8  ;;  %v1950_v15 = vmul.f32 %v5943_v61, %v5943_v61  ;;  %vm2185_vm5 = vcmp.eq.f32.partialorder %v5844_v1, inf  ;;  %vm2101_vm6 = vcmp.eq.f32.partialorder %v5854_v30, inf }
 0x1a7   : > { %7956 = vst [vmem:[#allocation91_spill] sm:$0xff] %v5957_v27  ;;  %v1811_v60 = vmul.f32 %v5957_v27, %v5957_v27  ;;  %v5987_v41 = vpop.eup %3988  ;;  %v1962_v57 = vmul.f32 %v5946_v22, %v5946_v22  ;;  %v1254_v45 = vpop.xlane.xlu1 %1253  ;;  %v5995_v8 = vmul.f32 %v5881_v44, %v3681_v4  ;;  %vm2103_vm7 = vcmp.eq.f32.partialorder %v5854_v30, 0.0 }
 0x1a8   : > { %v1218_v51 = vpop.xlane.xlu0 %1217  ;;  %v3991_v5 = vpop.eup %3990  ;;  %v5999_v48 = vadd.f32 %v1823_v6, %v5739_v25  ;;  %v6004_v31 = vmax.f32 %v1254_v45, 0.0  ;;  %v2332_v4 = vmul.f32 %v5987_v41, %v5006_v29  ;;  %v2380_v61 = vmul.f32 %v5987_v41, %v5016_v40 }
 0x1a9   : > { %v6002_v18 = vadd.f32 %v1811_v60, %v5742_v16  ;;  %v3993_v27 = vpop.eup %3992  ;;  %v2184_v14 = vmul.f32 %v3991_v5, %v5844_v1  ;;  %v6007_v22 = vmax.f32 %v1218_v51, 0.0  ;;  %v2452_v6 = vmul.f32 %v5987_v41, %v5057_v19  ;;  %v4083_v5 = vld [vmem:[%s4721_s7 + $0xc0] sm:$0xff] }
 0x1aa   : > { %7957 = vst [vmem:[#allocation92_spill] sm:$0xff] %v6004_v31  ;;  %v2100_v25 = vmul.f32 %v3993_v27, %v5854_v30  ;;  %v1917_v16 = vmul.f32 %v6004_v31, %v6004_v31  ;;  %1126 = vadd.xlane.f32.xlu1 %v5730_v62  ;;  %1090 = vadd.xlane.f32.xlu0 %v5752_v11  ;;  %v2104_v60 = vand.u32 2147483648, %v5854_v30  ;;  %v4082_v27 = vld [vmem:[%s4721_s7] sm:$0xff]  ;;  %v6035_v11 = vmax.f32 %v5913_v13, 0.0 }
 0x1ab   : > { %7958 = vst [vmem:[#allocation93_spill] sm:$0xff] %v6007_v22  ;;  %v1905_v29 = vmul.f32 %v6007_v22, %v6007_v22  ;;  %v1538_v40 = vpop.xlane.xlu1 %1537  ;;  %v2356_v51 = vmul.f32 %v4082_v27, %v2332_v4  ;;  %v2404_v17 = vmul.f32 %v4083_v5, %v2380_v61  ;;  %v2186_v62 = vsel %vm2185_vm5, %v5844_v1, %v2184_v14 }
 0x1ac   : > { %v6024_v45 = vpop.xlane.xlu0 %1501  ;;  %v2102_v19 = vsel %vm2101_vm6, %v5854_v30, %v2100_v25  ;;  %v6038_v22 = vadd.f32 %v1917_v16, %v5780_v47  ;;  %v6041_v31 = vadd.f32 %v1950_v15, %v5446_v36  ;;  %v2188_v61 = vand.u32 2147483648, %v5844_v1  ;;  %v4084_v30 = vld [vmem:[%s4721_s7 + $0x180] sm:$0xff] }
 0x1ad   : > { %v2105_v4 = vsel %vm2103_vm7, %v2104_v60, %v2102_v19  ;;  %v6047_v14 = vadd.f32 %v1905_v29, %v5783_v2  ;;  %v6050_v25 = vadd.f32 %v1962_v57, %v5443_v58  ;;  %vm2187_vm8 = vcmp.eq.f32.partialorder %v5844_v1, 0.0 }
 0x1ae   : > { %v2261_v13 = vmax.f32 %v2105_v4, 1e-12  ;;  %1410 = vadd.xlane.f32.xlu1 %v5771_v59  ;;  %1374 = vadd.xlane.f32.xlu0 %v5774_v9  ;;  %v2428_v36 = vadd.f32 %v2404_v17, %v2356_v51  ;;  %v2189_v47 = vsel %vm2187_vm8, %v2188_v61, %v2186_v62  ;;  %v2476_v60 = vmul.f32 %v4084_v30, %v2452_v6  ;;  %v4085_v6 = vld [vmem:[%s4721_s7 + $0x240] sm:$0xff] }
 0x1af   : > { %v792_v15 = vpop.xlane.xlu1 %791  ;;  %v2524_v2 = vmul.f32 %v5987_v41, %v5108_v12  ;;  %v2596_v58 = vmul.f32 %v5987_v41, %v5215_v42  ;;  %v6062_v1 = vmul.f32 %v6035_v11, %v6035_v11  ;;  %v6065_v59 = vmax.f32 %v5915_v35, 0.0  ;;  %v4086_v4 = vld [vmem:[%s4721_s7 + $0x300] sm:$0xff] }
 0x1b0   : > { %v683_v16 = vpop.xlane.xlu0 %682  ;;  %3996 = vrcp.f32 %v2261_v13  ;;  %v6067_v9 = vmax.f32 %v792_v15, 0.0  ;;  %v2812_v17 = vmul.f32 %v5987_v41, %v5634_v0  ;;  %v2500_v12 = vadd.f32 %v2476_v60, %v2428_v36  ;;  %v7961_v13 = vld [vmem:[#allocation63_spill] sm:$0xff]  ;;  %v4088_v60 = vld [vmem:[%s4721_s7 + $0x480] sm:$0xff] }
 0x1b1   : > { %v6071_v57 = vmax.f32 %v683_v16, 0.0  ;;  %v2548_v29 = vmul.f32 %v4085_v6, %v2524_v2  ;;  %v6074_v42 = vpop.eup %3994  ;;  %v2273_v27 = vmax.f32 %v2189_v47, 1e-12  ;;  %v6076_v51 = vmax.f32 %v1538_v40, 0.0  ;;  %v7962_v47 = vld [vmem:[#allocation69_spill] sm:$0xff]  ;;  %v4087_v16 = vld [vmem:[%s4721_s7 + $0x3c0] sm:$0xff] }
 0x1b2   : > { %7959 = vst [vmem:[#allocation94_spill] sm:$0xff] %v6067_v9  ;;  %v1764_v35 = vmul.f32 %v6067_v9, %v6067_v9  ;;  %1694 = vadd.xlane.f32.xlu1 %v5777_v50  ;;  %1658 = vadd.xlane.f32.xlu0 %v5795_v53  ;;  %v2668_v0 = vmul.f32 %v5987_v41, %v5550_v56  ;;  %v7966_v6 = vld [vmem:[#allocation7_spill] sm:$0xff] }
 0x1b3   : > { %7960 = vst [vmem:[#allocation95_spill] sm:$0xff] %v6071_v57  ;;  %v1752_v5 = vmul.f32 %v6071_v57, %v6071_v57  ;;  %v1076_v62 = vpop.xlane.xlu1 %1075  ;;  %v2572_v61 = vadd.f32 %v2548_v29, %v2500_v12  ;;  %v2620_v40 = vmul.f32 %v4086_v4, %v2596_v58  ;;  %v2740_v36 = vmul.f32 %v5987_v41, %v7961_v13  ;;  %v7965_v12 = vld [vmem:[#allocation6_spill] sm:$0xff]  ;;  %v4090_v13 = vld [vmem:[%s4721_s7 + $0x120] sm:$0xff]  ;;  %v7985_v9 = vld [vmem:[#allocation79_spill] sm:$0xff] }
 0x1b4   : > { %v828_v19 = vpop.xlane.xlu0 %827  ;;  %v6090_v15 = vadd.f32 %v1764_v35, %v7962_v47  ;;  %v6092_v50 = vmax.f32 %v1076_v62, 0.0  ;;  %v2692_v56 = vmul.f32 %v4087_v16, %v2668_v0  ;;  %v2344_v58 = vmul.f32 %v6074_v42, %v7965_v12  ;;  %v7967_v0 = vld [vmem:[#allocation12_spill] sm:$0xff]  ;;  %v7968_v47 = vld [vmem:[#allocation19_spill] sm:$0xff] }
 0x1b5   : > { %v6094_v53 = vmax.f32 %v828_v19, 0.0  ;;  %v2644_v30 = vadd.f32 %v2620_v40, %v2572_v61  ;;  %v2764_v2 = vmul.f32 %v4088_v60, %v2740_v36  ;;  %v2392_v41 = vmul.f32 %v6074_v42, %v7966_v6  ;;  %v7996_v57 = vld [vmem:[#allocation24_spill] sm:$0xff] }
 0x1b6   : > { %7963 = vst [vmem:[#allocation63_spill] sm:$0xff] %v6092_v50  ;;  %3998 = vrcp.f32 %v2273_v27  ;;  %v1858_v29 = vmul.f32 %v6092_v50, %v6092_v50  ;;  %1268 = vadd.xlane.f32.xlu1 %v5798_v39  ;;  %1232 = vadd.xlane.f32.xlu0 %v5810_v49  ;;  %v2464_v62 = vmul.f32 %v6074_v42, %v7967_v0  ;;  %v4089_v27 = vld [vmem:[%s4721_s7 + $0x60] sm:$0xff] }
 0x1b7   : > { %7964 = vst [vmem:[#allocation69_spill] sm:$0xff] %v6094_v53  ;;  %v1776_v35 = vmul.f32 %v6094_v53, %v6094_v53  ;;  %v6110_v19 = vpop.xlane.xlu1 %1359  ;;  %v2716_v4 = vadd.f32 %v2692_v56, %v2644_v30  ;;  %v2368_v40 = vmul.f32 %v4089_v27, %v2344_v58  ;;  %v2416_v36 = vmul.f32 %v4090_v13, %v2392_v41  ;;  %v4091_v56 = vld [vmem:[%s4721_s7 + $0x540] sm:$0xff] }
 0x1b8   : > { %v1112_v61 = vpop.xlane.xlu0 %1111  ;;  %v2536_v16 = vmul.f32 %v6074_v42, %v7968_v47  ;;  %v1998_v39 = vmul.f32 %v6065_v59, %v6065_v59  ;;  %v6119_v49 = vadd.f32 %v1858_v29, %v5907_v21  ;;  %v2836_v30 = vmul.f32 %v4091_v56, %v2812_v17  ;;  %v4092_v41 = vld [vmem:[%s4721_s7 + $0x1e0] sm:$0xff]  ;;  %v3716_v17 = vld [vmem:[%s4721_s7 + $0x5f0] sm:$0xff] }
 0x1b9   : > { %v6121_v60 = vadd.f32 %v1776_v35, %v1752_v5  ;;  %v6123_v12 = vmax.f32 %v1112_v61, 0.0  ;;  %v2788_v6 = vadd.f32 %v2764_v2, %v2716_v4  ;;  %v2440_v58 = vadd.f32 %v2416_v36, %v2368_v40  ;;  %v7970_v21 = vld [vmem:[#allocation28_spill] sm:$0xff]  ;;  %v7971_v36 = vld [vmem:[#allocation65_spill] sm:$0xff] }
 0x1ba   : > { %v2488_v0 = vmul.f32 %v4092_v41, %v2464_v62  ;;  %v2011_v27 = vmul.f32 %v6076_v51, %v6076_v51  ;;  %1552 = vadd.xlane.f32.xlu1 %v5841_v23  ;;  %1516 = vadd.xlane.f32.xlu0 %v5849_v26  ;;  %v2608_v5 = vmul.f32 %v6074_v42, %v7970_v21  ;;  %v6137_v2 = vsel %vm620_vm0, %v5985_v38, 0.0  ;;  %v4093_v4 = vld [vmem:[%s4721_s7 + $0x2a0] sm:$0xff]  ;;  %v7973_v38 = vld [vmem:[#allocation66_spill] sm:$0xff] }
 0x1bb   : > { %7969 = vst [vmem:[#allocation6_spill] sm:$0xff] %v6123_v12  ;;  %v1870_v13 = vmul.f32 %v6123_v12, %v6123_v12  ;;  %v2860_v29 = vadd.f32 %v2836_v30, %v2788_v6  ;;  %v1644_v35 = vpop.xlane.xlu1 %1643  ;;  %v2560_v40 = vmul.f32 %v4093_v4, %v2536_v16  ;;  %v2680_v23 = vmul.f32 %v6074_v42, %v7971_v36  ;;  %v4123_v12 = vld [vmem:[%s4721_s7 + $0x550] sm:$0xff] }
 0x1bc   : > { %v1396_v62 = vpop.xlane.xlu0 %1395  ;;  %v2512_v61 = vadd.f32 %v2488_v0, %v2440_v58  ;;  %v6146_v47 = vmax.f32 %v1644_v35, 0.0  ;;  %v2752_v41 = vmul.f32 %v6074_v42, %v7973_v38  ;;  %v2034_v30 = vadd.f32 %v6062_v1, %v6050_v25  ;;  %v4094_v58 = vld [vmem:[%s4721_s7 + $0x360] sm:$0xff]  ;;  %v7974_v1 = vld [vmem:[#allocation67_spill] sm:$0xff] }
 0x1bd   : > { %v6144_v26 = vadd.f32 %v1870_v13, %v5897_v28  ;;  %v6148_v56 = vmax.f32 %v1396_v62, 0.0  ;;  %v6152_v6 = vpop.eup %3996  ;;  %3788 = vmatprep.mubr.msk.f32.mxu0 %vm620_vm0, %v2860_v29  ;;  %v2632_v0 = vmul.f32 %v4094_v58, %v2608_v5  ;;  %v6159_v28 = vmul.f32 %v5881_v44, %v3716_v17  ;;  %v4095_v29 = vld [vmem:[%s4721_s7 + $0x420] sm:$0xff]  ;;  %v7976_v58 = vld [vmem:[#allocation11_spill] sm:$0xff] }
 0x1be   : > { %v2584_v16 = vadd.f32 %v2560_v40, %v2512_v61  ;;  %v2022_v13 = vadd.f32 %v1998_v39, %v6041_v31  ;;  %v6163_v21 = vmax.f32 %v6024_v45, 0.0  ;;  %v2046_v35 = vmul.f32 %v6146_v47, %v6146_v47  ;;  %1271 = vadd.xlane.f32.xlu1 %v5859_v33  ;;  %1235 = vadd.xlane.f32.xlu0 %v5866_v24  ;;  %v7975_v39 = vld [vmem:[#allocation8_spill] sm:$0xff]  ;;  %v4097_v24 = vld [vmem:[%s4721_s7 + $0x8] sm:$0xff] }
 0x1bf   : > { %7972 = vst [vmem:[#allocation7_spill] sm:$0xff] %v6148_v56  ;;  %v1964_v25 = vmul.f32 %v6148_v56, %v6148_v56  ;;  %v2824_v5 = vmul.f32 %v6074_v42, %v7974_v1  ;;  %v2704_v62 = vmul.f32 %v4095_v29, %v2680_v23  ;;  %v686_v31 = vpop.xlane.xlu1 %685  ;;  %v2333_v61 = vmul.f32 %v6152_v6, %v7975_v39  ;;  %v4096_v42 = vld [vmem:[%s4721_s7 + $0x4e0] sm:$0xff]  ;;  %v7977_v1 = vld [vmem:[#allocation81_spill] sm:$0xff] }
 0x1c0   : > { %v2656_v17 = vadd.f32 %v2632_v0, %v2584_v16  ;;  %v1680_v45 = vpop.xlane.xlu0 %1679  ;;  %v6177_v4 = vadd.f32 %v2011_v27, %v5819_v43  ;;  %v6179_v40 = vadd.f32 %v2046_v35, %v2022_v13  ;;  %v2776_v36 = vmul.f32 %v4096_v42, %v2752_v41  ;;  %v7979_v41 = vld [vmem:[#allocation86_spill] sm:$0xff]  ;;  %v4099_v39 = vld [vmem:[%s4721_s7 + $0xc8] sm:$0xff] }
 0x1c1   : > { %v6182_v33 = vadd.f32 %v1964_v25, %v5924_v54  ;;  %v6185_v23 = vmax.f32 %v1680_v45, 0.0  ;;  %v2357_v16 = vmul.f32 %v4097_v24, %v2333_v61  ;;  %v2381_v0 = vmul.f32 %v6152_v6, %v7976_v58  ;;  %v4098_v25 = vld [vmem:[%s4721_s7 + $0x5a0] sm:$0xff]  ;;  %v7982_v24 = vld [vmem:[#allocation14_spill] sm:$0xff] }
 0x1c2   : > { %v2728_v38 = vadd.f32 %v2704_v62, %v2656_v17  ;;  %v2813_v43 = vmul.f32 %v6152_v6, %v7977_v1  ;;  %v1999_v27 = vmul.f32 %v6163_v21, %v6163_v21  ;;  %4000 = vrsqrt.f32 %v6179_v40  ;;  %1555 = vadd.xlane.f32.xlu1 %v7979_v41  ;;  %1519 = vadd.xlane.f32.xlu0 %v5933_v37  ;;  %v7984_v41 = vld [vmem:[#allocation32_spill] sm:$0xff] }
 0x1c3   : > { %v6195_v54 = vmax.f32 %v686_v31, 0.0  ;;  %v6198_v13 = vpop.eup %3998  ;;  %v2848_v17 = vmul.f32 %v4098_v25, %v2824_v5  ;;  %v2058_v29 = vmul.f32 %v6185_v23, %v6185_v23  ;;  %v831_v62 = vpop.xlane.xlu1 %830  ;;  %v2405_v61 = vmul.f32 %v4099_v39, %v2381_v0 }
 0x1c4   : > { %v2800_v35 = vadd.f32 %v2776_v36, %v2728_v38  ;;  %v795_v45 = vpop.xlane.xlu0 %794  ;;  %v6205_v42 = vmax.f32 %v831_v62, 0.0  ;;  %v2453_v58 = vmul.f32 %v6152_v6, %v7982_v24  ;;  %v7983_v36 = vld [vmem:[#allocation25_spill] sm:$0xff]  ;;  %v2597_v25 = vmul.f32 %v6152_v6, %v7984_v41 }
 0x1c5   : > { %7978 = vst [vmem:[#allocation12_spill] sm:$0xff] %v6195_v54  ;;  %v6207_v31 = vmax.f32 %v795_v45, 0.0  ;;  %v2525_v5 = vmul.f32 %v6152_v6, %v7983_v36  ;;  %v6213_v1 = vadd.f32 %v2058_v29, %v2034_v30  ;;  %v2429_v37 = vadd.f32 %v2405_v61, %v2357_v16  ;;  %v7986_v30 = vld [vmem:[#allocation80_spill] sm:$0xff]  ;;  %v4101_v29 = vld [vmem:[%s4721_s7 + $0x188] sm:$0xff] }
 0x1c6   : > { %7980 = vst [vmem:[#allocation19_spill] sm:$0xff] %v6205_v42  ;;  %v2872_v38 = vadd.f32 %v2848_v17, %v2800_v35  ;;  %v6218_v0 = vadd.f32 %v1999_v27, %v7985_v9  ;;  %v1753_v62 = vmul.f32 %v6195_v54, %v6195_v54  ;;  %v1777_v45 = vmul.f32 %v6205_v42, %v6205_v42  ;;  %v4100_v35 = vld [vmem:[%s4721_s7 + $0x548] sm:$0xff]  ;;  %v7991_v42 = vld [vmem:[#allocation76_spill] sm:$0xff] }
 0x1c7   : > { %7981 = vst [vmem:[#allocation28_spill] sm:$0xff] %v6207_v31  ;;  %v1765_v39 = vmul.f32 %v6207_v31, %v6207_v31  ;;  %1413 = vadd.xlane.f32.xlu1 %v5936_v52  ;;  %v6229_v16 = vmul.f32 %v6198_v13, %v7986_v30  ;;  %v6232_v17 = vmul.f32 %v4100_v35, %v2813_v43  ;;  %4002 = vrsqrt.f32 %v6213_v1  ;;  %v1115_v9 = vpop.xlane.xlu1 %1114  ;;  %v7987_v52 = vld [vmem:[#allocation62_spill] sm:$0xff]  ;;  %v4104_v54 = vld [vmem:[%s4721_s7 + $0x3c8] sm:$0xff] }
 0x1c8   : > { %3806 = vmatprep.mubr.msk.f32.mxu1 %vm620_vm0, %v2872_v38  ;;  %1377 = vadd.xlane.f32.xlu0 %v5939_v20  ;;  %v1079_v27 = vpop.xlane.xlu0 %1078  ;;  %v2477_v61 = vmul.f32 %v4101_v29, %v2453_v58  ;;  %v6238_v24 = vadd.f32 %v1777_v45, %v1753_v62  ;;  %v6243_v41 = vmax.f32 %v1115_v9, 0.0  ;;  %vm2108_vm9 = vcmp.eq.f32.partialorder %v6179_v40, inf  ;;  %v4102_v38 = vld [vmem:[%s4721_s7 + $0x248] sm:$0xff]  ;;  %v7990_v20 = vld [vmem:[#allocation74_spill] sm:$0xff] }
 0x1c9   : > { %v6241_v36 = vadd.f32 %v1765_v39, %v7987_v52  ;;  %v6245_v30 = vmax.f32 %v1079_v27, 0.0  ;;  %v2549_v35 = vmul.f32 %v4102_v38, %v2525_v5  ;;  %v2669_v31 = vmul.f32 %v6152_v6, %v7990_v20  ;;  %v7992_v39 = vld [vmem:[#allocation9_spill] sm:$0xff]  ;;  %v7993_v9 = vld [vmem:[#allocation10_spill] sm:$0xff] }
 0x1ca   : > { %7988 = vst [vmem:[#allocation65_spill] sm:$0xff] %v6243_v41  ;;  %v2501_v43 = vadd.f32 %v2477_v61, %v2429_v37  ;;  %v2741_v58 = vmul.f32 %v6152_v6, %v7991_v42  ;;  %v1871_v62 = vmul.f32 %v6243_v41, %v6243_v41  ;;  %v2345_v37 = vmul.f32 %v6198_v13, %v7992_v39  ;;  %v4103_v29 = vld [vmem:[%s4721_s7 + $0x308] sm:$0xff] }
 0x1cb   : > { %7989 = vst [vmem:[#allocation66_spill] sm:$0xff] %v6245_v30  ;;  %v1859_v45 = vmul.f32 %v6245_v30, %v6245_v30  ;;  %1697 = vadd.xlane.f32.xlu1 %v5949_v55  ;;  %v2393_v5 = vmul.f32 %v6198_v13, %v7993_v9  ;;  %vm2110_vm10 = vcmp.eq.f32.partialorder %v6179_v40, 0.0  ;;  %v1399_v6 = vpop.xlane.xlu1 %1398  ;;  %v2621_v55 = vmul.f32 %v4103_v29, %v2597_v25  ;;  %v7994_v61 = vld [vmem:[#allocation13_spill] sm:$0xff] }
 0x1cc   : > { %1661 = vadd.xlane.f32.xlu0 %v5952_v34  ;;  %v6264_v42 = vpop.xlane.xlu0 %1362  ;;  %v2573_v27 = vadd.f32 %v2549_v35, %v2501_v43  ;;  %v2465_v52 = vmul.f32 %v6198_v13, %v7994_v61  ;;  %v2111_v38 = vand.u32 2147483648, %v6179_v40  ;;  %v6271_v20 = vadd.f32 %v1871_v62, %v5999_v48  ;;  %v4105_v35 = vld [vmem:[%s4721_s7 + $0x68] sm:$0xff] }
 0x1cd   : > { %v6274_v39 = vadd.f32 %v1859_v45, %v6002_v18  ;;  %v6276_v34 = vmax.f32 %v1399_v6, 0.0  ;;  %v2693_v43 = vmul.f32 %v4104_v54, %v2669_v31  ;;  %v2369_v53 = vmul.f32 %v4105_v35, %v2345_v37  ;;  %v4106_v25 = vld [vmem:[%s4721_s7 + $0x128] sm:$0xff]  ;;  %v7997_v45 = vld [vmem:[#allocation31_spill] sm:$0xff] }
 0x1ce   : > { %v2645_v9 = vadd.f32 %v2621_v55, %v2573_v27  ;;  %v2417_v29 = vmul.f32 %v4106_v25, %v2393_v5  ;;  %v4107_v48 = vld [vmem:[%s4721_s7 + $0x488] sm:$0xff]  ;;  %v2537_v18 = vmul.f32 %v6198_v13, %v7996_v57  ;;  %v2609_v6 = vmul.f32 %v6198_v13, %v7997_v45 }
 0x1cf   : > { %7995 = vst [vmem:[#allocation67_spill] sm:$0xff] %v6276_v34  ;;  %v1965_v61 = vmul.f32 %v6276_v34, %v6276_v34  ;;  %1416 = vadd.xlane.f32.xlu1 %v5960_v32  ;;  %v2765_v62 = vmul.f32 %v4107_v48, %v2741_v58  ;;  %v4001_v27 = vpop.eup %4000  ;;  %v4108_v37 = vld [vmem:[%s4721_s7 + $0x1e8] sm:$0xff]  ;;  %v1683_v32 = vpop.xlane.xlu1 %1682  ;;  %vm2192_vm11 = vcmp.eq.f32.partialorder %v6213_v1, inf  ;;  %vm2194_vm12 = vcmp.eq.f32.partialorder %v6213_v1, 0.0  ;;  %v7999_v48 = vld [vmem:[#allocation75_spill] sm:$0xff] }
 0x1d0   : > { %v2717_v54 = vadd.f32 %v2693_v43, %v2645_v9  ;;  %v2441_v31 = vadd.f32 %v2417_v29, %v2369_v53  ;;  %v2489_v55 = vmul.f32 %v4108_v37, %v2465_v52  ;;  %v7998_v5 = vld [vmem:[#allocation45_spill] sm:$0xff]  ;;  %1380 = vadd.xlane.f32.xlu0 %v5963_v63  ;;  %v1647_v25 = vpop.xlane.xlu0 %1646  ;;  %v2107_v58 = vmul.f32 %v4001_v27, %v6179_v40 }
 0x1d1   : > { %v2681_v35 = vmul.f32 %v6198_v13, %v7998_v5  ;;  %v6297_v57 = vadd.f32 %v1965_v61, %v6038_v22  ;;  %v2195_v53 = vand.u32 2147483648, %v6213_v1  ;;  %v4109_v43 = vld [vmem:[%s4721_s7 + $0x2a8] sm:$0xff]  ;;  %v2753_v45 = vmul.f32 %v6198_v13, %v7999_v48 }
 0x1d2   : > { %v2789_v52 = vadd.f32 %v2765_v62, %v2717_v54  ;;  %v2513_v9 = vadd.f32 %v2489_v55, %v2441_v31  ;;  %v2561_v29 = vmul.f32 %v4109_v43, %v2537_v18  ;;  %v2109_v63 = vsel %vm2108_vm9, %v6179_v40, %v2107_v58  ;;  %v4110_v18 = vld [vmem:[%s4721_s7 + $0x368] sm:$0xff]  ;;  %v3704_v58 = vld [vmem:[%s4721_s7 + $0x590] sm:$0xff] }
 0x1d3   : > { %v6306_v27 = vmax.f32 %v1683_v32, 0.0  ;;  %v6308_v37 = vmax.f32 %v1647_v25, 0.0  ;;  %1700 = vadd.xlane.f32.xlu1 %v5967_v7  ;;  %v2112_v22 = vsel %vm2110_vm10, %v2111_v38, %v2109_v63  ;;  %v2633_v54 = vmul.f32 %v4110_v18, %v2609_v6  ;;  %v973_v31 = vpop.xlane.xlu1 %972  ;;  %v4111_v6 = vld [vmem:[%s4721_s7 + $0x428] sm:$0xff] }
 0x1d4   : > { %v2861_v61 = vadd.f32 %v6232_v17, %v2789_v52  ;;  %v2585_v62 = vadd.f32 %v2561_v29, %v2513_v9  ;;  %1664 = vadd.xlane.f32.xlu0 %v5970_v10  ;;  %v937_v13 = vpop.xlane.xlu0 %936  ;;  %v4003_v55 = vpop.eup %4002  ;;  %v2262_v5 = vmax.f32 %v2112_v22, 1e-12  ;;  %v6320_v40 = vmax.f32 %v973_v31, 0.0  ;;  %v4112_v63 = vld [vmem:[%s4721_s7 + $0x4e8] sm:$0xff] }
 0x1d5   : > { %v2059_v32 = vmul.f32 %v6306_v27, %v6306_v27  ;;  %v2047_v7 = vmul.f32 %v6308_v37, %v6308_v37  ;;  %v2191_v17 = vmul.f32 %v4003_v55, %v6213_v1  ;;  %v2705_v10 = vmul.f32 %v4111_v6, %v2681_v35  ;;  %v8023_v34 = vld [vmem:[#allocation89_spill] sm:$0xff] }
 0x1d6   : > { %8000 = vst [vmem:[#allocation8_spill] sm:$0xff] %v6320_v40  ;;  %3789 = vmatmul.mubr.msk.f32.vlgmr.msra.gmra.mxu0 %vm620_vm0, %v2861_v61  ;;  %v2657_v38 = vadd.f32 %v2633_v54, %v2585_v62  ;;  %v6325_v25 = vmax.f32 %v937_v13, 0.0  ;;  %4004 = vrcp.f32 %v2262_v5  ;;  %v1824_v43 = vmul.f32 %v6320_v40, %v6320_v40  ;;  %v3717_v61 = vld [vmem:[%s4721_s7 + $0x5f8] sm:$0xff]  ;;  %v4113_v54 = vld [vmem:[%s4721_s7 + $0x5a8] sm:$0xff] }
 0x1d7   : > { %v6329_v52 = vadd.f32 %v2059_v32, %v6177_v4  ;;  %v6332_v9 = vadd.f32 %v2047_v7, %v6218_v0  ;;  %1558 = vadd.xlane.f32.xlu1 %v5973_v46  ;;  %v2193_v35 = vsel %vm2192_vm11, %v6213_v1, %v2191_v17  ;;  %v2777_v48 = vmul.f32 %v4112_v63, %v2753_v45  ;;  %v1257_v0 = vpop.xlane.xlu1 %1256 }
 0x1d8   : > { %8001 = vst [vmem:[#allocation11_spill] sm:$0xff] %v6325_v25  ;;  %v2729_v29 = vadd.f32 %v2705_v10, %v2657_v38  ;;  %v1812_v4 = vmul.f32 %v6325_v25, %v6325_v25  ;;  %1522 = vadd.xlane.f32.xlu0 %v5982_v3  ;;  %v1221_v22 = vpop.xlane.xlu0 %1220  ;;  %v2196_v62 = vsel %vm2194_vm12, %v2195_v53, %v2193_v35  ;;  %v1524_v46 = vsel %vm620_vm0, %v5995_v8, 0.0  ;;  %v3705_v3 = vld [vmem:[%s4721_s7 + $0x598] sm:$0xff]  ;;  %v8004_v38 = vld [vmem:[#allocation5_spill] sm:$0xff] }
 0x1d9   : > { %4006 = vrsqrt.f32 %v6329_v52  ;;  %v1622_v18 = vmul.f32 %v5881_v44, %v3704_v58  ;;  %v2849_v45 = vmul.f32 %v4113_v54, %v6229_v16  ;;  %v2274_v31 = vmax.f32 %v2196_v62, 1e-12 }
 0x1da   : > { %v2801_v13 = vadd.f32 %v2777_v48, %v2729_v29  ;;  %4008 = vrsqrt.f32 %v6332_v9  ;;  %v6356_v55 = vmax.f32 %v6110_v19, 0.0  ;;  %v6359_v1 = vadd.f32 %v1824_v43, %v6121_v60 }
 0x1db   : > { %1561 = vadd.xlane.f32.xlu1 %v6137_v2  ;;  %v1702_v8 = vsel %vm620_vm0, %v6159_v28, 0.0  ;;  %v1635_v53 = vmul.f32 %v5881_v44, %v3717_v61  ;;  %4010 = vrcp.f32 %v2274_v31  ;;  %v6366_v5 = vadd.f32 %v1812_v4, %v6090_v15  ;;  %v6370_v19 = vpop.xlane.xlu1 %1540  ;;  %v8008_v4 = vld [vmem:[#allocation4_spill] sm:$0xff]  ;;  %v8010_v61 = vld [vmem:[#allocation87_spill] sm:$0xff] }
 0x1dc   : > { %v2873_v16 = vadd.f32 %v2849_v45, %v2801_v13  ;;  %v6368_v32 = vmax.f32 %v1257_v0, 0.0  ;;  %1525 = vadd.xlane.f32.xlu0 %v1524_v46  ;;  %v1505_v7 = vpop.xlane.xlu0 %1504  ;;  %v6372_v60 = vmax.f32 %v1221_v22, 0.0  ;;  %v1666_v2 = vsel %vm620_vm0, %v1622_v18, 0.0  ;;  %v8011_v31 = vld [vmem:[#allocation15_spill] sm:$0xff] }
 0x1dd   : > { %v1623_v17 = vmul.f32 %v5881_v44, %v3705_v3  ;;  %v6380_v15 = vmax.f32 %v8004_v38, 0.0  ;;  %v1952_v10 = vmul.f32 %v6356_v55, %v6356_v55  ;;  %v1705_v35 = vsel %vm620_vm0, %v1635_v53, 0.0  ;;  %v8012_v3 = vld [vmem:[#allocation16_spill] sm:$0xff]  ;;  %v8013_v53 = vld [vmem:[#allocation27_spill] sm:$0xff] }
 0x1de   : > { %8002 = vst [vmem:[#allocation81_spill] sm:$0xff] %v6368_v32  ;;  %8003 = vst [vmem:[#allocation86_spill] sm:$0xff] %v6372_v60  ;;  %3807 = vmatmul.mubr.msk.f32.vlgmr.msra.gmra.mxu1 %vm620_vm0, %v2873_v16  ;;  %v1918_v28 = vmul.f32 %v6368_v32, %v6368_v32  ;;  %v1906_v6 = vmul.f32 %v6372_v60, %v6372_v60  ;;  %v6397_v0 = vmax.f32 %v8008_v4, 0.0  ;;  %v6407_v46 = vmax.f32 %v6264_v42, 0.0  ;;  %v8014_v42 = vld [vmem:[#allocation36_spill] sm:$0xff] }
 0x1df   : > { %8005 = vst [vmem:[#allocation14_spill] sm:$0xff] %v6380_v15  ;;  %1703 = vadd.xlane.f32.xlu1 %v1702_v8  ;;  %v976_v44 = vpop.xlane.xlu1 %975  ;;  %v1669_v48 = vsel %vm620_vm0, %v1623_v17, 0.0  ;;  %v6401_v22 = vmul.f32 %v6380_v15, %v6380_v15  ;;  %v6404_v62 = vadd.f32 %v1952_v10, %v8010_v61  ;;  %vm2199_vm13 = vcmp.eq.f32.partialorder %v6329_v52, inf }
 0x1e0   : > { %v6387_v58 = vadd.f32 %v1918_v28, %v6144_v26  ;;  %1667 = vadd.xlane.f32.xlu0 %v1666_v2  ;;  %v940_v43 = vpop.xlane.xlu0 %939  ;;  %v6391_v29 = vadd.f32 %v1906_v6, %v6119_v49  ;;  %v6393_v63 = vmax.f32 %v976_v44, 0.0  ;;  %8009 = vst [vmem:[#allocation79_spill] sm:$0xff] %v6397_v0  ;;  %v8015_v28 = vld [vmem:[#allocation49_spill] sm:$0xff]  ;;  %vm2201_vm14 = vcmp.eq.f32.partialorder %v6329_v52, 0.0  ;;  %v4114_v44 = vld [vmem:[%s4721_s7 + $0x10] sm:$0xff] }
 0x1e1   : > { %vm2115_vm15 = vcmp.eq.f32.partialorder %v6332_v9, inf  ;;  %vm2117_vm1 = vcmp.eq.f32.partialorder %v6332_v9, 0.0  ;;  %v2118_v6 = vand.u32 2147483648, %v6332_v9  ;;  %v6428_v61 = vmax.f32 %v1505_v7, 0.0 }
 0x1e2   : > { %8006 = vst [vmem:[#allocation25_spill] sm:$0xff] %v6387_v58  ;;  %8007 = vst [vmem:[#allocation32_spill] sm:$0xff] %v6393_v63  ;;  %v1825_v18 = vmul.f32 %v6393_v63, %v6393_v63  ;;  %v4124_v58 = vld [vmem:[%s4721_s7 + $0x1f0] sm:$0xff] }
 0x1e3   : > { %1706 = vadd.xlane.f32.xlu1 %v1705_v35  ;;  %v4005_v26 = vpop.eup %4004  ;;  %v6412_v54 = vpop.xlane.xlu1 %1259 }
 0x1e4   : > { %1670 = vadd.xlane.f32.xlu0 %v1669_v48  ;;  %v6414_v45 = vpop.xlane.xlu0 %1223  ;;  %v2334_v13 = vmul.f32 %v4005_v26, %v8011_v31  ;;  %v2382_v8 = vmul.f32 %v4005_v26, %v8012_v3  ;;  %v2454_v16 = vmul.f32 %v4005_v26, %v8013_v53  ;;  %v2526_v2 = vmul.f32 %v4005_v26, %v8014_v42  ;;  %v4115_v48 = vld [vmem:[%s4721_s7 + $0xd0] sm:$0xff]  ;;  %v8017_v42 = vld [vmem:[#allocation88_spill] sm:$0xff] }
 0x1e5   : > { %v2598_v38 = vmul.f32 %v4005_v26, %v8015_v28  ;;  %v6430_v31 = vmax.f32 %v940_v43, 0.0  ;;  %v4116_v3 = vld [vmem:[%s4721_s7 + $0x190] sm:$0xff]  ;;  %v2670_v28 = vmul.f32 %v4005_v26, %v8017_v42  ;;  %v2742_v49 = vmul.f32 %v4005_v26, %v6065_v59 }
 0x1e6   : > { %v4007_v17 = vpop.eup %4006  ;;  %v2358_v35 = vmul.f32 %v4114_v44, %v2334_v13  ;;  %v2406_v4 = vmul.f32 %v4115_v48, %v2382_v8  ;;  %v2478_v53 = vmul.f32 %v4116_v3, %v2454_v16  ;;  %v2814_v15 = vmul.f32 %v4005_v26, %v6146_v47  ;;  %v8018_v44 = vld [vmem:[#allocation17_spill] sm:$0xff]  ;;  %v8019_v47 = vld [vmem:[#allocation18_spill] sm:$0xff] }
 0x1e7   : > { %v4009_v10 = vpop.eup %4008  ;;  %8016 = vst [vmem:[#allocation80_spill] sm:$0xff] %v6430_v31  ;;  %v6436_v63 = vpop.xlane.xlu1 %1543  ;;  %v2198_v43 = vmul.f32 %v4007_v17, %v6329_v52  ;;  %v6443_v16 = vadd.f32 %v1825_v18, %v6238_v24  ;;  %v8020_v48 = vld [vmem:[#allocation26_spill] sm:$0xff]  ;;  %v8022_v17 = vld [vmem:[#allocation48_spill] sm:$0xff]  ;;  %v1813_v24 = vmul.f32 %v6430_v31, %v6430_v31 }
 0x1e8   : > { %v6438_v25 = vpop.xlane.xlu0 %1507  ;;  %v4011_v13 = vpop.eup %4010  ;;  %v2430_v7 = vadd.f32 %v2406_v4, %v2358_v35  ;;  %v2114_v8 = vmul.f32 %v4009_v10, %v6332_v9  ;;  %v8021_v42 = vld [vmem:[#allocation38_spill] sm:$0xff] }
 0x1e9   : > { %v2346_v59 = vmul.f32 %v4011_v13, %v8018_v44  ;;  %v2394_v26 = vmul.f32 %v4011_v13, %v8019_v47  ;;  %v2466_v3 = vmul.f32 %v4011_v13, %v8020_v48  ;;  %v2538_v40 = vmul.f32 %v4011_v13, %v8021_v42  ;;  %v4117_v35 = vld [vmem:[%s4721_s7 + $0x250] sm:$0xff] }
 0x1ea   : > { %v2502_v30 = vadd.f32 %v2478_v53, %v2430_v7  ;;  %v2550_v4 = vmul.f32 %v4117_v35, %v2526_v2  ;;  %v2610_v41 = vmul.f32 %v4011_v13, %v8022_v17  ;;  %v4118_v18 = vld [vmem:[%s4721_s7 + $0x310] sm:$0xff]  ;;  %v2838_v17 = vmul.f32 %v4123_v12, %v2814_v15 }
 0x1eb   : > { %v2622_v10 = vmul.f32 %v4118_v18, %v2598_v38  ;;  %v4119_v44 = vld [vmem:[%s4721_s7 + $0x3d0] sm:$0xff]  ;;  %v798_v42 = vpop.xlane.xlu1 %797  ;;  %v2682_v56 = vmul.f32 %v4011_v13, %v8023_v34  ;;  %v2490_v38 = vmul.f32 %v4124_v58, %v2466_v3  ;;  %v6474_v34 = vadd.f32 %v1813_v24, %v6241_v36 }
 0x1ec   : > { %v2694_v60 = vmul.f32 %v4119_v44, %v2670_v28  ;;  %v4120_v47 = vld [vmem:[%s4721_s7 + $0x70] sm:$0xff]  ;;  %v689_v53 = vpop.xlane.xlu0 %688  ;;  %v2574_v7 = vadd.f32 %v2550_v4, %v2502_v30  ;;  %v2200_v28 = vsel %vm2199_vm13, %v6329_v52, %v2198_v43  ;;  %v8024_v30 = vand.u32 2147483648, %v6329_v52 }
 0x1ed   : > { %v2370_v50 = vmul.f32 %v4120_v47, %v2346_v59  ;;  %v4121_v48 = vld [vmem:[%s4721_s7 + $0x130] sm:$0xff]  ;;  %v2116_v59 = vsel %vm2115_vm15, %v6332_v9, %v2114_v8  ;;  %v2754_v18 = vmul.f32 %v4011_v13, %v6035_v11  ;;  %v6479_v52 = vmax.f32 %v6412_v54, 0.0 }
 0x1ee   : > { %v2418_v32 = vmul.f32 %v4121_v48, %v2394_v26  ;;  %v4122_v2 = vld [vmem:[%s4721_s7 + $0x490] sm:$0xff]  ;;  %v2646_v26 = vadd.f32 %v2622_v10, %v2574_v7  ;;  %v2203_v12 = vsel %vm2201_vm14, %v8024_v30, %v2200_v28  ;;  %v6482_v9 = vmax.f32 %v6414_v45, 0.0 }
 0x1ef   : > { %v2766_v35 = vmul.f32 %v4122_v2, %v2742_v49  ;;  %v4125_v15 = vld [vmem:[%s4721_s7 + $0x2b0] sm:$0xff]  ;;  %v2275_v49 = vmax.f32 %v2203_v12, 1e-12  ;;  %v1082_v8 = vpop.xlane.xlu1 %1081  ;;  %8025 = vst [vmem:[#allocation62_spill] sm:$0xff] %v6479_v52  ;;  %v2826_v45 = vmul.f32 %v4011_v13, %v6185_v23  ;;  %v6501_v2 = vmax.f32 %v689_v53, 0.0 }
 0x1f0   : > { %v2442_v31 = vadd.f32 %v2418_v32, %v2370_v50  ;;  %v2119_v50 = vsel %vm2117_vm1, %v2118_v6, %v2116_v59  ;;  %v2562_v58 = vmul.f32 %v4125_v15, %v2538_v40  ;;  %v834_v3 = vpop.xlane.xlu0 %833  ;;  %v2718_v4 = vadd.f32 %v2694_v60, %v2646_v26  ;;  %8026 = vst [vmem:[#allocation74_spill] sm:$0xff] %v6482_v9  ;;  %v4126_v36 = vld [vmem:[%s4721_s7 + $0x370] sm:$0xff] }
 0x1f1   : > { %v2263_v43 = vmax.f32 %v2119_v50, 1e-12  ;;  %v2634_v24 = vmul.f32 %v4126_v36, %v2610_v41  ;;  %4012 = vrcp.f32 %v2275_v49  ;;  %v4127_v10 = vld [vmem:[%s4721_s7 + $0x430] sm:$0xff]  ;;  %v1919_v60 = vmul.f32 %v6479_v52, %v6479_v52  ;;  %8028 = vst [vmem:[#allocation9_spill] sm:$0xff] %v6501_v2  ;;  %v4167_v52 = vld [vmem:[%s4721_s7 + $0xe8] sm:$0xff] }
 0x1f2   : > { %v2514_v32 = vadd.f32 %v2490_v38, %v2442_v31  ;;  %v6485_v31 = vmax.f32 %v798_v42, 0.0  ;;  %v2790_v40 = vadd.f32 %v2766_v35, %v2718_v4  ;;  %v2706_v44 = vmul.f32 %v4127_v10, %v2682_v56  ;;  %v4128_v38 = vld [vmem:[%s4721_s7 + $0x4f0] sm:$0xff] }
 0x1f3   : > { %v1907_v11 = vmul.f32 %v6482_v9, %v6482_v9  ;;  %4014 = vrcp.f32 %v2263_v43  ;;  %v1366_v47 = vpop.xlane.xlu1 %1365  ;;  %v6496_v7 = vadd.f32 %v1919_v60, %v6271_v20  ;;  %v2778_v28 = vmul.f32 %v4128_v38, %v2754_v18  ;;  %v4129_v26 = vld [vmem:[%s4721_s7 + $0x5b0] sm:$0xff]  ;;  %v4162_v9 = vld [vmem:[%s4721_s7 + $0x500] sm:$0xff] }
 0x1f4   : > { %v2586_v6 = vadd.f32 %v2562_v58, %v2514_v32  ;;  %8027 = vst [vmem:[#allocation76_spill] sm:$0xff] %v6485_v31  ;;  %v1766_v41 = vmul.f32 %v6485_v31, %v6485_v31  ;;  %v1118_v48 = vpop.xlane.xlu0 %1117  ;;  %v2862_v42 = vadd.f32 %v2838_v17, %v2790_v40  ;;  %v2000_v23 = vmul.f32 %v6428_v61, %v6428_v61  ;;  %v4135_v31 = vld [vmem:[%s4721_s7 + $0xd8] sm:$0xff] }
 0x1f5   : > { %v6499_v56 = vadd.f32 %v1907_v11, %v6274_v39  ;;  %v6510_v59 = vmax.f32 %v6370_v19, 0.0  ;;  %v6512_v17 = vmax.f32 %v1082_v8, 0.0  ;;  %v6514_v20 = vmax.f32 %v834_v3, 0.0 }
 0x1f6   : > { %v2658_v54 = vadd.f32 %v2634_v24, %v2586_v6  ;;  %v6507_v13 = vadd.f32 %v1766_v41, %v6401_v22  ;;  %v6516_v39 = vmax.f32 %v1366_v47, 0.0  ;;  %3791 = vmatprep.mubr.msk.f32.mxu0 %vm620_vm0, %v2862_v42  ;;  %v2850_v30 = vmul.f32 %v4129_v26, %v2826_v45  ;;  %v8032_v45 = vld [vmem:[#allocation21_spill] sm:$0xff]  ;;  %v8033_v41 = vld [vmem:[#allocation22_spill] sm:$0xff]  ;;  %v8035_v42 = vld [vmem:[#allocation43_spill] sm:$0xff] }
 0x1f7   : > { %8029 = vst [vmem:[#allocation10_spill] sm:$0xff] %v6512_v17  ;;  %8030 = vst [vmem:[#allocation13_spill] sm:$0xff] %v6514_v20  ;;  %v1754_v12 = vmul.f32 %v6501_v2, %v6501_v2  ;;  %v6522_v50 = vmax.f32 %v1118_v48, 0.0  ;;  %v1650_v22 = vpop.xlane.xlu1 %1649  ;;  %v1860_v19 = vmul.f32 %v6512_v17, %v6512_v17  ;;  %v1778_v15 = vmul.f32 %v6514_v20, %v6514_v20  ;;  %v8034_v48 = vld [vmem:[#allocation29_spill] sm:$0xff]  ;;  %v4138_v17 = vld [vmem:[%s4721_s7 + $0x4f8] sm:$0xff] }
 0x1f8   : > { %v2730_v35 = vadd.f32 %v2706_v44, %v2658_v54  ;;  %v6524_v32 = vpop.xlane.xlu0 %1401  ;;  %v1954_v58 = vmul.f32 %v6516_v39, %v6516_v39  ;;  %v6532_v49 = vmax.f32 %v1650_v22, 0.0  ;;  %v1953_v8 = vmul.f32 %v6407_v46, %v6407_v46 }
 0x1f9   : > { %8031 = vst [vmem:[#allocation24_spill] sm:$0xff] %v6522_v50  ;;  %v2024_v3 = vadd.f32 %v2000_v23, %v6404_v62  ;;  %v1872_v4 = vmul.f32 %v6522_v50, %v6522_v50  ;;  %v6540_v18 = vadd.f32 %v1860_v19, %v6366_v5  ;;  %v6542_v6 = vadd.f32 %v1778_v15, %v1754_v12  ;;  %v4130_v19 = vld [vmem:[%s4721_s7 + $0x78] sm:$0xff] }
 0x1fa   : > { %v2802_v53 = vadd.f32 %v2778_v28, %v2730_v35  ;;  %v6545_v36 = vadd.f32 %v1954_v58, %v6391_v29  ;;  %v2048_v24 = vmul.f32 %v6532_v49, %v6532_v49  ;;  %v2012_v44 = vmul.f32 %v6510_v59, %v6510_v59  ;;  %v4131_v58 = vld [vmem:[%s4721_s7 + $0x138] sm:$0xff] }
 0x1fb   : > { %v6550_v40 = vadd.f32 %v1872_v4, %v6359_v1  ;;  %v692_v62 = vpop.xlane.xlu1 %691  ;;  %v6556_v5 = vmax.f32 %v6436_v63, 0.0  ;;  %v6561_v29 = vmax.f32 %v6438_v25, 0.0  ;;  %v6565_v1 = vmul.f32 %v6397_v0, %v6397_v0  ;;  %v4132_v4 = vld [vmem:[%s4721_s7 + $0x1f8] sm:$0xff] }
 0x1fc   : > { %v2874_v43 = vadd.f32 %v2850_v30, %v2802_v53  ;;  %v1686_v10 = vpop.xlane.xlu0 %1685  ;;  %v6558_v60 = vadd.f32 %v2048_v24, %v2024_v3  ;;  %v6568_v54 = vadd.f32 %v1953_v8, %v6047_v14  ;;  %v8036_v53 = vld [vmem:[#allocation52_spill] sm:$0xff]  ;;  %v8037_v30 = vld [vmem:[#allocation77_spill] sm:$0xff]  ;;  %v2036_v12 = vadd.f32 %v2012_v44, %v6182_v33 }
 0x1fd   : > { %v6582_v22 = vmul.f32 %v6556_v5, %v6556_v5  ;;  %v6588_v8 = vmul.f32 %v6561_v29, %v6561_v29  ;;  %v6590_v3 = vmax.f32 %v692_v62, 0.0  ;;  %v6595_v44 = vmax.f32 %v1686_v10, 0.0  ;;  %v8041_v62 = vld [vmem:[#allocation30_spill] sm:$0xff] }
 0x1fe   : > { %3809 = vmatprep.mubr.msk.f32.mxu1 %vm620_vm0, %v2874_v43  ;;  %v4013_v11 = vpop.eup %4012  ;;  %4016 = vrsqrt.f32 %v6558_v60  ;;  %vm2122_vm2 = vcmp.eq.f32.partialorder %v6558_v60, inf  ;;  %vm2124_vm3 = vcmp.eq.f32.partialorder %v6558_v60, 0.0 }
 0x1ff   : > { %v2347_v63 = vmul.f32 %v4013_v11, %v8032_v45  ;;  %v2395_v47 = vmul.f32 %v4013_v11, %v8033_v41  ;;  %v2467_v25 = vmul.f32 %v4013_v11, %v8034_v48  ;;  %v2539_v35 = vmul.f32 %v4013_v11, %v8035_v42  ;;  %v837_v38 = vpop.xlane.xlu1 %836  ;;  %8038 = vst [vmem:[#allocation31_spill] sm:$0xff] %v6590_v3  ;;  %v8039_v41 = vld [vmem:[#allocation20_spill] sm:$0xff]  ;;  %v8040_v48 = vld [vmem:[#allocation23_spill] sm:$0xff] }
 0x200   : > { %v801_v28 = vpop.xlane.xlu0 %800  ;;  %v6575_v23 = vpop.eup %4014  ;;  %v2611_v26 = vmul.f32 %v4013_v11, %v8036_v53  ;;  %v2683_v14 = vmul.f32 %v4013_v11, %v8037_v30  ;;  %v2755_v45 = vmul.f32 %v4013_v11, %v6076_v51  ;;  %v2827_v30 = vmul.f32 %v4013_v11, %v6306_v27  ;;  %v4136_v27 = vld [vmem:[%s4721_s7 + $0x378] sm:$0xff] }
 0x201   : > { %v2371_v15 = vmul.f32 %v4130_v19, %v2347_v63  ;;  %v2419_v43 = vmul.f32 %v4131_v58, %v2395_v47  ;;  %v2491_v24 = vmul.f32 %v4132_v4, %v2467_v25  ;;  %v2335_v47 = vmul.f32 %v6575_v23, %v8039_v41  ;;  %v8042_v19 = vld [vmem:[#allocation44_spill] sm:$0xff] }
 0x202   : > { %v2383_v42 = vmul.f32 %v6575_v23, %v8040_v48  ;;  %v2455_v53 = vmul.f32 %v6575_v23, %v8041_v62  ;;  %v2527_v10 = vmul.f32 %v6575_v23, %v8042_v19  ;;  %v4133_v48 = vld [vmem:[%s4721_s7 + $0x2b8] sm:$0xff]  ;;  %v2635_v11 = vmul.f32 %v4136_v27, %v2611_v26 }
 0x203   : > { %v2443_v63 = vadd.f32 %v2419_v43, %v2371_v15  ;;  %v1121_v25 = vpop.xlane.xlu1 %1120  ;;  %v8043_v15 = vld [vmem:[#allocation53_spill] sm:$0xff]  ;;  %v8044_v43 = vld [vmem:[#allocation78_spill] sm:$0xff]  ;;  %v2563_v33 = vmul.f32 %v4133_v48, %v2539_v35  ;;  %v4134_v62 = vld [vmem:[%s4721_s7 + $0x18] sm:$0xff]  ;;  %v2060_v26 = vmul.f32 %v6595_v44, %v6595_v44 }
 0x204   : > { %v1085_v51 = vpop.xlane.xlu0 %1084  ;;  %v2599_v58 = vmul.f32 %v6575_v23, %v8043_v15  ;;  %v2671_v4 = vmul.f32 %v6575_v23, %v8044_v43  ;;  %v2359_v0 = vmul.f32 %v4134_v62, %v2335_v47  ;;  %v2407_v20 = vmul.f32 %v4135_v31, %v2383_v42  ;;  %v4137_v19 = vld [vmem:[%s4721_s7 + $0x438] sm:$0xff] }
 0x205   : > { %v2515_v41 = vadd.f32 %v2491_v24, %v2443_v63  ;;  %v2707_v2 = vmul.f32 %v4137_v19, %v2683_v14  ;;  %v2779_v15 = vmul.f32 %v4138_v17, %v2755_v45  ;;  %v2743_v43 = vmul.f32 %v6575_v23, %v6163_v21  ;;  %v4139_v63 = vld [vmem:[%s4721_s7 + $0x198] sm:$0xff] }
 0x206   : > { %v2431_v24 = vadd.f32 %v2407_v20, %v2359_v0  ;;  %v2479_v47 = vmul.f32 %v4139_v63, %v2455_v53  ;;  %v4140_v48 = vld [vmem:[%s4721_s7 + $0x258] sm:$0xff]  ;;  %v6628_v17 = vmax.f32 %v837_v38, 0.0  ;;  %v6630_v14 = vmax.f32 %v801_v28, 0.0 }
 0x207   : > { %v2587_v35 = vadd.f32 %v2563_v33, %v2515_v41  ;;  %v2551_v31 = vmul.f32 %v4140_v48, %v2527_v10  ;;  %v6622_v42 = vpop.xlane.xlu1 %1404  ;;  %v6632_v21 = vmax.f32 %v1121_v25, 0.0  ;;  %v4141_v20 = vld [vmem:[%s4721_s7 + $0x318] sm:$0xff]  ;;  %v6635_v53 = vmax.f32 %v1085_v51, 0.0 }
 0x208   : > { %v6624_v62 = vpop.xlane.xlu0 %1368  ;;  %8045 = vst [vmem:[#allocation45_spill] sm:$0xff] %v6628_v17  ;;  %8046 = vst [vmem:[#allocation75_spill] sm:$0xff] %v6630_v14  ;;  %v2503_v0 = vadd.f32 %v2479_v47, %v2431_v24  ;;  %v2623_v33 = vmul.f32 %v4141_v20, %v2599_v58  ;;  %v6637_v10 = vadd.f32 %v2060_v26, %v2036_v12  ;;  %v4143_v63 = vld [vmem:[%s4721_s7 + $0x3d8] sm:$0xff] }
 0x209   : > { %8047 = vst [vmem:[#allocation5_spill] sm:$0xff] %v6632_v21  ;;  %v2659_v45 = vadd.f32 %v2635_v11, %v2587_v35  ;;  %8048 = vst [vmem:[#allocation4_spill] sm:$0xff] %v6635_v53  ;;  %v1779_v41 = vmul.f32 %v6628_v17, %v6628_v17  ;;  %v1767_v38 = vmul.f32 %v6630_v14, %v6630_v14  ;;  %v4142_v35 = vld [vmem:[%s4721_s7 + $0x5b8] sm:$0xff]  ;;  %v4148_v14 = vld [vmem:[%s4721_s7 + $0x1a0] sm:$0xff] }
 0x20a   : > { %v1873_v28 = vmul.f32 %v6632_v21, %v6632_v21  ;;  %v2575_v11 = vadd.f32 %v2551_v31, %v2503_v0  ;;  %v1755_v19 = vmul.f32 %v6590_v3, %v6590_v3  ;;  %v1861_v51 = vmul.f32 %v6635_v53, %v6635_v53  ;;  %v4149_v17 = vld [vmem:[%s4721_s7 + $0x260] sm:$0xff] }
 0x20b   : > { %v4017_v25 = vpop.eup %4016  ;;  %v2731_v27 = vadd.f32 %v2707_v2, %v2659_v45  ;;  %v1689_v12 = vpop.xlane.xlu1 %1688  ;;  %v2851_v24 = vmul.f32 %v4142_v35, %v2827_v30  ;;  %v2695_v47 = vmul.f32 %v4143_v63, %v2671_v4  ;;  %4018 = vrsqrt.f32 %v6637_v10 }
 0x20c   : > { %v1653_v58 = vpop.xlane.xlu0 %1652  ;;  %v2121_v48 = vmul.f32 %v4017_v25, %v6558_v60  ;;  %v2647_v2 = vadd.f32 %v2623_v33, %v2575_v11  ;;  %v2815_v31 = vmul.f32 %v6575_v23, %v6308_v37  ;;  %v6655_v45 = vadd.f32 %v1779_v41, %v1755_v19  ;;  %v4144_v25 = vld [vmem:[%s4721_s7 + $0x498] sm:$0xff] }
 0x20d   : > { %v2803_v26 = vadd.f32 %v2779_v15, %v2731_v27  ;;  %v6661_v30 = vadd.f32 %v1767_v38, %v6565_v1  ;;  %v6664_v4 = vadd.f32 %v1873_v28, %v6443_v16  ;;  %v6667_v20 = vadd.f32 %v1861_v51, %v6474_v34  ;;  %v4145_v19 = vld [vmem:[%s4721_s7 + $0x558] sm:$0xff] }
 0x20e   : > { %v2123_v0 = vsel %vm2122_vm2, %v6558_v60, %v2121_v48  ;;  %v2719_v33 = vadd.f32 %v2695_v47, %v2647_v2  ;;  %v2767_v37 = vmul.f32 %v4144_v25, %v2743_v43  ;;  %v8049_v23 = vand.u32 2147483648, %v6558_v60 }
 0x20f   : > { %v2875_v15 = vadd.f32 %v2851_v24, %v2803_v26  ;;  %v979_v27 = vpop.xlane.xlu1 %978  ;;  %v2037_v1 = vadd.f32 %v6582_v22, %v6297_v57  ;;  %v6676_v16 = vmax.f32 %v1689_v12, 0.0  ;;  %v6678_v28 = vmax.f32 %v1653_v58, 0.0 }
 0x210   : > { %v2126_v41 = vsel %vm2124_vm3, %v8049_v23, %v2123_v0  ;;  %v943_v11 = vpop.xlane.xlu0 %942  ;;  %v2791_v34 = vadd.f32 %v2767_v37, %v2719_v33  ;;  %v2839_v51 = vmul.f32 %v4145_v19, %v2815_v31  ;;  %v6682_v43 = vmax.f32 %v979_v27, 0.0  ;;  %v8054_v19 = vld [vmem:[#allocation33_spill] sm:$0xff] }
 0x211   : > { %v2264_v38 = vmax.f32 %v2126_v41, 1e-12  ;;  %3810 = vmatmul.mubr.msk.f32.gmra.mxu1 %vm620_vm0, %v2875_v15  ;;  %v6684_v35 = vmax.f32 %v943_v11, 0.0  ;;  %v2025_v60 = vadd.f32 %v6588_v8, %v6568_v54  ;;  %v2061_v57 = vmul.f32 %v6676_v16, %v6676_v16 }
 0x212   : > { %8050 = vst [vmem:[#allocation87_spill] sm:$0xff] %v6682_v43  ;;  %v2049_v22 = vmul.f32 %v6678_v28, %v6678_v28  ;;  %v2863_v12 = vadd.f32 %v2839_v51, %v2791_v34  ;;  %v1826_v58 = vmul.f32 %v6682_v43, %v6682_v43  ;;  %vm2206_vm4 = vcmp.eq.f32.partialorder %v6637_v10, inf }
 0x213   : > { %8051 = vst [vmem:[#allocation15_spill] sm:$0xff] %v6684_v35  ;;  %4020 = vrcp.f32 %v2264_v38  ;;  %v1814_v24 = vmul.f32 %v6684_v35, %v6684_v35  ;;  %v6696_v63 = vpop.xlane.xlu1 %1262  ;;  %v2085_v48 = vadd.f32 %v2061_v57, %v2037_v1  ;;  %v2209_v33 = vand.u32 2147483648, %v6637_v10 }
 0x214   : > { %v6698_v47 = vpop.xlane.xlu0 %1226  ;;  %v6700_v54 = vadd.f32 %v2049_v22, %v2025_v60  ;;  %3792 = vmatmul.mubr.msk.f32.gmra.mxu0 %vm620_vm0, %v2863_v12  ;;  %v6704_v8 = vadd.f32 %v1826_v58, %v6542_v6  ;;  %vm2208_vm5 = vcmp.eq.f32.partialorder %v6637_v10, 0.0  ;;  %v8055_v60 = vld [vmem:[#allocation34_spill] sm:$0xff]  ;;  %v8057_v12 = vld [vmem:[#allocation60_spill] sm:$0xff] }
 0x215   : > { %v6707_v26 = vadd.f32 %v1814_v24, %v6507_v13  ;;  %4022 = vrsqrt.f32 %v2085_v48  ;;  %v8058_v24 = vld [vmem:[#allocation85_spill] sm:$0xff]  ;;  %vm2213_vm6 = vcmp.eq.f32.partialorder %v2085_v48, inf  ;;  %vm2215_vm7 = vcmp.eq.f32.partialorder %v2085_v48, 0.0 }
 0x216   : > { %4024 = vrsqrt.f32 %v6700_v54  ;;  %vm2129_vm8 = vcmp.eq.f32.partialorder %v6700_v54, inf  ;;  %vm2131_vm9 = vcmp.eq.f32.partialorder %v6700_v54, 0.0 }
 0x217   : > { %v6710_v2 = vpop.xlane.xlu1 %1546 }
 0x218   : > { %v6712_v31 = vpop.xlane.xlu0 %1510  ;;  %v4019_v0 = vpop.eup %4018 }
 0x219   : > { %v2205_v15 = vmul.f32 %v4019_v0, %v6637_v10 }
 0x21b   : > { %v982_v25 = vpop.xlane.xlu1 %981  ;;  %v2207_v37 = vsel %vm2206_vm4, %v6637_v10, %v2205_v15  ;;  %v8056_v10 = vld [vmem:[#allocation47_spill] sm:$0xff] }
 0x21c   : > { %v946_v6 = vpop.xlane.xlu0 %945  ;;  %v6719_v13 = vmax.f32 %v982_v25, 0.0  ;;  %v2210_v23 = vsel %vm2208_vm5, %v2209_v33, %v2207_v37  ;;  %v4146_v33 = vld [vmem:[%s4721_s7 + $0x20] sm:$0xff] }
 0x21d   : > { %v6721_v41 = vmax.f32 %v946_v6, 0.0  ;;  %v2276_v11 = vmax.f32 %v2210_v23, 1e-12  ;;  %v4147_v6 = vld [vmem:[%s4721_s7 + $0xe0] sm:$0xff] }
 0x21e   : > { %8052 = vst [vmem:[#allocation16_spill] sm:$0xff] %v6719_v13  ;;  %v1827_v1 = vmul.f32 %v6719_v13, %v6719_v13 }
 0x21f   : > { %8053 = vst [vmem:[#allocation27_spill] sm:$0xff] %v6721_v41  ;;  %v6725_v38 = vpop.xlane.xlu1 %1265  ;;  %v1815_v15 = vmul.f32 %v6721_v41, %v6721_v41  ;;  %4026 = vrcp.f32 %v2276_v11 }
 0x220   : > { %v4021_v27 = vpop.eup %4020  ;;  %v1230_v34 = vpop.xlane.xlu0 %1229 }
 0x221   : > { %v2336_v51 = vmul.f32 %v4021_v27, %v8054_v19  ;;  %v2384_v57 = vmul.f32 %v4021_v27, %v8055_v60  ;;  %v2456_v22 = vmul.f32 %v4021_v27, %v8056_v10  ;;  %v2528_v58 = vmul.f32 %v4021_v27, %v8057_v12 }
 0x222   : > { %v2600_v0 = vmul.f32 %v4021_v27, %v8058_v24  ;;  %v4023_v23 = vpop.eup %4022  ;;  %v2216_v60 = vand.u32 2147483648, %v2085_v48 }
 0x223   : > { %v2360_v25 = vmul.f32 %v4146_v33, %v2336_v51  ;;  %v2408_v37 = vmul.f32 %v4147_v6, %v2384_v57  ;;  %v2480_v19 = vmul.f32 %v4148_v14, %v2456_v22  ;;  %v1550_v10 = vpop.xlane.xlu1 %1549  ;;  %v4025_v24 = vpop.eup %4024  ;;  %v2212_v41 = vmul.f32 %v4023_v23, %v2085_v48 }
 0x224   : > { %v1514_v12 = vpop.xlane.xlu0 %1513  ;;  %v6740_v51 = vadd.f32 %v1827_v1, %v6655_v45  ;;  %v2128_v57 = vmul.f32 %v4025_v24, %v6700_v54  ;;  %v2132_v14 = vand.u32 2147483648, %v6700_v54  ;;  %v6745_v22 = vadd.f32 %v1815_v15, %v6661_v30  ;;  %v4151_v24 = vld [vmem:[%s4721_s7 + $0x3e0] sm:$0xff] }
 0x225   : > { %v2432_v13 = vadd.f32 %v2408_v37, %v2360_v25  ;;  %v6747_v33 = vmax.f32 %v1230_v34, 0.0  ;;  %v2552_v3 = vmul.f32 %v4149_v17, %v2528_v58  ;;  %v2672_v25 = vmul.f32 %v4021_v27, %v6356_v55  ;;  %v4150_v17 = vld [vmem:[%s4721_s7 + $0x320] sm:$0xff] }
 0x226   : > { %v2214_v11 = vsel %vm2213_vm6, %v2085_v48, %v2212_v41  ;;  %v2744_v45 = vmul.f32 %v4021_v27, %v6428_v61  ;;  %v2130_v37 = vsel %vm2129_vm8, %v6700_v54, %v2128_v57  ;;  %v2624_v58 = vmul.f32 %v4150_v17, %v2600_v0 }
 0x227   : > { %8059 = vst [vmem:[#allocation36_spill] sm:$0xff] %v6747_v33  ;;  %v2504_v6 = vadd.f32 %v2480_v19, %v2432_v13  ;;  %v2217_v1 = vsel %vm2215_vm7, %v2216_v60, %v2214_v11  ;;  %v1909_v30 = vmul.f32 %v6747_v33, %v6747_v33  ;;  %v1124_v34 = vpop.xlane.xlu1 %1123  ;;  %v2133_v41 = vsel %vm2131_vm9, %v2132_v14, %v2130_v37  ;;  %v4155_v33 = vld [vmem:[%s4721_s7 + $0x140] sm:$0xff] }
 0x228   : > { %v1088_v13 = vpop.xlane.xlu0 %1087  ;;  %v2277_v55 = vmax.f32 %v2217_v1, 1e-12  ;;  %v2816_v61 = vmul.f32 %v4021_v27, %v6532_v49  ;;  %v6764_v48 = vmax.f32 %v6524_v32, 0.0  ;;  %v2265_v23 = vmax.f32 %v2133_v41, 1e-12 }
 0x229   : > { %v2576_v15 = vadd.f32 %v2552_v3, %v2504_v6  ;;  %v6767_v19 = vadd.f32 %v1909_v30, %v6667_v20  ;;  %v2696_v57 = vmul.f32 %v4151_v24, %v2672_v25  ;;  %v6770_v3 = vmax.f32 %v1124_v34, 0.0  ;;  %v4152_v6 = vld [vmem:[%s4721_s7 + $0x4a0] sm:$0xff]  ;;  %v8068_v24 = vld [vmem:[#allocation37_spill] sm:$0xff] }
 0x22a   : > { %4028 = vrcp.f32 %v2277_v55  ;;  %v6773_v0 = vmax.f32 %v6622_v42, 0.0  ;;  %v6776_v49 = vmax.f32 %v6624_v62, 0.0  ;;  %v6779_v32 = vmax.f32 %v6710_v2, 0.0  ;;  %v4153_v30 = vld [vmem:[%s4721_s7 + $0x560] sm:$0xff] }
 0x22b   : > { %v2648_v60 = vadd.f32 %v2624_v58, %v2576_v15  ;;  %8060 = vst [vmem:[#allocation49_spill] sm:$0xff] %v6770_v3  ;;  %v6781_v54 = vmax.f32 %v1088_v13, 0.0  ;;  %v6783_v20 = vpop.xlane.xlu1 %1407  ;;  %v2768_v25 = vmul.f32 %v4152_v6, %v2744_v45  ;;  %4030 = vrcp.f32 %v2265_v23  ;;  %v8067_v23 = vld [vmem:[#allocation35_spill] sm:$0xff] }
 0x22c   : > { %8061 = vst [vmem:[#allocation88_spill] sm:$0xff] %v6773_v0  ;;  %8062 = vst [vmem:[#allocation17_spill] sm:$0xff] %v6776_v49  ;;  %v6785_v27 = vpop.xlane.xlu0 %1371  ;;  %v1874_v42 = vmul.f32 %v6770_v3, %v6770_v3  ;;  %v6791_v11 = vmax.f32 %v6712_v31, 0.0  ;;  %v6793_v62 = vmax.f32 %v1550_v10, 0.0  ;;  %v6795_v2 = vmax.f32 %v1514_v12, 0.0  ;;  %v4027_v55 = vpop.eup %4026 }
 0x22d   : > { %8063 = vst [vmem:[#allocation18_spill] sm:$0xff] %v6781_v54  ;;  %v2720_v14 = vadd.f32 %v2696_v57, %v2648_v60  ;;  %v1862_v1 = vmul.f32 %v6781_v54, %v6781_v54  ;;  %v2840_v34 = vmul.f32 %v4153_v30, %v2816_v61  ;;  %v1966_v45 = vmul.f32 %v6764_v48, %v6764_v48  ;;  %v8072_v30 = vld [vmem:[#allocation84_spill] sm:$0xff]  ;;  %v8073_v54 = vld [vmem:[#allocation7_spill] sm:$0xff] }
 0x22e   : > { %8064 = vst [vmem:[#allocation26_spill] sm:$0xff] %v6791_v11  ;;  %8065 = vst [vmem:[#allocation38_spill] sm:$0xff] %v6793_v62  ;;  %v6801_v13 = vadd.f32 %v1874_v42, %v6704_v8  ;;  %v1967_v31 = vmul.f32 %v6773_v0, %v6773_v0  ;;  %v1955_v58 = vmul.f32 %v6776_v49, %v6776_v49  ;;  %v4161_v49 = vld [vmem:[%s4721_s7 + $0x440] sm:$0xff]  ;;  %vm3143_vm9 = vcmask 261120  }
 0x22f   : > { %8066 = vst [vmem:[#allocation48_spill] sm:$0xff] %v6795_v2  ;;  %v2792_v37 = vadd.f32 %v2768_v25, %v2720_v14  ;;  %v6808_v10 = vadd.f32 %v1862_v1, %v6707_v26  ;;  %v1692_v12 = vpop.xlane.xlu1 %1691  ;;  %v2014_v8 = vmul.f32 %v6779_v32, %v6779_v32  ;;  %v2002_v41 = vmul.f32 %v6791_v11, %v6791_v11  ;;  %v8069_v14 = vld [vmem:[#allocation46_spill] sm:$0xff]  ;;  %v8070_v25 = vld [vmem:[#allocation64_spill] sm:$0xff]  ;;  %v8071_v1 = vld [vmem:[#allocation25_spill] sm:$0xff] }
 0x230   : > { %v1656_v15 = vpop.xlane.xlu0 %1655  ;;  %v2015_v61 = vmul.f32 %v6793_v62, %v6793_v62  ;;  %v2003_v26 = vmul.f32 %v6795_v2, %v6795_v2  ;;  %v2348_v60 = vmul.f32 %v4027_v55, %v8067_v23  ;;  %v2396_v57 = vmul.f32 %v4027_v55, %v8068_v24  ;;  %v4154_v24 = vld [vmem:[%s4721_s7 + $0x80] sm:$0xff] }
 0x231   : > { %v2864_v17 = vadd.f32 %v2840_v34, %v2792_v37  ;;  %v2468_v6 = vmul.f32 %v4027_v55, %v8069_v14  ;;  %v2540_v42 = vmul.f32 %v4027_v55, %v8070_v25  ;;  %v1990_v37 = vadd.f32 %v1966_v45, %v8071_v1 }
 0x232   : > { %v2612_v34 = vmul.f32 %v4027_v55, %v8072_v30  ;;  %v2684_v35 = vmul.f32 %v4027_v55, %v8073_v54  ;;  %v1991_v3 = vadd.f32 %v1967_v31, %v6496_v7  ;;  %v2372_v14 = vmul.f32 %v4154_v24, %v2348_v60  ;;  %v4156_v60 = vld [vmem:[%s4721_s7 + $0x200] sm:$0xff] }
 0x233   : > { %3794 = vmatprep.mubr.msk.f32.mxu0 %vm620_vm0, %v2864_v17  ;;  %v6829_v43 = vpop.xlane.xlu1 %1126  ;;  %v2420_v25 = vmul.f32 %v4155_v33, %v2396_v57  ;;  %v1979_v17 = vadd.f32 %v1955_v58, %v6499_v56  ;;  %v6837_v45 = vmax.f32 %v6696_v63, 0.0  ;;  %v6840_v1 = vmax.f32 %v6698_v47, 0.0  ;;  %v4157_v58 = vld [vmem:[%s4721_s7 + $0x2c0] sm:$0xff] }
 0x234   : > { %v6831_v23 = vpop.xlane.xlu0 %1090  ;;  %v6842_v54 = vadd.f32 %v2014_v8, %v1990_v37  ;;  %v6845_v7 = vadd.f32 %v2002_v41, %v6545_v36  ;;  %v6848_v31 = vmax.f32 %v6725_v38, 0.0  ;;  %v2492_v24 = vmul.f32 %v4156_v60, %v2468_v6  ;;  %v8076_v6 = vld [vmem:[#allocation41_spill] sm:$0xff] }
 0x235   : > { %v2444_v30 = vadd.f32 %v2420_v25, %v2372_v14  ;;  %v6851_v33 = vadd.f32 %v2015_v61, %v1991_v3  ;;  %v6853_v56 = vadd.f32 %v2003_v26, %v1979_v17  ;;  %v2564_v57 = vmul.f32 %v4157_v58, %v2540_v42  ;;  %v8075_v61 = vld [vmem:[#allocation40_spill] sm:$0xff]  ;;  %v8077_v42 = vld [vmem:[#allocation50_spill] sm:$0xff]  ;;  %v8080_v58 = vld [vmem:[#allocation67_spill] sm:$0xff] }
 0x236   : > { %v2756_v47 = vmul.f32 %v4027_v55, %v6510_v59  ;;  %v6857_v8 = vmax.f32 %v1692_v12, 0.0  ;;  %v6859_v36 = vmax.f32 %v1656_v15, 0.0  ;;  %v2828_v12 = vmul.f32 %v4027_v55, %v6595_v44  ;;  %v8078_v15 = vld [vmem:[#allocation72_spill] sm:$0xff] }
 0x237   : > { %v4029_v63 = vpop.eup %4028  ;;  %v6861_v38 = vpop.xlane.xlu1 %1410  ;;  %v2516_v3 = vadd.f32 %v2492_v24, %v2444_v30  ;;  %v8079_v17 = vld [vmem:[#allocation92_spill] sm:$0xff] }
 0x238   : > { %8074 = vst [vmem:[#allocation89_spill] sm:$0xff] %v6859_v36  ;;  %v6863_v41 = vpop.xlane.xlu0 %1374  ;;  %v2349_v26 = vmul.f32 %v4029_v63, %v8075_v61  ;;  %v2397_v37 = vmul.f32 %v4029_v63, %v8076_v6  ;;  %v2469_v14 = vmul.f32 %v4029_v63, %v8077_v42  ;;  %v6868_v59 = vpop.eup %4030  ;;  %v2541_v25 = vmul.f32 %v4029_v63, %v8078_v15  ;;  %v4158_v30 = vld [vmem:[%s4721_s7 + $0x380] sm:$0xff]  ;;  %v4159_v61 = vld [vmem:[%s4721_s7 + $0x88] sm:$0xff] }
 0x239   : > { %v2613_v60 = vmul.f32 %v4029_v63, %v8079_v17  ;;  %v2685_v53 = vmul.f32 %v4029_v63, %v8080_v58  ;;  %v2588_v21 = vadd.f32 %v2564_v57, %v2516_v3  ;;  %v2636_v24 = vmul.f32 %v4158_v30, %v2612_v34  ;;  %v4160_v6 = vld [vmem:[%s4721_s7 + $0x148] sm:$0xff]  ;;  %v8083_v17 = vld [vmem:[#allocation51_spill] sm:$0xff] }
 0x23a   : > { %v2373_v50 = vmul.f32 %v4159_v61, %v2349_v26  ;;  %v2421_v2 = vmul.f32 %v4160_v6, %v2397_v37  ;;  %v2708_v42 = vmul.f32 %v4161_v49, %v2684_v35  ;;  %v2780_v62 = vmul.f32 %v4162_v9, %v2756_v47  ;;  %v4163_v37 = vld [vmem:[%s4721_s7 + $0x208] sm:$0xff]  ;;  %v8081_v49 = vld [vmem:[#allocation39_spill] sm:$0xff]  ;;  %v8082_v47 = vld [vmem:[#allocation42_spill] sm:$0xff] }
 0x23b   : > { %v2062_v44 = vmul.f32 %v6857_v8, %v6857_v8  ;;  %v2050_v55 = vmul.f32 %v6859_v36, %v6859_v36  ;;  %v6883_v57 = vpop.xlane.xlu1 %1694  ;;  %v2660_v34 = vadd.f32 %v2636_v24, %v2588_v21  ;;  %v2493_v35 = vmul.f32 %v4163_v37, %v2469_v14  ;;  %v8084_v30 = vld [vmem:[#allocation73_spill] sm:$0xff] }
 0x23c   : > { %v6885_v3 = vpop.xlane.xlu0 %1658  ;;  %v2445_v26 = vadd.f32 %v2421_v2, %v2373_v50  ;;  %v2337_v9 = vmul.f32 %v6868_v59, %v8081_v49  ;;  %v2385_v15 = vmul.f32 %v6868_v59, %v8082_v47  ;;  %v2457_v58 = vmul.f32 %v6868_v59, %v8083_v17  ;;  %v8085_v6 = vld [vmem:[#allocation93_spill] sm:$0xff]  ;;  %v4166_v49 = vld [vmem:[%s4721_s7 + $0x5c0] sm:$0xff] }
 0x23d   : > { %v2529_v61 = vmul.f32 %v6868_v59, %v8084_v30  ;;  %v2601_v0 = vmul.f32 %v6868_v59, %v8085_v6  ;;  %v2732_v21 = vadd.f32 %v2708_v42, %v2660_v34  ;;  %v4164_v2 = vld [vmem:[%s4721_s7 + $0x2c8] sm:$0xff]  ;;  %v2852_v36 = vmul.f32 %v4166_v49, %v2828_v12 }
 0x23e   : > { %v2517_v50 = vadd.f32 %v2493_v35, %v2445_v26  ;;  %v2565_v14 = vmul.f32 %v4164_v2, %v2541_v25  ;;  %v4165_v24 = vld [vmem:[%s4721_s7 + $0x28] sm:$0xff]  ;;  %v2757_v47 = vmul.f32 %v4029_v63, %v6556_v5  ;;  %v2409_v17 = vmul.f32 %v4167_v52, %v2385_v15 }
 0x23f   : > { %v2361_v37 = vmul.f32 %v4165_v24, %v2337_v9  ;;  %v6904_v30 = vmax.f32 %v6829_v43, 0.0  ;;  %v6906_v11 = vpop.xlane.xlu1 %1268  ;;  %v2804_v34 = vadd.f32 %v2780_v62, %v2732_v21  ;;  %v4168_v26 = vld [vmem:[%s4721_s7 + $0x388] sm:$0xff]  ;;  %v2829_v9 = vmul.f32 %v4029_v63, %v6676_v16 }
 0x240   : > { %v6908_v42 = vpop.xlane.xlu0 %1232  ;;  %v2589_v25 = vadd.f32 %v2565_v14, %v2517_v50  ;;  %v2637_v35 = vmul.f32 %v4168_v26, %v2613_v60  ;;  %v4169_v6 = vld [vmem:[%s4721_s7 + $0x1a8] sm:$0xff]  ;;  %v6914_v52 = vadd.f32 %v2062_v44, %v6842_v54  ;;  %v6917_v43 = vadd.f32 %v2050_v55, %v6845_v7 }
 0x241   : > { %8086 = vst [vmem:[#allocation21_spill] sm:$0xff] %v6904_v30  ;;  %v2433_v12 = vadd.f32 %v2409_v17, %v2361_v37  ;;  %v2481_v5 = vmul.f32 %v4169_v6, %v2457_v58  ;;  %v2876_v15 = vadd.f32 %v2852_v36, %v2804_v34  ;;  %v4170_v24 = vld [vmem:[%s4721_s7 + $0x448] sm:$0xff]  ;;  %v6921_v21 = vmax.f32 %v6831_v23, 0.0 }
 0x242   : > { %v2661_v2 = vadd.f32 %v2637_v35, %v2589_v25  ;;  %v2709_v62 = vmul.f32 %v4170_v24, %v2685_v53  ;;  %v4171_v16 = vld [vmem:[%s4721_s7 + $0x268] sm:$0xff]  ;;  %v2673_v58 = vmul.f32 %v6868_v59, %v6407_v46  ;;  %4032 = vrsqrt.f32 %v6914_v52 }
 0x243   : > { %8087 = vst [vmem:[#allocation22_spill] sm:$0xff] %v6921_v21  ;;  %v2505_v60 = vadd.f32 %v2481_v5, %v2433_v12  ;;  %v2553_v63 = vmul.f32 %v4171_v16, %v2529_v61  ;;  %v6927_v54 = vpop.xlane.xlu1 %1552  ;;  %v4172_v44 = vld [vmem:[%s4721_s7 + $0x508] sm:$0xff]  ;;  %v6933_v23 = vmax.f32 %v6783_v20, 0.0  ;;  %4034 = vrsqrt.f32 %v6917_v43  ;;  %3812 = vmatprep.mubr.msk.f32.mxu1 %vm620_vm0, %v2876_v15 }
 0x244   : > { %v6929_v7 = vpop.xlane.xlu0 %1516  ;;  %v2733_v36 = vadd.f32 %v2709_v62, %v2661_v2  ;;  %v2781_v53 = vmul.f32 %v4172_v44, %v2757_v47  ;;  %v4173_v55 = vld [vmem:[%s4721_s7 + $0x5c8] sm:$0xff]  ;;  %v2745_v37 = vmul.f32 %v6868_v59, %v6561_v29  ;;  %v2817_v47 = vmul.f32 %v6868_v59, %v6678_v28 }
 0x245   : > { %v2853_v61 = vmul.f32 %v4173_v55, %v2829_v9  ;;  %v2577_v46 = vadd.f32 %v2553_v63, %v2505_v60  ;;  %v4174_v50 = vld [vmem:[%s4721_s7 + $0x328] sm:$0xff]  ;;  %v1875_v20 = vmul.f32 %v6904_v30, %v6904_v30  ;;  %v1863_v17 = vmul.f32 %v6921_v21, %v6921_v21  ;;  %v4181_v21 = vld [vmem:[%s4721_s7 + $0x2d0] sm:$0xff] }
 0x246   : > { %v2625_v14 = vmul.f32 %v4174_v50, %v2601_v0  ;;  %v2805_v49 = vadd.f32 %v2781_v53, %v2733_v36  ;;  %v4175_v25 = vld [vmem:[%s4721_s7 + $0x3e8] sm:$0xff]  ;;  %v6949_v35 = vmax.f32 %v6883_v57, 0.0  ;;  %v6952_v0 = vmax.f32 %v6885_v3, 0.0 }
 0x247   : > { %v2697_v26 = vmul.f32 %v4175_v25, %v2673_v58  ;;  %v6954_v29 = vpop.xlane.xlu1 %1271  ;;  %v6957_v28 = vmax.f32 %v6785_v27, 0.0  ;;  %v6960_v59 = vadd.f32 %v1875_v20, %v6740_v51  ;;  %v6963_v12 = vadd.f32 %v1863_v17, %v6745_v22  ;;  %v4176_v5 = vld [vmem:[%s4721_s7 + $0x4a8] sm:$0xff] }
 0x248   : > { %v2649_v34 = vadd.f32 %v2625_v14, %v2577_v46  ;;  %v2877_v9 = vadd.f32 %v2853_v61, %v2805_v49  ;;  %v6965_v6 = vpop.xlane.xlu0 %1235  ;;  %v2769_v15 = vmul.f32 %v4176_v5, %v2745_v37  ;;  %v2063_v3 = vmul.f32 %v6949_v35, %v6949_v35  ;;  %v4177_v24 = vld [vmem:[%s4721_s7 + $0x568] sm:$0xff] }
 0x249   : > { %v2051_v2 = vmul.f32 %v6952_v0, %v6952_v0  ;;  %v1920_v27 = vmul.f32 %v6837_v45, %v6837_v45  ;;  %v1908_v51 = vmul.f32 %v6840_v1, %v6840_v1  ;;  %v2841_v62 = vmul.f32 %v4177_v24, %v2817_v47 }
 0x24a   : > { %v2721_v57 = vadd.f32 %v2697_v26, %v2649_v34  ;;  %3813 = vmatmul.mubr.msk.f32.gmra.mxu1 %vm620_vm0, %v2877_v9  ;;  %v6979_v60 = vadd.f32 %v2063_v3, %v6851_v33  ;;  %v1921_v58 = vmul.f32 %v6848_v31, %v6848_v31  ;;  %v1968_v36 = vmul.f32 %v6933_v23, %v6933_v23 }
 0x24b   : > { %v6982_v16 = vadd.f32 %v2051_v2, %v6853_v56  ;;  %v1556_v63 = vpop.xlane.xlu1 %1555  ;;  %v1956_v44 = vmul.f32 %v6957_v28, %v6957_v28  ;;  %v6991_v61 = vmax.f32 %v6861_v38, 0.0  ;;  %v6994_v33 = vmax.f32 %v6863_v41, 0.0 }
 0x24c   : > { %v2793_v22 = vadd.f32 %v2769_v15, %v2721_v57  ;;  %v1520_v53 = vpop.xlane.xlu0 %1519  ;;  %4036 = vrsqrt.f32 %v6979_v60  ;;  %v1944_v56 = vadd.f32 %v1920_v27, %v6550_v40  ;;  %v1932_v46 = vadd.f32 %v1908_v51, %v6540_v18 }
 0x24d   : > { %4038 = vrsqrt.f32 %v6982_v16  ;;  %v1945_v37 = vadd.f32 %v1921_v58, %v6664_v4  ;;  %vm2220_vm10 = vcmp.eq.f32.partialorder %v6914_v52, inf  ;;  %vm2222_vm11 = vcmp.eq.f32.partialorder %v6914_v52, 0.0 }
 0x24e   : > { %v2865_v55 = vadd.f32 %v2841_v62, %v2793_v22  ;;  %v1992_v49 = vadd.f32 %v1968_v36, %v1944_v56  ;;  %v1980_v38 = vadd.f32 %v1956_v44, %v1932_v46  ;;  %v1969_v18 = vmul.f32 %v6991_v61, %v6991_v61 }
 0x24f   : > { %v4033_v14 = vpop.eup %4032  ;;  %v1957_v40 = vmul.f32 %v6994_v33, %v6994_v33  ;;  %v2223_v17 = vand.u32 2147483648, %v6914_v52  ;;  %v7012_v34 = vmax.f32 %v6906_v11, 0.0  ;;  %v7015_v25 = vmax.f32 %v6927_v54, 0.0 }
 0x250   : > { %3795 = vmatmul.mubr.msk.f32.gmra.mxu0 %vm620_vm0, %v2865_v55  ;;  %v1414_v50 = vpop.xlane.xlu1 %1413  ;;  %v4035_v47 = vpop.eup %4034  ;;  %v2219_v20 = vmul.f32 %v4033_v14, %v6914_v52  ;;  %vm2136_vm12 = vcmp.eq.f32.partialorder %v6917_v43, inf  ;;  %v2139_v9 = vand.u32 2147483648, %v6917_v43  ;;  %v7021_v57 = vmax.f32 %v6908_v42, 0.0 }
 0x251   : > { %v1378_v41 = vpop.xlane.xlu0 %1377  ;;  %v2135_v4 = vmul.f32 %v4035_v47, %v6917_v43  ;;  %8088 = vst [vmem:[#allocation29_spill] sm:$0xff] %v7012_v34  ;;  %vm2138_vm13 = vcmp.eq.f32.partialorder %v6917_v43, 0.0  ;;  %v7026_v11 = vmax.f32 %v6929_v7, 0.0  ;;  %v1981_v51 = vadd.f32 %v1957_v40, %v6767_v19 }
 0x252   : > { %v2221_v26 = vsel %vm2220_vm10, %v6914_v52, %v2219_v20  ;;  %8089 = vst [vmem:[#allocation43_spill] sm:$0xff] %v7021_v57  ;;  %v1993_v52 = vadd.f32 %v1969_v18, %v1945_v37  ;;  %v1922_v42 = vmul.f32 %v7012_v34, %v7012_v34  ;;  %v2016_v24 = vmul.f32 %v7015_v25, %v7015_v25 }
 0x253   : > { %v2224_v15 = vsel %vm2222_vm11, %v2223_v17, %v2221_v26  ;;  %v2137_v3 = vsel %vm2136_vm12, %v6917_v43, %v2135_v4  ;;  %vm2227_vm14 = vcmp.eq.f32.partialorder %v6979_v60, inf  ;;  %v1910_v43 = vmul.f32 %v7021_v57, %v7021_v57 }
 0x254   : > { %v1698_v5 = vpop.xlane.xlu1 %1697  ;;  %v2278_v2 = vmax.f32 %v2224_v15, 1e-12  ;;  %v2140_v27 = vsel %vm2138_vm13, %v2139_v9, %v2137_v3  ;;  %vm2229_vm15 = vcmp.eq.f32.partialorder %v6979_v60, 0.0  ;;  %v2230_v19 = vand.u32 2147483648, %v6979_v60 }
 0x255   : > { %v1662_v54 = vpop.xlane.xlu0 %1661  ;;  %v2266_v22 = vmax.f32 %v2140_v27, 1e-12  ;;  %v7033_v62 = vmax.f32 %v1698_v5, 0.0  ;;  %v2004_v36 = vmul.f32 %v7026_v11, %v7026_v11  ;;  %vm2143_vm1 = vcmp.eq.f32.partialorder %v6982_v16, inf }
 0x256   : > { %4040 = vrcp.f32 %v2278_v2  ;;  %v7038_v7 = vmax.f32 %v1662_v54, 0.0  ;;  %v7048_v56 = vmax.f32 %v6954_v29, 0.0  ;;  %v7050_v46 = vmax.f32 %v1556_v63, 0.0 }
 0x257   : > { %v2064_v44 = vmul.f32 %v7033_v62, %v7033_v62  ;;  %4042 = vrcp.f32 %v2266_v22  ;;  %vm2145_vm2 = vcmp.eq.f32.partialorder %v6982_v16, 0.0  ;;  %v2040_v37 = vadd.f32 %v2016_v24, %v1992_v49 }
 0x258   : > { %v1417_v58 = vpop.xlane.xlu1 %1416  ;;  %8090 = vst [vmem:[#allocation52_spill] sm:$0xff] %v7048_v56  ;;  %v7053_v47 = vmax.f32 %v1520_v53, 0.0  ;;  %v2052_v20 = vmul.f32 %v7038_v7, %v7038_v7  ;;  %v2146_v17 = vand.u32 2147483648, %v6982_v16  ;;  %v1946_v4 = vadd.f32 %v1922_v42, %v6801_v13 }
 0x259   : > { %v1381_v55 = vpop.xlane.xlu0 %1380  ;;  %v4037_v14 = vpop.eup %4036  ;;  %v7060_v29 = vmax.f32 %v1414_v50, 0.0  ;;  %v2028_v9 = vadd.f32 %v2004_v36, %v1980_v38  ;;  %v7064_v49 = vmax.f32 %v6965_v6, 0.0  ;;  %v7066_v53 = vadd.f32 %v2064_v44, %v2040_v37 }
 0x25a   : > { %8091 = vst [vmem:[#allocation77_spill] sm:$0xff] %v7053_v47  ;;  %v4039_v18 = vpop.eup %4038  ;;  %v2226_v40 = vmul.f32 %v4037_v14, %v6979_v60  ;;  %v1923_v3 = vmul.f32 %v7048_v56, %v7048_v56  ;;  %v2017_v13 = vmul.f32 %v7050_v46, %v7050_v46  ;;  %v7075_v50 = vmax.f32 %v1378_v41, 0.0 }
 0x25b   : > { %8092 = vst [vmem:[#allocation20_spill] sm:$0xff] %v7060_v29  ;;  %v2142_v26 = vmul.f32 %v4039_v18, %v6982_v16  ;;  %8093 = vst [vmem:[#allocation23_spill] sm:$0xff] %v7064_v49  ;;  %v2005_v54 = vmul.f32 %v7053_v47, %v7053_v47  ;;  %v7084_v2 = vadd.f32 %v2052_v20, %v2028_v9  ;;  %v7090_v42 = vmax.f32 %v1417_v58, 0.0  ;;  %v8100_v9 = vld [vmem:[#allocation61_spill] sm:$0xff]  ;;  %v4205_v47 = vld [vmem:[%s4721_s7 + $0x278] sm:$0xff] }
 0x25c   : > { %v1701_v63 = vpop.xlane.xlu1 %1700  ;;  %v2228_v15 = vsel %vm2227_vm14, %v6979_v60, %v2226_v40  ;;  %8094 = vst [vmem:[#allocation30_spill] sm:$0xff] %v7075_v50  ;;  %v1970_v41 = vmul.f32 %v7060_v29, %v7060_v29  ;;  %4044 = vrsqrt.f32 %v7066_v53  ;;  %v7098_v14 = vadd.f32 %v1910_v43, %v6808_v10  ;;  %v4190_v29 = vld [vmem:[%s4721_s7 + $0x330] sm:$0xff] }
 0x25d   : > { %v1665_v5 = vpop.xlane.xlu0 %1664  ;;  %v2231_v38 = vsel %vm2229_vm15, %v2230_v19, %v2228_v15  ;;  %v2144_v6 = vsel %vm2143_vm1, %v6982_v16, %v2142_v26  ;;  %8095 = vst [vmem:[#allocation44_spill] sm:$0xff] %v7090_v42  ;;  %v7093_v19 = vmax.f32 %v1701_v63, 0.0  ;;  %v7101_v16 = vadd.f32 %v1923_v3, %v6960_v59  ;;  %v8099_v63 = vld [vmem:[#allocation58_spill] sm:$0xff] }
 0x25e   : > { %v2279_v27 = vmax.f32 %v2231_v38, 1e-12  ;;  %v2147_v22 = vsel %vm2145_vm2, %v2146_v17, %v2144_v6  ;;  %v7095_v36 = vmax.f32 %v1665_v5, 0.0  ;;  %v7105_v58 = vmul.f32 %v7064_v49, %v7064_v49  ;;  %v8101_v15 = vld [vmem:[#allocation82_spill] sm:$0xff] }
 0x25f   : > { %v2267_v24 = vmax.f32 %v2147_v22, 1e-12  ;;  %v2041_v37 = vadd.f32 %v2017_v13, %v1993_v52  ;;  %v2029_v20 = vadd.f32 %v2005_v54, %v1981_v51  ;;  %v7110_v40 = vadd.f32 %v1970_v41, %v1946_v4  ;;  %v8102_v13 = vld [vmem:[#allocation6_spill] sm:$0xff]  ;;  %v8103_v54 = vld [vmem:[#allocation81_spill] sm:$0xff] }
 0x260   : > { %v1559_v60 = vpop.xlane.xlu1 %1558  ;;  %8096 = vst [vmem:[#allocation53_spill] sm:$0xff] %v7095_v36  ;;  %4046 = vrcp.f32 %v2279_v27  ;;  %v7114_v17 = vmul.f32 %v7075_v50, %v7075_v50  ;;  %v2065_v10 = vmul.f32 %v7093_v19, %v7093_v19  ;;  %v7122_v52 = vmul.f32 %v7090_v42, %v7090_v42  ;;  %v4182_v42 = vld [vmem:[%s4721_s7 + $0x30] sm:$0xff] }
 0x261   : > { %v1523_v44 = vpop.xlane.xlu0 %1522  ;;  %4048 = vrsqrt.f32 %v7084_v2  ;;  %v7108_v18 = vmax.f32 %v1559_v60, 0.0  ;;  %v7124_v51 = vmax.f32 %v1381_v55, 0.0  ;;  %v2053_v4 = vmul.f32 %v7095_v36, %v7095_v36  ;;  %v4178_v60 = vld [vmem:[%s4721_s7 + $0x90] sm:$0xff] }
 0x262   : > { %v7118_v59 = vmax.f32 %v1523_v44, 0.0  ;;  %4050 = vrcp.f32 %v2267_v24  ;;  %v4179_v44 = vld [vmem:[%s4721_s7 + $0x150] sm:$0xff]  ;;  %vm2234_vm3 = vcmp.eq.f32.partialorder %v7066_v53, inf  ;;  %vm2150_vm4 = vcmp.eq.f32.partialorder %v7084_v2, inf }
 0x263   : > { %8097 = vst [vmem:[#allocation78_spill] sm:$0xff] %v7108_v18  ;;  %v4041_v43 = vpop.eup %4040  ;;  %v7139_v41 = vmul.f32 %v7108_v18, %v7108_v18  ;;  %v7152_v49 = vadd.f32 %v2053_v4, %v2029_v20  ;;  %v8108_v4 = vld [vmem:[#allocation86_spill] sm:$0xff]  ;;  %vm2236_vm5 = vcmp.eq.f32.partialorder %v7066_v53, 0.0  ;;  %vm2152_vm6 = vcmp.eq.f32.partialorder %v7084_v2, 0.0 }
 0x264   : > { %8098 = vst [vmem:[#allocation33_spill] sm:$0xff] %v7118_v59  ;;  %v2350_v26 = vmul.f32 %v4041_v43, %v8099_v63  ;;  %v2398_v5 = vmul.f32 %v4041_v43, %v8100_v9  ;;  %v2470_v3 = vmul.f32 %v4041_v43, %v8101_v15  ;;  %v2542_v38 = vmul.f32 %v4041_v43, %v8102_v13  ;;  %v7132_v6 = vpop.eup %4042  ;;  %v4180_v13 = vld [vmem:[%s4721_s7 + $0x210] sm:$0xff] }
 0x265   : > { %v2614_v27 = vmul.f32 %v4041_v43, %v8103_v54  ;;  %v7143_v9 = vadd.f32 %v2065_v10, %v2041_v37  ;;  %v7147_v15 = vmul.f32 %v7118_v59, %v7118_v59  ;;  %v2686_v55 = vmul.f32 %v4041_v43, %v6764_v48  ;;  %v8105_v10 = vld [vmem:[#allocation56_spill] sm:$0xff]  ;;  %v4184_v59 = vld [vmem:[%s4721_s7 + $0x390] sm:$0xff] }
 0x266   : > { %v2374_v24 = vmul.f32 %v4178_v60, %v2350_v26  ;;  %v2422_v63 = vmul.f32 %v4179_v44, %v2398_v5  ;;  %v2494_v54 = vmul.f32 %v4180_v13, %v2470_v3  ;;  %v2758_v22 = vmul.f32 %v4041_v43, %v6779_v32  ;;  %v8104_v60 = vld [vmem:[#allocation55_spill] sm:$0xff]  ;;  %v1562_v13 = vpop.xlane.xlu1 %1561  ;;  %v4186_v50 = vld [vmem:[%s4721_s7 + $0x510] sm:$0xff] }
 0x267   : > { %v2338_v37 = vmul.f32 %v7132_v6, %v8104_v60  ;;  %v2386_v5 = vmul.f32 %v7132_v6, %v8105_v10  ;;  %v8106_v44 = vld [vmem:[#allocation83_spill] sm:$0xff]  ;;  %v2830_v48 = vmul.f32 %v4041_v43, %v6857_v8  ;;  %v2566_v10 = vmul.f32 %v4181_v21, %v2542_v38  ;;  %v4185_v43 = vld [vmem:[%s4721_s7 + $0x450] sm:$0xff] }
 0x268   : > { %v2446_v26 = vadd.f32 %v2422_v63, %v2374_v24  ;;  %v2458_v3 = vmul.f32 %v7132_v6, %v8106_v44  ;;  %v8107_v32 = vld [vmem:[#allocation63_spill] sm:$0xff]  ;;  %v2602_v24 = vmul.f32 %v7132_v6, %v8108_v4  ;;  %v2674_v63 = vmul.f32 %v7132_v6, %v6516_v39  ;;  %v4183_v44 = vld [vmem:[%s4721_s7 + $0xf0] sm:$0xff] }
 0x269   : > { %v2530_v20 = vmul.f32 %v7132_v6, %v8107_v32  ;;  %v2362_v56 = vmul.f32 %v4182_v42, %v2338_v37  ;;  %v2410_v30 = vmul.f32 %v4183_v44, %v2386_v5  ;;  %v2638_v8 = vmul.f32 %v4184_v59, %v2614_v27  ;;  %v4045_v39 = vpop.eup %4044  ;;  %v4187_v21 = vld [vmem:[%s4721_s7 + $0x1b0] sm:$0xff] }
 0x26a   : > { %v2518_v60 = vadd.f32 %v2494_v54, %v2446_v26  ;;  %v2710_v32 = vmul.f32 %v4185_v43, %v2686_v55  ;;  %v2782_v4 = vmul.f32 %v4186_v50, %v2758_v22  ;;  %v7173_v57 = vmax.f32 %v1562_v13, 0.0  ;;  %v8109_v42 = vld [vmem:[#allocation26_spill] sm:$0xff] }
 0x26b   : > { %v2434_v26 = vadd.f32 %v2410_v30, %v2362_v56  ;;  %v2482_v38 = vmul.f32 %v4187_v21, %v2458_v3  ;;  %v2746_v37 = vmul.f32 %v7132_v6, %v8109_v42  ;;  %v4188_v44 = vld [vmem:[%s4721_s7 + $0x5d0] sm:$0xff]  ;;  %v2626_v55 = vmul.f32 %v4190_v29, %v2602_v24  ;;  %v8110_v3 = vld [vmem:[#allocation68_spill] sm:$0xff]  ;;  %v8113_v42 = vld [vmem:[#allocation65_spill] sm:$0xff] }
 0x26c   : > { %v2590_v54 = vadd.f32 %v2566_v10, %v2518_v60  ;;  %v2854_v18 = vmul.f32 %v4188_v44, %v2830_v48  ;;  %v4189_v59 = vld [vmem:[%s4721_s7 + $0x270] sm:$0xff]  ;;  %4052 = vrsqrt.f32 %v7143_v9  ;;  %vm2241_vm7 = vcmp.eq.f32.partialorder %v7143_v9, inf }
 0x26d   : > { %v4047_v5 = vpop.eup %4046  ;;  %v2554_v27 = vmul.f32 %v4189_v59, %v2530_v20  ;;  %v2506_v13 = vadd.f32 %v2482_v38, %v2434_v26  ;;  %v4191_v30 = vld [vmem:[%s4721_s7 + $0x3f0] sm:$0xff]  ;;  %v4193_v26 = vld [vmem:[%s4721_s7 + $0x98] sm:$0xff]  ;;  %vm2243_vm8 = vcmp.eq.f32.partialorder %v7143_v9, 0.0  ;;  %vm2157_vm10 = vcmp.eq.f32.partialorder %v7152_v49, inf }
 0x26e   : > { %v4049_v50 = vpop.eup %4048  ;;  %v2662_v22 = vadd.f32 %v2638_v8, %v2590_v54  ;;  %v2698_v56 = vmul.f32 %v4191_v30, %v2674_v63  ;;  %v2351_v60 = vmul.f32 %v4047_v5, %v8110_v3  ;;  %v8111_v10 = vld [vmem:[#allocation70_spill] sm:$0xff]  ;;  %v2543_v20 = vmul.f32 %v4047_v5, %v8113_v42  ;;  %v8115_v63 = vld [vmem:[#allocation89_spill] sm:$0xff]  ;;  %v4194_v3 = vld [vmem:[%s4721_s7 + $0x158] sm:$0xff] }
 0x26f   : > { %v2399_v43 = vmul.f32 %v4047_v5, %v8111_v10  ;;  %v8112_v21 = vld [vmem:[#allocation90_spill] sm:$0xff]  ;;  %v7188_v29 = vpop.eup %4050  ;;  %v2578_v34 = vadd.f32 %v2554_v27, %v2506_v13  ;;  %v2818_v30 = vmul.f32 %v7132_v6, %v8115_v63  ;;  %v2149_v42 = vmul.f32 %v4049_v50, %v7084_v2  ;;  %v4195_v27 = vld [vmem:[%s4721_s7 + $0x218] sm:$0xff]  ;;  %v7211_v63 = vpop.xlane.xlu0 %1525 }
 0x270   : > { %v2471_v48 = vmul.f32 %v4047_v5, %v8112_v21  ;;  %v8114_v44 = vld [vmem:[#allocation62_spill] sm:$0xff]  ;;  %v2734_v24 = vadd.f32 %v2710_v32, %v2662_v22  ;;  %v2375_v38 = vmul.f32 %v4193_v26, %v2351_v60  ;;  %v2233_v21 = vmul.f32 %v4045_v39, %v7066_v53  ;;  %v8116_v22 = vld [vmem:[#allocation88_spill] sm:$0xff] }
 0x271   : > { %v2615_v59 = vmul.f32 %v4047_v5, %v8114_v44  ;;  %v4192_v8 = vld [vmem:[%s4721_s7 + $0x4b0] sm:$0xff]  ;;  %v2423_v10 = vmul.f32 %v4194_v3, %v2399_v43  ;;  %v2650_v32 = vadd.f32 %v2626_v55, %v2578_v34  ;;  %v2687_v13 = vmul.f32 %v4047_v5, %v8116_v22  ;;  %v4196_v3 = vld [vmem:[%s4721_s7 + $0x2d8] sm:$0xff] }
 0x272   : > { %v2770_v54 = vmul.f32 %v4192_v8, %v2746_v37  ;;  %v2806_v44 = vadd.f32 %v2782_v4, %v2734_v24  ;;  %v2495_v37 = vmul.f32 %v4195_v27, %v2471_v48  ;;  %v8117_v39 = vld [vmem:[#allocation38_spill] sm:$0xff]  ;;  %v8119_v8 = vld [vmem:[#allocation71_spill] sm:$0xff]  ;;  %v2831_v48 = vmul.f32 %v4047_v5, %v6949_v35 }
 0x273   : > { %v2447_v6 = vadd.f32 %v2423_v10, %v2375_v38  ;;  %v2759_v60 = vmul.f32 %v4047_v5, %v8117_v39  ;;  %v8118_v43 = vld [vmem:[#allocation54_spill] sm:$0xff]  ;;  %v2387_v34 = vmul.f32 %v7188_v29, %v8119_v8  ;;  %v2722_v55 = vadd.f32 %v2698_v56, %v2650_v32  ;;  %v8120_v24 = vld [vmem:[#allocation91_spill] sm:$0xff] }
 0x274   : > { %v2339_v50 = vmul.f32 %v7188_v29, %v8118_v43  ;;  %v2878_v4 = vadd.f32 %v2854_v18, %v2806_v44  ;;  %v2459_v26 = vmul.f32 %v7188_v29, %v8120_v24  ;;  %v2567_v10 = vmul.f32 %v4196_v3, %v2543_v20  ;;  %v4197_v27 = vld [vmem:[%s4721_s7 + $0x38] sm:$0xff]  ;;  %v4199_v35 = vld [vmem:[%s4721_s7 + $0x570] sm:$0xff] }
 0x275   : > { %v2519_v38 = vadd.f32 %v2495_v37, %v2447_v6  ;;  %v4198_v39 = vld [vmem:[%s4721_s7 + $0xf8] sm:$0xff]  ;;  %v2794_v18 = vadd.f32 %v2770_v54, %v2722_v55  ;;  %v2842_v5 = vmul.f32 %v4199_v35, %v2818_v30  ;;  %v8121_v56 = vld [vmem:[#allocation66_spill] sm:$0xff]  ;;  %vm2159_vm11 = vcmp.eq.f32.partialorder %v7152_v49, 0.0 }
 0x276   : > { %v2363_v22 = vmul.f32 %v4197_v27, %v2339_v50  ;;  %v2411_v43 = vmul.f32 %v4198_v39, %v2387_v34  ;;  %v2531_v44 = vmul.f32 %v7188_v29, %v8121_v56  ;;  %v8122_v32 = vld [vmem:[#allocation74_spill] sm:$0xff]  ;;  %3815 = vmatprep.mubr.msk.f32.mxu1 %vm620_vm0, %v2878_v4  ;;  %v4200_v6 = vld [vmem:[%s4721_s7 + $0x398] sm:$0xff]  ;;  %v1704_v56 = vpop.xlane.xlu1 %1703 }
 0x277   : > { %v2603_v37 = vmul.f32 %v7188_v29, %v8122_v32  ;;  %v2591_v20 = vadd.f32 %v2567_v10, %v2519_v38  ;;  %v2639_v50 = vmul.f32 %v4200_v6, %v2615_v59  ;;  %v4201_v34 = vld [vmem:[%s4721_s7 + $0x1b8] sm:$0xff]  ;;  %v2866_v54 = vadd.f32 %v2842_v5, %v2794_v18  ;;  %v8123_v38 = vld [vmem:[#allocation17_spill] sm:$0xff]  ;;  %v8124_v6 = vld [vmem:[#allocation48_spill] sm:$0xff] }
 0x278   : > { %v2435_v8 = vadd.f32 %v2411_v43, %v2363_v22  ;;  %v2483_v24 = vmul.f32 %v4201_v34, %v2459_v26  ;;  %v4202_v55 = vld [vmem:[%s4721_s7 + $0x458] sm:$0xff]  ;;  %v2555_v4 = vmul.f32 %v4205_v47, %v2531_v44  ;;  %v2675_v10 = vmul.f32 %v7188_v29, %v8123_v38  ;;  %v1668_v47 = vpop.xlane.xlu0 %1667 }
 0x279   : > { %v2711_v3 = vmul.f32 %v4202_v55, %v2687_v13  ;;  %v4203_v30 = vld [vmem:[%s4721_s7 + $0x518] sm:$0xff]  ;;  %v2663_v36 = vadd.f32 %v2639_v50, %v2591_v20  ;;  %v4053_v59 = vpop.eup %4052  ;;  %v2747_v26 = vmul.f32 %v7188_v29, %v8124_v6  ;;  %v2235_v13 = vsel %vm2234_vm3, %v7066_v53, %v2233_v21  ;;  %3797 = vmatprep.mubr.msk.f32.mxu0 %vm620_vm0, %v2866_v54 }
 0x27a   : > { %v2783_v27 = vmul.f32 %v4203_v30, %v2759_v60  ;;  %v4204_v39 = vld [vmem:[%s4721_s7 + $0x5d8] sm:$0xff]  ;;  %v2507_v32 = vadd.f32 %v2483_v24, %v2435_v8  ;;  %v2151_v60 = vsel %vm2150_vm4, %v7084_v2, %v2149_v42  ;;  %v8125_v5 = vand.u32 2147483648, %v7066_v53 }
 0x27b   : > { %v2855_v35 = vmul.f32 %v4204_v39, %v2831_v48  ;;  %v4206_v22 = vld [vmem:[%s4721_s7 + $0x338] sm:$0xff]  ;;  %v2735_v48 = vadd.f32 %v2711_v3, %v2663_v36  ;;  %v2819_v20 = vmul.f32 %v7188_v29, %v6952_v0  ;;  %v2240_v8 = vmul.f32 %v4053_v59, %v7143_v9  ;;  %v1707_v0 = vpop.xlane.xlu1 %1706 }
 0x27c   : > { %v2627_v43 = vmul.f32 %v4206_v22, %v2603_v37  ;;  %v2579_v18 = vadd.f32 %v2555_v4, %v2507_v32  ;;  %v2238_v44 = vsel %vm2236_vm5, %v8125_v5, %v2235_v13  ;;  %v8126_v37 = vand.u32 2147483648, %v7084_v2  ;;  %v4207_v24 = vld [vmem:[%s4721_s7 + $0x3f8] sm:$0xff] }
 0x27d   : > { %v2280_v42 = vmax.f32 %v2238_v44, 1e-12  ;;  %v2807_v36 = vadd.f32 %v2783_v27, %v2735_v48  ;;  %v2699_v54 = vmul.f32 %v4207_v24, %v2675_v10  ;;  %v2244_v53 = vand.u32 2147483648, %v7143_v9  ;;  %v4208_v55 = vld [vmem:[%s4721_s7 + $0x4b8] sm:$0xff]  ;;  %v1671_v10 = vpop.xlane.xlu0 %1670 }
 0x27e   : > { %v2154_v21 = vsel %vm2152_vm6, %v8126_v37, %v2151_v60  ;;  %v2651_v34 = vadd.f32 %v2627_v43, %v2579_v18  ;;  %v2771_v3 = vmul.f32 %v4208_v55, %v2747_v26  ;;  %v2242_v2 = vsel %vm2241_vm7, %v7143_v9, %v2240_v8  ;;  %v4209_v27 = vld [vmem:[%s4721_s7 + $0x578] sm:$0xff]  ;;  %v8128_v8 = vld [vmem:[#allocation69_spill] sm:$0xff] }
 0x27f   : > { %v2268_v50 = vmax.f32 %v2154_v21, 1e-12  ;;  %4054 = vrcp.f32 %v2280_v42  ;;  %v2879_v29 = vadd.f32 %v2855_v35, %v2807_v36  ;;  %v2245_v39 = vsel %vm2243_vm8, %v2244_v53, %v2242_v2  ;;  %v8127_v42 = vld [vmem:[#allocation95_spill] sm:$0xff] }
 0x280   : > { %v2723_v30 = vadd.f32 %v2699_v54, %v2651_v34  ;;  %4056 = vrsqrt.f32 %v7152_v49  ;;  %v2843_v32 = vmul.f32 %v4209_v27, %v2819_v20  ;;  %v2281_v4 = vmax.f32 %v2245_v39, 1e-12  ;;  %v8129_v34 = vld [vmem:[#allocation8_spill] sm:$0xff] }
 0x281   : > { %4058 = vrcp.f32 %v2268_v50  ;;  %v7261_v38 = vmax.f32 %v1704_v56, 0.0  ;;  %v7264_v22 = vmax.f32 %v7211_v63, 0.0  ;;  %v7266_v43 = vmax.f32 %v1668_v47, 0.0  ;;  %3816 = vmatmul.mubr.msk.f32.gmra.mxu1 %vm620_vm0, %v2879_v29  ;;  %v8130_v54 = vld [vmem:[#allocation24_spill] sm:$0xff] }
 0x282   : > { %v2795_v59 = vadd.f32 %v2771_v3, %v2723_v30  ;;  %v7268_v9 = vmax.f32 %v1707_v0, 0.0  ;;  %v1982_v35 = vadd.f32 %v7114_v17, %v7098_v14  ;;  %v1959_v6 = vmul.f32 %v7124_v51, %v7124_v51  ;;  %v4210_v29 = vld [vmem:[%s4721_s7 + $0xa0] sm:$0xff] }
 0x283   : > { %v2042_v56 = vadd.f32 %v7139_v41, %v7110_v40  ;;  %v2066_v26 = vmul.f32 %v7261_v38, %v7261_v38  ;;  %v2019_v13 = vmul.f32 %v7173_v57, %v7173_v57  ;;  %v2054_v60 = vmul.f32 %v7266_v43, %v7266_v43  ;;  %v4211_v39 = vld [vmem:[%s4721_s7 + $0x160] sm:$0xff] }
 0x284   : > { %v2867_v63 = vadd.f32 %v2843_v32, %v2795_v59  ;;  %v7283_v47 = vmax.f32 %v1671_v10, 0.0  ;;  %v1935_v14 = vadd.f32 %v7105_v58, %v6963_v12  ;;  %v1995_v17 = vadd.f32 %v7122_v52, %v7101_v16 }
 0x285   : > { %4060 = vrcp.f32 %v2281_v4  ;;  %v2030_v40 = vadd.f32 %v7147_v15, %v1982_v35  ;;  %v2007_v41 = vmul.f32 %v7264_v22, %v7264_v22  ;;  %v7292_v48 = vadd.f32 %v2066_v26, %v2042_v56  ;;  %v8132_v56 = vld [vmem:[#allocation94_spill] sm:$0xff] }
 0x286   : > { %v2067_v18 = vmul.f32 %v7268_v9, %v7268_v9  ;;  %3798 = vmatmul.mubr.msk.f32.gmra.mxu0 %vm620_vm0, %v2867_v63  ;;  %v1983_v5 = vadd.f32 %v1959_v6, %v1935_v14  ;;  %v2043_v44 = vadd.f32 %v2019_v13, %v1995_v17  ;;  %v2055_v12 = vmul.f32 %v7283_v47, %v7283_v47  ;;  %v8131_v6 = vld [vmem:[#allocation59_spill] sm:$0xff]  ;;  %v4214_v17 = vld [vmem:[%s4721_s7 + $0x3a0] sm:$0xff] }
 0x287   : > { %v7297_v37 = vadd.f32 %v2054_v60, %v2030_v40  ;;  %4062 = vrsqrt.f32 %v7292_v48  ;;  %v2160_v15 = vand.u32 2147483648, %v7152_v49  ;;  %v2251_v0 = vand.u32 2147483648, %v7292_v48  ;;  %v8133_v63 = vld [vmem:[#allocation11_spill] sm:$0xff]  ;;  %v4213_v60 = vld [vmem:[%s4721_s7 + $0x2e0] sm:$0xff] }
 0x288   : > { %v2031_v16 = vadd.f32 %v2007_v41, %v1983_v5  ;;  %v7302_v58 = vadd.f32 %v2067_v18, %v2043_v44  ;;  %v4215_v41 = vld [vmem:[%s4721_s7 + $0x460] sm:$0xff]  ;;  %v8134_v5 = vld [vmem:[#allocation10_spill] sm:$0xff]  ;;  %vm2248_vm12 = vcmp.eq.f32.partialorder %v7292_v48, inf  ;;  %vm2250_vm13 = vcmp.eq.f32.partialorder %v7292_v48, 0.0 }
 0x289   : > { %4064 = vrsqrt.f32 %v7297_v37  ;;  %v2167_v4 = vand.u32 2147483648, %v7297_v37  ;;  %vm2164_vm14 = vcmp.eq.f32.partialorder %v7297_v37, inf  ;;  %vm2166_vm1 = vcmp.eq.f32.partialorder %v7297_v37, 0.0 }
 0x28a   : > { %v7306_v21 = vadd.f32 %v2055_v12, %v2031_v16  ;;  %4066 = vrsqrt.f32 %v7302_v58  ;;  %v4216_v16 = vld [vmem:[%s4721_s7 + $0x520] sm:$0xff]  ;;  %vm2255_vm15 = vcmp.eq.f32.partialorder %v7302_v58, inf  ;;  %vm2257_vm2 = vcmp.eq.f32.partialorder %v7302_v58, 0.0 }
 0x28c   : > { %v4055_v52 = vpop.eup %4054  ;;  %4068 = vrsqrt.f32 %v7306_v21  ;;  %vm2171_vm3 = vcmp.eq.f32.partialorder %v7306_v21, inf  ;;  %vm2173_vm4 = vcmp.eq.f32.partialorder %v7306_v21, 0.0 }
 0x28d   : > { %v4057_v20 = vpop.eup %4056  ;;  %v2352_v50 = vmul.f32 %v4055_v52, %v8127_v42  ;;  %v2400_v36 = vmul.f32 %v4055_v52, %v8128_v8  ;;  %v2472_v24 = vmul.f32 %v4055_v52, %v8129_v34  ;;  %v2544_v53 = vmul.f32 %v4055_v52, %v8130_v54 }
 0x28e   : > { %v7312_v55 = vpop.eup %4058  ;;  %v2616_v3 = vmul.f32 %v4055_v52, %v6837_v45  ;;  %v2688_v2 = vmul.f32 %v4055_v52, %v6933_v23  ;;  %v2760_v32 = vmul.f32 %v4055_v52, %v7015_v25  ;;  %v4212_v45 = vld [vmem:[%s4721_s7 + $0x220] sm:$0xff]  ;;  %v2832_v10 = vmul.f32 %v4055_v52, %v7033_v62 }
 0x28f   : > { %v2376_v30 = vmul.f32 %v4210_v29, %v2352_v50  ;;  %v2424_v27 = vmul.f32 %v4211_v39, %v2400_v36  ;;  %v2496_v23 = vmul.f32 %v4212_v45, %v2472_v24  ;;  %v7329_v59 = vmul.f32 %v4057_v20, %v7152_v49  ;;  %v4217_v20 = vld [vmem:[%s4721_s7 + $0x40] sm:$0xff] }
 0x290   : > { %v2340_v25 = vmul.f32 %v7312_v55, %v8131_v6  ;;  %v2388_v26 = vmul.f32 %v7312_v55, %v8132_v56  ;;  %v2460_v13 = vmul.f32 %v7312_v55, %v8133_v63  ;;  %v2568_v14 = vmul.f32 %v4213_v60, %v2544_v53  ;;  %v4218_v50 = vld [vmem:[%s4721_s7 + $0x100] sm:$0xff]  ;;  %v4222_v63 = vld [vmem:[%s4721_s7 + $0xa8] sm:$0xff] }
 0x291   : > { %v2448_v35 = vadd.f32 %v2424_v27, %v2376_v30  ;;  %v2640_v40 = vmul.f32 %v4214_v17, %v2616_v3  ;;  %v2712_v18 = vmul.f32 %v4215_v41, %v2688_v2  ;;  %v2532_v44 = vmul.f32 %v7312_v55, %v8134_v5  ;;  %v4219_v36 = vld [vmem:[%s4721_s7 + $0x5e0] sm:$0xff] }
 0x292   : > { %v7339_v62 = vpop.eup %4060  ;;  %v2784_v52 = vmul.f32 %v4216_v16, %v2760_v32  ;;  %v2364_v42 = vmul.f32 %v4217_v20, %v2340_v25  ;;  %v2412_v8 = vmul.f32 %v4218_v50, %v2388_v26  ;;  %v2856_v34 = vmul.f32 %v4219_v36, %v2832_v10  ;;  %v4220_v29 = vld [vmem:[%s4721_s7 + $0x1c0] sm:$0xff]  ;;  %v4226_v16 = vld [vmem:[%s4721_s7 + $0x168] sm:$0xff] }
 0x293   : > { %v2520_v12 = vadd.f32 %v2496_v23, %v2448_v35  ;;  %v2604_v24 = vmul.f32 %v7312_v55, %v6840_v1  ;;  %v2676_v54 = vmul.f32 %v7312_v55, %v6957_v28  ;;  %v2748_v53 = vmul.f32 %v7312_v55, %v7026_v11  ;;  %v8135_v39 = vld [vmem:[#allocation12_spill] sm:$0xff]  ;;  %v8136_v23 = vld [vmem:[#allocation19_spill] sm:$0xff]  ;;  %v8138_v35 = vld [vmem:[#allocation5_spill] sm:$0xff] }
 0x294   : > { %v2436_v2 = vadd.f32 %v2412_v8, %v2364_v42  ;;  %v2484_v30 = vmul.f32 %v4220_v29, %v2460_v13  ;;  %v2353_v27 = vmul.f32 %v7339_v62, %v8135_v39  ;;  %v4221_v45 = vld [vmem:[%s4721_s7 + $0x280] sm:$0xff]  ;;  %v2401_v28 = vmul.f32 %v7339_v62, %v8136_v23  ;;  %v4063_v25 = vpop.eup %4062  ;;  %v4227_v36 = vld [vmem:[%s4721_s7 + $0x228] sm:$0xff] }
 0x295   : > { %v2592_v3 = vadd.f32 %v2568_v14, %v2520_v12  ;;  %v2556_v1 = vmul.f32 %v4221_v45, %v2532_v44  ;;  %v8137_v10 = vld [vmem:[#allocation32_spill] sm:$0xff]  ;;  %v2545_v6 = vmul.f32 %v7339_v62, %v8138_v35  ;;  %v2617_v60 = vmul.f32 %v7339_v62, %v6848_v31 }
 0x296   : > { %v3790_v32 = vpop.f32.mrf.mxu0  ;;  %v2473_v11 = vmul.f32 %v7339_v62, %v8137_v10  ;;  %v2508_v26 = vadd.f32 %v2484_v30, %v2436_v2  ;;  %v2377_v13 = vmul.f32 %v4222_v63, %v2353_v27  ;;  %v4223_v17 = vld [vmem:[%s4721_s7 + $0x340] sm:$0xff]  ;;  %v2425_v20 = vmul.f32 %v4226_v16, %v2401_v28  ;;  %v4065_v31 = vpop.eup %4064  ;;  %v4228_v2 = vld [vmem:[%s4721_s7 + $0x2e8] sm:$0xff] }
 0x297   : > { %3145 = vst.msk [vmem:[%s7370_s12 + $0x8] sm:$0xff] %vm3143_vm9, %v3790_v32  ;;  %v2664_v56 = vadd.f32 %v2640_v40, %v2592_v3  ;;  %v2628_v41 = vmul.f32 %v4223_v17, %v2604_v24  ;;  %v4224_v5 = vld [vmem:[%s4721_s7 + $0x400] sm:$0xff]  ;;  %v2820_v8 = vmul.f32 %v7312_v55, %v7038_v7  ;;  %v2247_v29 = vmul.f32 %v4063_v25, %v7292_v48  ;;  %v4067_v30 = vpop.eup %4066  ;;  %v4229_v27 = vld [vmem:[%s4721_s7 + $0x3a8] sm:$0xff] }
 0x298   : > { %v3024_v14 = vpop.f32.mrf.mxu0  ;;  %v2700_v44 = vmul.f32 %v4224_v5, %v2676_v54  ;;  %v4225_v12 = vld [vmem:[%s4721_s7 + $0x4c0] sm:$0xff]  ;;  %v2580_v50 = vadd.f32 %v2556_v1, %v2508_v26  ;;  %v2497_v24 = vmul.f32 %v4227_v36, %v2473_v11  ;;  %v2449_v3 = vadd.f32 %v2425_v20, %v2377_v13  ;;  %v4231_v26 = vld [vmem:[%s4721_s7 + $0x468] sm:$0xff] }
 0x299   : > { %v2772_v40 = vmul.f32 %v4225_v12, %v2748_v53  ;;  %3144 = vst.msk [vmem:[%s7370_s12] sm:$0xff] %vm3143_vm9, %v3024_v14  ;;  %v2736_v42 = vadd.f32 %v2712_v18, %v2664_v56  ;;  %v2569_v54 = vmul.f32 %v4228_v2, %v2545_v6  ;;  %v2158_v53 = vsel %vm2157_vm10, %v7152_v49, %v7329_v59  ;;  %v4069_v1 = vpop.eup %4068  ;;  %v4233_v20 = vld [vmem:[%s4721_s7 + $0x5e8] sm:$0xff]  ;;  %v8140_v2 = vld [vmem:[#allocation28_spill] sm:$0xff] }
 0x29a   : > { %v2652_v39 = vadd.f32 %v2628_v41, %v2580_v50  ;;  %v2641_v32 = vmul.f32 %v4229_v27, %v2617_v60  ;;  %v2689_v7 = vmul.f32 %v7339_v62, %v6991_v61  ;;  %v2521_v55 = vadd.f32 %v2497_v24, %v2449_v3  ;;  %v4232_v41 = vld [vmem:[%s4721_s7 + $0x528] sm:$0xff]  ;;  %v8143_v27 = vld [vmem:[#allocation36_spill] sm:$0xff] }
 0x29b   : > { %v2808_v18 = vadd.f32 %v2784_v52, %v2736_v42  ;;  %v2761_v45 = vmul.f32 %v7339_v62, %v7050_v46  ;;  %v2161_v59 = vsel %vm2159_vm11, %v2160_v15, %v2158_v53  ;;  %v2249_v52 = vsel %vm2248_vm12, %v7292_v48, %v2247_v29  ;;  %v8139_v24 = vld [vmem:[#allocation57_spill] sm:$0xff]  ;;  %v8141_v53 = vld [vmem:[#allocation80_spill] sm:$0xff] }
 0x29c   : > { %v2724_v28 = vadd.f32 %v2700_v44, %v2652_v39  ;;  %v2269_v10 = vmax.f32 %v2161_v59, 1e-12  ;;  %v2252_v61 = vsel %vm2250_vm13, %v2251_v0, %v2249_v52  ;;  %v2593_v11 = vadd.f32 %v2569_v54, %v2521_v55  ;;  %v4235_v55 = vld [vmem:[%s4721_s7 + $0x108] sm:$0xff] }
 0x29d   : > { %v2880_v23 = vadd.f32 %v2856_v34, %v2808_v18  ;;  %v2282_v35 = vmax.f32 %v2252_v61, 1e-12  ;;  %v2163_v49 = vmul.f32 %v4065_v31, %v7297_v37  ;;  %v2254_v15 = vmul.f32 %v4067_v30, %v7302_v58  ;;  %v4230_v34 = vld [vmem:[%s4721_s7 + $0x580] sm:$0xff]  ;;  %v4236_v52 = vld [vmem:[%s4721_s7 + $0x1c8] sm:$0xff] }
 0x29e   : > { %v3808_v46 = vpop.f32.mrf.mxu1  ;;  %v2796_v6 = vadd.f32 %v2772_v40, %v2724_v28  ;;  %v2844_v25 = vmul.f32 %v4230_v34, %v2820_v8  ;;  %v2833_v56 = vmul.f32 %v7339_v62, %v7093_v19  ;;  %4070 = vrcp.f32 %v2269_v10  ;;  %v8142_v30 = vld [vmem:[#allocation4_spill] sm:$0xff]  ;;  %v8145_v61 = vld [vmem:[#allocation9_spill] sm:$0xff] }
 0x29f   : > { %3157 = vst.msk [vmem:[%s7370_s12 + $0x68] sm:$0xff] %vm3143_vm9, %v3808_v46  ;;  %3818 = vmatprep.mubr.msk.f32.mxu1 %vm620_vm0, %v2880_v23  ;;  %v2665_v0 = vadd.f32 %v2641_v32, %v2593_v11  ;;  %v2713_v63 = vmul.f32 %v4231_v26, %v2689_v7  ;;  %v2165_v13 = vsel %vm2164_vm14, %v7297_v37, %v2163_v49  ;;  %4072 = vrcp.f32 %v2282_v35  ;;  %v8144_v23 = vld [vmem:[#allocation77_spill] sm:$0xff]  ;;  %v8147_v49 = vld [vmem:[#allocation87_spill] sm:$0xff] }
 0x2a0   : > { %v3084_v48 = vpop.f32.mrf.mxu1  ;;  %v2256_v60 = vsel %vm2255_vm15, %v7302_v58, %v2254_v15  ;;  %v2868_v14 = vadd.f32 %v2844_v25, %v2796_v6  ;;  %v2168_v19 = vsel %vm2166_vm1, %v2167_v4, %v2165_v13  ;;  %v2258_v62 = vand.u32 2147483648, %v7302_v58  ;;  %v8146_v11 = vld [vmem:[#allocation13_spill] sm:$0xff] }
 0x2a1   : > { %3156 = vst.msk [vmem:[%s7370_s12 + $0x60] sm:$0xff] %vm3143_vm9, %v3084_v48  ;;  %v2737_v17 = vadd.f32 %v2713_v63, %v2665_v0  ;;  %v2785_v5 = vmul.f32 %v4232_v41, %v2761_v45  ;;  %v2270_v44 = vmax.f32 %v2168_v19, 1e-12  ;;  %v2170_v12 = vmul.f32 %v4069_v1, %v7306_v21  ;;  %v4237_v34 = vld [vmem:[%s4721_s7 + $0x288] sm:$0xff]  ;;  %v4240_v19 = vld [vmem:[%s4721_s7 + $0xb0] sm:$0xff] }
 0x2a2   : > { %v2259_v40 = vsel %vm2257_vm2, %v2258_v62, %v2256_v60  ;;  %3800 = vmatprep.mubr.msk.f32.mxu0 %vm620_vm0, %v2868_v14  ;;  %v2857_v31 = vmul.f32 %v4233_v20, %v2833_v56  ;;  %v2174_v50 = vand.u32 2147483648, %v7306_v21  ;;  %v4238_v25 = vld [vmem:[%s4721_s7 + $0x348] sm:$0xff] }
 0x2a3   : > { %v2809_v16 = vadd.f32 %v2785_v5, %v2737_v17  ;;  %4074 = vrcp.f32 %v2270_v44  ;;  %v2283_v4 = vmax.f32 %v2259_v40, 1e-12  ;;  %v2172_v42 = vsel %vm2171_vm3, %v7306_v21, %v2170_v12  ;;  %v4234_v21 = vld [vmem:[%s4721_s7 + $0x48] sm:$0xff]  ;;  %v4241_v17 = vld [vmem:[%s4721_s7 + $0x170] sm:$0xff] }
 0x2a4   : > { %v2175_v58 = vsel %vm2173_vm4, %v2174_v50, %v2172_v42  ;;  %v8148_v48 = vld [vmem:[#allocation53_spill] sm:$0xff]  ;;  %v4243_v50 = vld [vmem:[%s4721_s7 + $0x230] sm:$0xff] }
 0x2a5   : > { %v2881_v37 = vadd.f32 %v2857_v31, %v2809_v16  ;;  %4076 = vrcp.f32 %v2283_v4  ;;  %v2271_v36 = vmax.f32 %v2175_v58, 1e-12  ;;  %v8149_v26 = vld [vmem:[#allocation49_spill] sm:$0xff]  ;;  %v8151_v16 = vld [vmem:[#allocation20_spill] sm:$0xff]  ;;  %v8152_v31 = vld [vmem:[#allocation78_spill] sm:$0xff] }
 0x2a6   : > { %v4239_v60 = vld [vmem:[%s4721_s7 + $0x408] sm:$0xff] }
 0x2a7   : > { %3819 = vmatmul.mubr.msk.f32.gmra.mxu1 %vm620_vm0, %v2881_v37  ;;  %4078 = vrcp.f32 %v2271_v36  ;;  %v4242_v5 = vld [vmem:[%s4721_s7 + $0x4c8] sm:$0xff] }
 0x2a8   : > { %v8150_v12 = vld [vmem:[#allocation29_spill] sm:$0xff] }
 0x2ab   : > { %v4071_v8 = vpop.eup %4070 }
 0x2ac   : > { %v2341_v3 = vmul.f32 %v4071_v8, %v8139_v24  ;;  %v2389_v54 = vmul.f32 %v4071_v8, %v8140_v2  ;;  %v2461_v29 = vmul.f32 %v4071_v8, %v8141_v53  ;;  %v2533_v18 = vmul.f32 %v4071_v8, %v8142_v30  ;;  %v4073_v39 = vpop.eup %4072  ;;  %v4244_v24 = vld [vmem:[%s4721_s7 + $0x588] sm:$0xff]  ;;  %v8154_v2 = vld [vmem:[#allocation76_spill] sm:$0xff]  ;;  %v8155_v53 = vld [vmem:[#allocation15_spill] sm:$0xff] }
 0x2ad   : > { %v2605_v32 = vmul.f32 %v4071_v8, %v8143_v27  ;;  %v2677_v59 = vmul.f32 %v4071_v8, %v6994_v33  ;;  %v2749_v28 = vmul.f32 %v4071_v8, %v8144_v23  ;;  %v2354_v46 = vmul.f32 %v4073_v39, %v8145_v61  ;;  %v8156_v30 = vld [vmem:[#allocation18_spill] sm:$0xff] }
 0x2ae   : > { %v2365_v7 = vmul.f32 %v4234_v21, %v2341_v3  ;;  %v2413_v45 = vmul.f32 %v4235_v55, %v2389_v54  ;;  %v2485_v1 = vmul.f32 %v4236_v52, %v2461_v29  ;;  %v2402_v35 = vmul.f32 %v4073_v39, %v8146_v11  ;;  %v4247_v52 = vld [vmem:[%s4721_s7 + $0x3b0] sm:$0xff] }
 0x2af   : > { %v2474_v15 = vmul.f32 %v4073_v39, %v8147_v49  ;;  %v2557_v33 = vmul.f32 %v4237_v34, %v2533_v18  ;;  %v2629_v56 = vmul.f32 %v4238_v25, %v2605_v32  ;;  %v2821_v0 = vmul.f32 %v4071_v8, %v8148_v48  ;;  %v8153_v8 = vld [vmem:[#allocation14_spill] sm:$0xff]  ;;  %v8157_v34 = vld [vmem:[#allocation43_spill] sm:$0xff] }
 0x2b0   : > { %v2437_v10 = vadd.f32 %v2413_v45, %v2365_v7  ;;  %v7458_v6 = vpop.eup %4074  ;;  %v2546_v63 = vmul.f32 %v4073_v39, %v8149_v26  ;;  %v2701_v14 = vmul.f32 %v4239_v60, %v2677_v59  ;;  %v2378_v62 = vmul.f32 %v4240_v19, %v2354_v46  ;;  %v4245_v7 = vld [vmem:[%s4721_s7 + $0x2f0] sm:$0xff] }
 0x2b1   : > { %v2426_v41 = vmul.f32 %v4241_v17, %v2402_v35  ;;  %v2773_v44 = vmul.f32 %v4242_v5, %v2749_v28  ;;  %v2618_v40 = vmul.f32 %v4073_v39, %v8150_v12  ;;  %v2690_v20 = vmul.f32 %v4073_v39, %v8151_v16  ;;  %v4246_v45 = vld [vmem:[%s4721_s7 + $0x50] sm:$0xff]  ;;  %v4253_v12 = vld [vmem:[%s4721_s7 + $0xb8] sm:$0xff] }
 0x2b2   : > { %v2509_v13 = vadd.f32 %v2485_v1, %v2437_v10  ;;  %v2762_v37 = vmul.f32 %v4073_v39, %v8152_v31  ;;  %v2498_v58 = vmul.f32 %v4243_v50, %v2474_v15  ;;  %v2342_v36 = vmul.f32 %v7458_v6, %v8153_v8  ;;  %v7481_v27 = vpop.eup %4076  ;;  %v4248_v23 = vld [vmem:[%s4721_s7 + $0x470] sm:$0xff]  ;;  %v4254_v16 = vld [vmem:[%s4721_s7 + $0x178] sm:$0xff]  ;;  %v8163_v50 = vld [vmem:[#allocation21_spill] sm:$0xff] }
 0x2b3   : > { %v2450_v42 = vadd.f32 %v2426_v41, %v2378_v62  ;;  %v2845_v3 = vmul.f32 %v4244_v24, %v2821_v0  ;;  %v2390_v54 = vmul.f32 %v7458_v6, %v8154_v2  ;;  %v2462_v29 = vmul.f32 %v7458_v6, %v8155_v53  ;;  %v4249_v10 = vld [vmem:[%s4721_s7 + $0x530] sm:$0xff]  ;;  %v8158_v0 = vld [vmem:[#allocation31_spill] sm:$0xff]  ;;  %v8161_v41 = vld [vmem:[#allocation33_spill] sm:$0xff] }
 0x2b4   : > { %v2581_v4 = vadd.f32 %v2557_v33, %v2509_v13  ;;  %v2534_v18 = vmul.f32 %v7458_v6, %v8156_v30  ;;  %v2570_v55 = vmul.f32 %v4245_v7, %v2546_v63  ;;  %v2366_v59 = vmul.f32 %v4246_v45, %v2342_v36  ;;  %v4250_v46 = vld [vmem:[%s4721_s7 + $0x110] sm:$0xff]  ;;  %v8159_v63 = vld [vmem:[#allocation45_spill] sm:$0xff]  ;;  %v7504_v31 = vpop.eup %4078  ;;  %v4257_v30 = vld [vmem:[%s4721_s7 + $0x238] sm:$0xff] }
 0x2b5   : > { %v2522_v21 = vadd.f32 %v2498_v58, %v2450_v42  ;;  %v2642_v1 = vmul.f32 %v4247_v52, %v2618_v40  ;;  %v2714_v28 = vmul.f32 %v4248_v23, %v2690_v20  ;;  %v2786_v61 = vmul.f32 %v4249_v10, %v2762_v37  ;;  %v4252_v19 = vld [vmem:[%s4721_s7 + $0x290] sm:$0xff] }
 0x2b6   : > { %v2653_v32 = vadd.f32 %v2629_v56, %v2581_v4  ;;  %v2414_v11 = vmul.f32 %v4250_v46, %v2390_v54  ;;  %v2834_v15 = vmul.f32 %v4073_v39, %v7261_v38  ;;  %v2606_v33 = vmul.f32 %v7458_v6, %v8157_v34  ;;  %v4251_v56 = vld [vmem:[%s4721_s7 + $0x1d0] sm:$0xff]  ;;  %v8162_v4 = vld [vmem:[#allocation16_spill] sm:$0xff]  ;;  %v8168_v34 = vld [vmem:[#allocation27_spill] sm:$0xff] }
 0x2b7   : > { %v2594_v49 = vadd.f32 %v2570_v55, %v2522_v21  ;;  %v2486_v48 = vmul.f32 %v4251_v56, %v2462_v29  ;;  %v2355_v26 = vmul.f32 %v7481_v27, %v8158_v0  ;;  %v2403_v13 = vmul.f32 %v7481_v27, %v8159_v63  ;;  %v8160_v17 = vld [vmem:[#allocation30_spill] sm:$0xff]  ;;  %v4261_v56 = vld [vmem:[%s4721_s7 + $0x3b8] sm:$0xff] }
 0x2b8   : > { %v2725_v35 = vadd.f32 %v2701_v14, %v2653_v32  ;;  %v2438_v25 = vadd.f32 %v2414_v11, %v2366_v59  ;;  %v2558_v62 = vmul.f32 %v4252_v19, %v2534_v18  ;;  %v2678_v38 = vmul.f32 %v7458_v6, %v8160_v17  ;;  %v4255_v8 = vld [vmem:[%s4721_s7 + $0x5f0] sm:$0xff]  ;;  %v8164_v32 = vld [vmem:[#allocation52_spill] sm:$0xff]  ;;  %v4262_v0 = vld [vmem:[%s4721_s7 + $0x58] sm:$0xff] }
 0x2b9   : > { %v2666_v14 = vadd.f32 %v2642_v1, %v2594_v49  ;;  %v2750_v5 = vmul.f32 %v7458_v6, %v8161_v41  ;;  %v2379_v40 = vmul.f32 %v4253_v12, %v2355_v26  ;;  %v2427_v20 = vmul.f32 %v4254_v16, %v2403_v13  ;;  %v4256_v2 = vld [vmem:[%s4721_s7 + $0x350] sm:$0xff]  ;;  %v8165_v1 = vld [vmem:[#allocation44_spill] sm:$0xff]  ;;  %v8167_v49 = vld [vmem:[#allocation75_spill] sm:$0xff] }
 0x2ba   : > { %v2797_v60 = vadd.f32 %v2773_v44, %v2725_v35  ;;  %v2510_v39 = vadd.f32 %v2486_v48, %v2438_v25  ;;  %v2475_v42 = vmul.f32 %v7481_v27, %v8162_v4  ;;  %v2547_v58 = vmul.f32 %v7481_v27, %v8163_v50  ;;  %v4258_v55 = vld [vmem:[%s4721_s7 + $0x410] sm:$0xff]  ;;  %v4264_v19 = vld [vmem:[%s4721_s7 + $0x118] sm:$0xff] }
 0x2bb   : > { %v2738_v37 = vadd.f32 %v2714_v28, %v2666_v14  ;;  %v2858_v36 = vmul.f32 %v4255_v8, %v2834_v15  ;;  %v2630_v54 = vmul.f32 %v4256_v2, %v2606_v33  ;;  %v2451_v53 = vadd.f32 %v2427_v20, %v2379_v40  ;;  %v4259_v59 = vld [vmem:[%s4721_s7 + $0x4d0] sm:$0xff]  ;;  %v4266_v40 = vld [vmem:[%s4721_s7 + $0x1d8] sm:$0xff] }
 0x2bc   : > { %v2869_v44 = vadd.f32 %v2845_v3, %v2797_v60  ;;  %v2582_v24 = vadd.f32 %v2558_v62, %v2510_v39  ;;  %v2822_v3 = vmul.f32 %v7458_v6, %v7266_v43  ;;  %v2499_v18 = vmul.f32 %v4257_v30, %v2475_v42  ;;  %v4260_v43 = vld [vmem:[%s4721_s7 + $0x2f8] sm:$0xff]  ;;  %v8169_v63 = vld [vmem:[#allocation22_spill] sm:$0xff] }
 0x2bd   : > { %v2810_v29 = vadd.f32 %v2786_v61, %v2738_v37  ;;  %v2619_v21 = vmul.f32 %v7481_v27, %v8164_v32  ;;  %v2702_v45 = vmul.f32 %v4258_v55, %v2678_v38  ;;  %v2774_v52 = vmul.f32 %v4259_v59, %v2750_v5  ;;  %v8166_v61 = vld [vmem:[#allocation79_spill] sm:$0xff]  ;;  %v4263_v60 = vld [vmem:[%s4721_s7 + $0x590] sm:$0xff] }
 0x2be   : > { %3801 = vmatmul.mubr.msk.f32.gmra.mxu0 %vm620_vm0, %v2869_v44  ;;  %v2654_v7 = vadd.f32 %v2630_v54, %v2582_v24  ;;  %v2691_v23 = vmul.f32 %v7481_v27, %v8165_v1  ;;  %v2523_v10 = vadd.f32 %v2499_v18, %v2451_v53  ;;  %v2571_v6 = vmul.f32 %v4260_v43, %v2547_v58  ;;  %v4265_v38 = vld [vmem:[%s4721_s7 + $0x478] sm:$0xff] }
 0x2bf   : > { %v2882_v28 = vadd.f32 %v2858_v36, %v2810_v29  ;;  %v2343_v46 = vmul.f32 %v7504_v31, %v8166_v61  ;;  %v2763_v35 = vmul.f32 %v7481_v27, %v7173_v57  ;;  %v2391_v15 = vmul.f32 %v7504_v31, %v8167_v49  ;;  %v8170_v20 = vld [vmem:[#allocation23_spill] sm:$0xff] }
 0x2c0   : > { %v2726_v11 = vadd.f32 %v2702_v45, %v2654_v7  ;;  %v2463_v33 = vmul.f32 %v7504_v31, %v8168_v34  ;;  %v2595_v25 = vadd.f32 %v2571_v6, %v2523_v10  ;;  %v2643_v48 = vmul.f32 %v4261_v56, %v2619_v21  ;;  %v4267_v4 = vld [vmem:[%s4721_s7 + $0x538] sm:$0xff] }
 0x2c1   : > { %v2367_v26 = vmul.f32 %v4262_v0, %v2343_v46  ;;  %v2535_v13 = vmul.f32 %v7504_v31, %v8169_v63  ;;  %3821 = vmatprep.mubr.msk.f32.mxu1 %vm620_vm0, %v2882_v28  ;;  %v2846_v14 = vmul.f32 %v4263_v60, %v2822_v3  ;;  %v2415_v62 = vmul.f32 %v4264_v19, %v2391_v15  ;;  %v4268_v58 = vld [vmem:[%s4721_s7 + $0x298] sm:$0xff] }
 0x2c2   : > { %v2798_v57 = vadd.f32 %v2774_v52, %v2726_v11  ;;  %v2667_v17 = vadd.f32 %v2643_v48, %v2595_v25  ;;  %v2715_v39 = vmul.f32 %v4265_v38, %v2691_v23  ;;  %v2835_v41 = vmul.f32 %v7481_v27, %v7268_v9  ;;  %v4269_v27 = vld [vmem:[%s4721_s7 + $0x5f8] sm:$0xff] }
 0x2c3   : > { %v2439_v12 = vadd.f32 %v2415_v62, %v2367_v26  ;;  %v2487_v16 = vmul.f32 %v4266_v40, %v2463_v33  ;;  %v2607_v44 = vmul.f32 %v7504_v31, %v8170_v20  ;;  %v2787_v42 = vmul.f32 %v4267_v4, %v2763_v35  ;;  %v4270_v54 = vld [vmem:[%s4721_s7 + $0x358] sm:$0xff] }
 0x2c4   : > { %v2870_v5 = vadd.f32 %v2846_v14, %v2798_v57  ;;  %v2739_v37 = vadd.f32 %v2715_v39, %v2667_v17  ;;  %v2559_v8 = vmul.f32 %v4268_v58, %v2535_v13  ;;  %v2679_v36 = vmul.f32 %v7504_v31, %v7124_v51  ;;  %v4271_v18 = vld [vmem:[%s4721_s7 + $0x418] sm:$0xff] }
 0x2c5   : > { %v2511_v50 = vadd.f32 %v2487_v16, %v2439_v12  ;;  %v2859_v24 = vmul.f32 %v4269_v27, %v2835_v41  ;;  %v2631_v53 = vmul.f32 %v4270_v54, %v2607_v44  ;;  %v2751_v29 = vmul.f32 %v7504_v31, %v7264_v22  ;;  %v4272_v7 = vld [vmem:[%s4721_s7 + $0x4d8] sm:$0xff] }
 0x2c6   : > { %3803 = vmatprep.mubr.msk.f32.mxu0 %vm620_vm0, %v2870_v5  ;;  %v2811_v9 = vadd.f32 %v2787_v42, %v2739_v37  ;;  %v2703_v32 = vmul.f32 %v4271_v18, %v2679_v36  ;;  %v2823_v51 = vmul.f32 %v7504_v31, %v7283_v47  ;;  %v4273_v59 = vld [vmem:[%s4721_s7 + $0x598] sm:$0xff] }
 0x2c7   : > { %v2583_v2 = vadd.f32 %v2559_v8, %v2511_v50  ;;  %v2775_v55 = vmul.f32 %v4272_v7, %v2751_v29 }
 0x2c8   : > { %v2883_v3 = vadd.f32 %v2859_v24, %v2811_v9  ;;  %v2847_v22 = vmul.f32 %v4273_v59, %v2823_v51 }
 0x2c9   : > { %v2655_v30 = vadd.f32 %v2631_v53, %v2583_v2 }
 0x2ca   : > { %3822 = vmatmul.mubr.msk.f32.gmra.mxu1 %vm620_vm0, %v2883_v3 }
 0x2cb   : > { %v2727_v21 = vadd.f32 %v2703_v32, %v2655_v30 }
 0x2cd   : > { %v2799_v45 = vadd.f32 %v2775_v55, %v2727_v21 }
 0x2cf   : > { %v2871_v1 = vadd.f32 %v2847_v22, %v2799_v45 }
 0x2d1   : > { %v3811_v52 = vpop.f32.mrf.mxu1  ;;  %3804 = vmatmul.mubr.msk.f32.gmra.mxu0 %vm620_vm0, %v2871_v1 }
 0x2d2   : > { %3159 = vst.msk [vmem:[%s7370_s12 + $0x78] sm:$0xff] %vm3143_vm9, %v3811_v52 }
 0x2d3   : > { %v3094_v23 = vpop.f32.mrf.mxu1 }
 0x2d4   : > { %3158 = vst.msk [vmem:[%s7370_s12 + $0x70] sm:$0xff] %vm3143_vm9, %v3094_v23  ;;  %v3793_v47 = vpop.f32.mrf.mxu0 }
 0x2d5   : > { %3147 = vst.msk [vmem:[%s7370_s12 + $0x18] sm:$0xff] %vm3143_vm9, %v3793_v47 }
 0x2d6   : > { %v3034_v31 = vpop.f32.mrf.mxu0 }
 0x2d7   : > { %3146 = vst.msk [vmem:[%s7370_s12 + $0x10] sm:$0xff] %vm3143_vm9, %v3034_v31 }
 0x30a   : > { %v3814_v28 = vpop.f32.mrf.mxu1 }
 0x30b   : > { %3161 = vst.msk [vmem:[%s7370_s12 + $0x88] sm:$0xff] %vm3143_vm9, %v3814_v28 }
 0x30c   : > { %v3104_v10 = vpop.f32.mrf.mxu1 }
 0x30d   : > { %3160 = vst.msk [vmem:[%s7370_s12 + $0x80] sm:$0xff] %vm3143_vm9, %v3104_v10 }
 0x310   : > { %v3796_v43 = vpop.f32.mrf.mxu0 }
 0x311   : > { %3149 = vst.msk [vmem:[%s7370_s12 + $0x28] sm:$0xff] %vm3143_vm9, %v3796_v43 }
 0x312   : > { %v3044_v6 = vpop.f32.mrf.mxu0 }
 0x313   : > { %3148 = vst.msk [vmem:[%s7370_s12 + $0x20] sm:$0xff] %vm3143_vm9, %v3044_v6 }
 0x341   : > { %v3817_v61 = vpop.f32.mrf.mxu1 }
 0x342   : > { %3163 = vst.msk [vmem:[%s7370_s12 + $0x98] sm:$0xff] %vm3143_vm9, %v3817_v61 }
 0x343   : > { %v3114_v46 = vpop.f32.mrf.mxu1 }
 0x344   : > { %3162 = vst.msk [vmem:[%s7370_s12 + $0x90] sm:$0xff] %vm3143_vm9, %v3114_v46 }
 0x346   : > { %v3799_v11 = vpop.f32.mrf.mxu0 }
 0x347   : > { %3151 = vst.msk [vmem:[%s7370_s12 + $0x38] sm:$0xff] %vm3143_vm9, %v3799_v11 }
 0x348   : > { %v3054_v35 = vpop.f32.mrf.mxu0 }
 0x349   : > { %3150 = vst.msk [vmem:[%s7370_s12 + $0x30] sm:$0xff] %vm3143_vm9, %v3054_v35 }
 0x367   : > { %v3820_v49 = vpop.f32.mrf.mxu1 }
 0x368   : > { %3165 = vst.msk [vmem:[%s7370_s12 + $0xa8] sm:$0xff] %vm3143_vm9, %v3820_v49 }
 0x369   : > { %v3124_v15 = vpop.f32.mrf.mxu1 }
 0x36a   : > { %3164 = vst.msk [vmem:[%s7370_s12 + $0xa0] sm:$0xff] %vm3143_vm9, %v3124_v15 }
 0x37e   : > { %v3802_v34 = vpop.f32.mrf.mxu0 }
 0x37f   : > { %3153 = vst.msk [vmem:[%s7370_s12 + $0x48] sm:$0xff] %vm3143_vm9, %v3802_v34 }
 0x380   : > { %v3064_v33 = vpop.f32.mrf.mxu0 }
 0x381   : > { %3152 = vst.msk [vmem:[%s7370_s12 + $0x40] sm:$0xff] %vm3143_vm9, %v3064_v33 }
 0x38a   : > { %v3823_v25 = vpop.f32.mrf.mxu1 }
 0x38b   : > { %3167 = vst.msk [vmem:[%s7370_s12 + $0xb8] sm:$0xff] %vm3143_vm9, %v3823_v25 }
 0x38c   : > { %v3134_v56 = vpop.f32.mrf.mxu1 }
 0x38d   : > { %3166 = vst.msk [vmem:[%s7370_s12 + $0xb0] sm:$0xff] %vm3143_vm9, %v3134_v56 }
 0x390   : > { %3174 = sbr.rel (!%p4481_p5) target bundleno = 975 (0x3cf), region = 88 }
 0x391   : > { %v3805_v48 = vpop.f32.mrf.mxu0 }
 0x392   : > { %3155 = vst.msk [vmem:[%s7370_s12 + $0x58] sm:$0xff] %vm3143_vm9, %v3805_v48 }
 0x393   : > { %v3074_v0 = vpop.f32.mrf.mxu0 }
 0x394   : > { %3154 = vst.msk [vmem:[%s7370_s12 + $0x50] sm:$0xff] %vm3143_vm9, %v3074_v0 }
 0x395   : > { %s8185_s26 = smov (!%p3177_p4, %s3176_s26), 24 }
 0x396   : > { %s3742_s28 = sshll.u32 %s8185_s26, 7 }
 0x397   : > { %p3745_p6 = scmp.eq.s32.totalorder %s3742_s28, 0 }
 0x398   : > { %4274 = sdivrem.u32 (!%p3745_p6), %s8185_s26, 24 }
 0x399   : > { %3185 = sbr.rel (%p3745_p6) target bundleno = 975 (0x3cf), region = 92 }
 0x3a1   : > { %s7613_s20 = spop.drf %4274 }
 0x3a2   : > { %p3746_p5 = scmp.le.s32.totalorder %s7613_s20, 0 }
 0x3a3   : > { %s8171_s15 = smov (!%p3746_p5), %s7607_s24  ;;  %s8172_s30 = smov (!%p3746_p5), %s7370_s12 }
 0x3a4   : > { %3488 = sbr.rel (%p3746_p5) target bundleno = 950 (0x3b6), region = 210  ;;  %s7622_s4 = smov (!%p3746_p5), 0  }
 0x3a5   : > { %s7624_s5 = smov (!%p3746_p5), 0  }
 0x3a9 LB: >> { %v3296_v26 = vld [vmem:[%s4404_s30] sm:$0xff]  ;;  %v3298_v63 = vld [vmem:[%s4404_s30 + $0x8] sm:$0xff]  ;;  %v3300_v13 = vld [vmem:[%s4404_s30 + $0x10] sm:$0xff]  ;;  %s3344_s6 = sadd.s32 1, %s4408_s4  ;;  %s3290_s5 = sadd.s32 1, %s4412_s5   ;;  %s4412_s5 = sphi %s7624_s5, %s3290_s5   ;;  %s4408_s4 = sphi %s7622_s4, %s8174_s4   ;;  %s4404_s30 = sphi %s8172_s30, %s3349_s30   ;;  %s4400_s15 = sphi %s8171_s15, %s8173_s15  }
 0x3aa   : >> { %3297 = vst [vmem:[%s4400_s15] sm:$0xff] %v3296_v26  ;;  %3299 = vst [vmem:[%s4400_s15 + $0x8] sm:$0xff] %v3298_v63  ;;  %v3302_v57 = vld [vmem:[%s4404_s30 + $0x18] sm:$0xff]  ;;  %v3304_v60 = vld [vmem:[%s4404_s30 + $0x20] sm:$0xff]  ;;  %p3345_p7 = scmp.ge.s32.totalorder %s3344_s6, %s7613_s20  ;;  %p3289_p8 = scmp.ge.s32.totalorder %s3290_s5, %s7613_s20 }
 0x3ab   : >> { %3301 = vst [vmem:[%s4400_s15 + $0x10] sm:$0xff] %v3300_v13  ;;  %v3306_v14 = vld [vmem:[%s4404_s30 + $0x28] sm:$0xff]  ;;  %3303 = vst [vmem:[%s4400_s15 + $0x18] sm:$0xff] %v3302_v57  ;;  %v3308_v19 = vld [vmem:[%s4404_s30 + $0x30] sm:$0xff] }
 0x3ac   : >> { %3305 = vst [vmem:[%s4400_s15 + $0x20] sm:$0xff] %v3304_v60  ;;  %3307 = vst [vmem:[%s4400_s15 + $0x28] sm:$0xff] %v3306_v14  ;;  %v3310_v62 = vld [vmem:[%s4404_s30 + $0x38] sm:$0xff]  ;;  %v3312_v17 = vld [vmem:[%s4404_s30 + $0x40] sm:$0xff]  ;;  %s8187_s6 = smov (%p3345_p7, %s3344_s6), 0 }
 0x3ad   : >> { %3309 = vst [vmem:[%s4400_s15 + $0x30] sm:$0xff] %v3308_v19  ;;  %3311 = vst [vmem:[%s4400_s15 + $0x38] sm:$0xff] %v3310_v62  ;;  %v3314_v38 = vld [vmem:[%s4404_s30 + $0x48] sm:$0xff]  ;;  %v3316_v39 = vld [vmem:[%s4404_s30 + $0x50] sm:$0xff]  ;;  %s3347_s7 = smul.u32 192, %s8187_s6  ;;  %s8174_s4 = smov %s8187_s6 }
 0x3ae   : >> { %3313 = vst [vmem:[%s4400_s15 + $0x40] sm:$0xff] %v3312_v17  ;;  %v3318_v41 = vld [vmem:[%s4404_s30 + $0x58] sm:$0xff]  ;;  %3315 = vst [vmem:[%s4400_s15 + $0x48] sm:$0xff] %v3314_v38  ;;  %v3320_v5 = vld [vmem:[%s4404_s30 + $0x60] sm:$0xff] }
 0x3af   : >> { %3317 = vst [vmem:[%s4400_s15 + $0x50] sm:$0xff] %v3316_v39  ;;  %3319 = vst [vmem:[%s4400_s15 + $0x58] sm:$0xff] %v3318_v41  ;;  %v3322_v12 = vld [vmem:[%s4404_s30 + $0x68] sm:$0xff]  ;;  %v3324_v40 = vld [vmem:[%s4404_s30 + $0x70] sm:$0xff]  ;;  %s3350_s14 = scalar_lea.vmem %s7607_s24, %s3347_s7  }
 0x3b0   : >> { %3321 = vst [vmem:[%s4400_s15 + $0x60] sm:$0xff] %v3320_v5  ;;  %3323 = vst [vmem:[%s4400_s15 + $0x68] sm:$0xff] %v3322_v12  ;;  %v3326_v16 = vld [vmem:[%s4404_s30 + $0x78] sm:$0xff]  ;;  %v3328_v20 = vld [vmem:[%s4404_s30 + $0x80] sm:$0xff] }
 0x3b1   : >> { %3325 = vst [vmem:[%s4400_s15 + $0x70] sm:$0xff] %v3324_v40  ;;  %v3330_v44 = vld [vmem:[%s4404_s30 + $0x88] sm:$0xff]  ;;  %3327 = vst [vmem:[%s4400_s15 + $0x78] sm:$0xff] %v3326_v16  ;;  %v3332_v37 = vld [vmem:[%s4404_s30 + $0x90] sm:$0xff]  ;;  %3292 = sbr.rel (!%p3289_p8) target bundleno = 937 (0x3a9), region = 216 }
 0x3b2   : >> { %3329 = vst [vmem:[%s4400_s15 + $0x80] sm:$0xff] %v3328_v20  ;;  %3331 = vst [vmem:[%s4400_s15 + $0x88] sm:$0xff] %v3330_v44  ;;  %v3334_v4 = vld [vmem:[%s4404_s30 + $0x98] sm:$0xff]  ;;  %v3336_v42 = vld [vmem:[%s4404_s30 + $0xa0] sm:$0xff] }
 0x3b3   : >> { %3333 = vst [vmem:[%s4400_s15 + $0x90] sm:$0xff] %v3332_v37  ;;  %3335 = vst [vmem:[%s4400_s15 + $0x98] sm:$0xff] %v3334_v4  ;;  %v3338_v50 = vld [vmem:[%s4404_s30 + $0xa8] sm:$0xff]  ;;  %v3340_v58 = vld [vmem:[%s4404_s30 + $0xb0] sm:$0xff] }
 0x3b4   : >> { %3337 = vst [vmem:[%s4400_s15 + $0xa0] sm:$0xff] %v3336_v42  ;;  %v3342_v8 = vld [vmem:[%s4404_s30 + $0xb8] sm:$0xff]  ;;  %s3349_s30 = scalar_lea.vmem %s7370_s12, %s3347_s7 [#allocation3]   ;;  %3339 = vst [vmem:[%s4400_s15 + $0xa8] sm:$0xff] %v3338_v50 }
 0x3b5   : >> { %3341 = vst [vmem:[%s4400_s15 + $0xb0] sm:$0xff] %v3340_v58  ;;  %3343 = vst [vmem:[%s4400_s15 + $0xb8] sm:$0xff] %v3342_v8  ;;  %s8173_s15 = smov %s3350_s14 }
 0x3b6 PF: > { %4276 = sdivrem.u32 %s8185_s26, 24 }
 0x3b7   : > { %s3747_s8 = smul.u32 192, %s7613_s20 }
 0x3b9   : > { %s3355_s9 = scalar_lea.vmem %s7370_s12, %s3747_s8 [#allocation3]   ;;  %s3357_s10 = scalar_lea.vmem %s7607_s24, %s3747_s8  }
 0x3bf   : > { %s4277_s11 = spop.drf %4276 }
 0x3c0   : > { %p3749_p9 = scmp.le.s32.totalorder %s4277_s11, 0 }
 0x3c1   : > { %s4414_s17 = smov (!%p3749_p9), %s3357_s10   ;;  %s4418_s18 = smov (!%p3749_p9), %s3355_s9  }
 0x3c2   : > { %3502 = sbr.rel (%p3749_p9) target bundleno = 975 (0x3cf), region = 221  ;;  %s4422_s21 = smov (!%p3749_p9), 0  }
 0x3c3   : > { %s4426_s22 = smov (!%p3749_p9), 0  }
 0x3c7 LB: >> { %v3367_v36 = vld [vmem:[%s4420_s18] sm:$0xff]  ;;  %s3369_s23 = sadd.s32 1, %s4424_s21  ;;  %s3361_s22 = sadd.s32 1, %s4428_s22   ;;  %s4428_s22 = sphi %s4426_s22, %s3361_s22   ;;  %s4424_s21 = sphi %s4422_s21, %s4423_s21   ;;  %s4420_s18 = sphi %s4418_s18, %s3374_s18   ;;  %s4416_s17 = sphi %s4414_s17, %s3375_s17  }
 0x3c8   : >> { %3368 = vst [vmem:[%s4416_s17] sm:$0xff] %v3367_v36  ;;  %p3370_p10 = scmp.ge.s32.totalorder %s3369_s23, %s4277_s11  ;;  %p3360_p11 = scmp.ge.s32.totalorder %s3361_s22, %s4277_s11 }
 0x3ca   : >> { %s8189_s23 = smov (%p3370_p10, %s3369_s23), 0  ;;  %3363 = sbr.rel (!%p3360_p11) target bundleno = 967 (0x3c7), region = 227 }
 0x3cb   : >> { %s3750_s12 = sshll.u32 %s8189_s23, 3  ;;  %s4423_s21 = smov %s8189_s23  }
 0x3cc   : >> { %s3374_s18 = scalar_lea.vmem %s3355_s9, %s3750_s12 [#allocation3]   ;;  %s3375_s17 = scalar_lea.vmem %s3357_s10, %s3750_s12  }
 0x3cf PF: > { %p10_p12 = scmp.ge.s32.totalorder %s4469_s16, 8   ;;  %s8175_s12 = smov %s4360_s13 }
 0x3d0   : > { %s8176_s13 = smov %s4479_s19  ;;  %s8177_s14 = smov %s4469_s16 }
 0x3d1   :  { %12 = sbr.rel (!%p10_p12) target bundleno = 2 (0x2), region = 238 }

</bundles_post_ra>
